<compile_context>
chip_gen: v5e
topology: v5e:2x2
jax: 0.10.0
libtpu: 0.0.40
codegen_flags: <defaults>
</compile_context>

<pallas_src>
import functools

import numpy as np
import jax
import jax.numpy as jnp
from jax import tree_util
from jax.experimental import pallas as pl
from jax.experimental.pallas import tpu as pltpu


# ----------------------------------------------------------------------------
# Core Pallas kernel: tiled (M,K) @ (K,N) + bias [+ residual], optional ReLU.
# bf16 A/B tiles, f32 accumulation in a VMEM scratch, bf16 output written on
# the last K step only.
# ----------------------------------------------------------------------------
def _mm_bias_relu_kernel(*refs, relu, has_res):
    if has_res:
        a_ref, b_ref, bias_ref, res_ref, o_ref, acc_ref = refs
    else:
        a_ref, b_ref, bias_ref, o_ref, acc_ref = refs
        res_ref = None

    @pl.when(pl.program_id(2) == 0)
    def _():
        acc_ref[...] = jnp.zeros_like(acc_ref)

    acc_ref[...] += jnp.dot(a_ref[...], b_ref[...],
                            preferred_element_type=jnp.float32)

    @pl.when(pl.program_id(2) == pl.num_programs(2) - 1)
    def _():
        r = acc_ref[...] + bias_ref[...]
        if has_res:
            r = r + res_ref[...].astype(jnp.float32)
        if relu:
            r = jnp.maximum(r, 0.0)
        o_ref[...] = r.astype(o_ref.dtype)


# ----------------------------------------------------------------------------
# Tiling helpers
# ----------------------------------------------------------------------------
def _round_up(x, m):
    return ((x + m - 1) // m) * m


_TK_MAX = 2304          # 9 * 256: MXU-friendly K tile bound
_M_XLA = 32             # matmuls this small go to plain XLA dot (perf review)
_HAS_BUFFERED = hasattr(pl, "Buffered")


def _pad_k(K):
    if K <= _TK_MAX:
        return _round_up(K, 128)
    return _round_up(K, _TK_MAX)


def _choose_tm(M_pad, TK, k_steps):
    # When K is tiled, keep a single M tile if it fits so the weight strip is
    # streamed from HBM exactly once (B's index_map ignores the M grid axis).
    if k_steps > 1 and M_pad <= 1024 and 2 * M_pad * TK * 2 <= 16 * 1024 * 1024:
        return M_pad
    # TODO(synk): for very large M with a tiled K axis the weight strip is still
    # re-fetched once per M tile; not reachable at these shapes.
    for tm in (512, 256, 128):
        if M_pad % tm == 0:
            return tm
    return 128


def _choose_tn(N_pad):
    for tn in (512, 256, 128):
        if N_pad % tn == 0:
            return tn
    return 128


def _make_b_spec(TK, TN, depth):
    idx = lambda i, j, k: (k, j)
    if _HAS_BUFFERED and depth > 2:
        try:
            return pl.BlockSpec((TK, TN), idx, pipeline_mode=pl.Buffered(depth))
        except TypeError:               # older jax: no pipeline_mode kwarg
            pass
    return pl.BlockSpec((TK, TN), idx)


# ----------------------------------------------------------------------------
# Prepared matmul weights (pytree node): padded bf16 for the Pallas path,
# un-padded bf16 for the small-M XLA path, f32 biases, metadata.
# ----------------------------------------------------------------------------
class MM:
    def __init__(self, w_pal, b_pal, w_x, b_x, k, n, kh, kw):
        self.w_pal, self.b_pal, self.w_x, self.b_x = w_pal, b_pal, w_x, b_x
        self.k, self.n, self.kh, self.kw = k, n, kh, kw


tree_util.register_pytree_node(
    MM,
    lambda mm: ((mm.w_pal, mm.b_pal, mm.w_x, mm.b_x), (mm.k, mm.n, mm.kh, mm.kw)),
    lambda aux, ch: MM(*ch, *aux),
)


def prep_matmul(wmat, bias, kh=1, kw=1):
    K, N = wmat.shape
    K_pad = _pad_k(K)
    N_pad = _round_up(N, 128)
    w32 = wmat.astype(jnp.float32)
    b32 = bias.astype(jnp.float32)
    w_pal = jnp.pad(w32, ((0, K_pad - K), (0, N_pad - N))).astype(jnp.bfloat16)
    b_pal = jnp.pad(b32, (0, N_pad - N)).reshape(1, N_pad)
    return MM(w_pal, b_pal, w32.astype(jnp.bfloat16), b32, K, N, kh, kw)


def prep_conv(w, bias):
    """w: (kh, kw, cin, cout) HWIO."""
    kh, kw, cin, cout = w.shape
    return prep_matmul(w.reshape(kh * kw * cin, cout), bias, kh, kw)


# ConvTranspose2d(k=3, s=2, p=1, op=1) output-phase decomposition:
# Output[2m+py, 2n+px] only uses kernel taps ky in _TAPS[py], kx in _TAPS[px],
# applied to input rows m..m+Ry-1 / cols n..n+Rx-1 (zero high-pad by 1).
_TAPS = {0: (1,), 1: (2, 0)}


def prep_deconv(w, bias):
    """w in PyTorch ConvTranspose2d layout (cin, cout, 3, 3).
    Returns 4 per-phase prepared matmuls (no structurally-zero rows / MACs)."""
    phases = []
    for py in (0, 1):
        for px in (0, 1):
            blocks = [w[:, :, ky, kx] for ky in _TAPS[py] for kx in _TAPS[px]]
            wm = jnp.concatenate(blocks, axis=0)          # (Ry*Rx*cin, cout)
            phases.append(prep_matmul(wm, bias,
                                      kh=len(_TAPS[py]), kw=len(_TAPS[px])))
    return phases


def fold_bn(w, bn, eps=1e-5):
    """Fold eval-mode BatchNorm into conv weight/bias (conv has no bias)."""
    g, b, m, v = bn
    scale = g / jnp.sqrt(v + eps)
    return w * scale, b - m * scale


# ----------------------------------------------------------------------------
# Matmul dispatch: Pallas for M > 32, plain XLA dot for tiny M.
# ----------------------------------------------------------------------------
def _pallas_matmul(a, mm, relu, residual):
    M, K = a.shape
    K_pad, N_pad = mm.w_pal.shape
    TK = K_pad if K_pad <= _TK_MAX else _TK_MAX
    k_steps = K_pad // TK
    M_pad = _round_up(M, 128)
    TM = _choose_tm(M_pad, TK, k_steps)
    TN = _choose_tn(N_pad)
    # Keep >= 2 parallel grid points so a 2-TensorCore chip (v7x) uses both
    # cores; prefer splitting N (each core then streams half the weights).
    if (M_pad // TM) * (N_pad // TN) == 1:
        if TN >= 256:
            TN //= 2
        elif TM >= 128:
            TM //= 2

    depth = min(k_steps, 4) if k_steps >= 3 else 2

    a_p = jnp.pad(a.astype(jnp.bfloat16), ((0, M_pad - M), (0, K_pad - K)))
    operands = [a_p, mm.w_pal, mm.b_pal]
    in_specs = [
        pl.BlockSpec((TM, TK), lambda i, j, k: (i, k)),
        _make_b_spec(TK, TN, depth),
        pl.BlockSpec((1, TN), lambda i, j, k: (0, j)),
    ]
    has_res = residual is not None
    if has_res:
        r_p = jnp.pad(residual.astype(jnp.bfloat16),
                      ((0, M_pad - M), (0, N_pad - mm.n)))
        operands.append(r_p)
        in_specs.append(pl.BlockSpec((TM, TN), lambda i, j, k: (i, j)))

    # VMEM footprint of the pipelined buffers + f32 accumulator scratch.
    footprint = (2 * TM * TK * 2 + depth * TK * TN * 2 + 2 * 8 * TN * 4
                 + 2 * TM * TN * 2 + TM * TN * 4)
    if has_res:
        footprint += 2 * TM * TN * 2
    vmem_limit = int(min(48 * 1024 * 1024,
                         max(12 * 1024 * 1024, footprint + 4 * 1024 * 1024)))

    out = pl.pallas_call(
        functools.partial(_mm_bias_relu_kernel, relu=relu, has_res=has_res),
        out_shape=jax.ShapeDtypeStruct((M_pad, N_pad), jnp.bfloat16),
        grid=(M_pad // TM, N_pad // TN, k_steps),
        in_specs=in_specs,
        out_specs=pl.BlockSpec((TM, TN), lambda i, j, k: (i, j)),
        scratch_shapes=[pltpu.VMEM((TM, TN), jnp.float32)],
        compiler_params=pltpu.CompilerParams(
            dimension_semantics=("parallel", "parallel", "arbitrary"),
            vmem_limit_bytes=vmem_limit,
        ),
    )(*operands)
    return out[:M, :mm.n]


def matmul(a, mm, relu=False, residual=None):
    """out = relu?(a @ W + b [+ residual]); a/residual bf16, out bf16."""
    if a.shape[0] <= _M_XLA:
        y = jnp.dot(a, mm.w_x, preferred_element_type=jnp.float32) + mm.b_x
        if residual is not None:
            y = y + residual.astype(jnp.float32)
        if relu:
            y = jnp.maximum(y, 0.0)
        return y.astype(jnp.bfloat16)
    return _pallas_matmul(a, mm, relu, residual)


# ----------------------------------------------------------------------------
# Conv / deconv / pool / resize built on the matmul (glue in plain JAX).
# ----------------------------------------------------------------------------
def conv2d(x, mm, stride=1, pad=0, relu=False, residual=None):
    """x: (B,H,W,Cin) bf16 NHWC; optional residual (B,OH,OW,Cout) fused into
    the matmul epilogue (added before the ReLU)."""
    B, H, W, C = x.shape
    kh, kw = mm.kh, mm.kw
    if pad:
        x = jnp.pad(x, ((0, 0), (pad, pad), (pad, pad), (0, 0)))
    OH = (H + 2 * pad - kh) // stride + 1
    OW = (W + 2 * pad - kw) // stride + 1
    if kh == 1 and kw == 1:
        a = x[:, ::stride, ::stride, :].reshape(B * OH * OW, C)
    else:
        cols = [x[:, dy:dy + stride * (OH - 1) + 1:stride,
                  dx:dx + stride * (OW - 1) + 1:stride, :]
                for dy in range(kh) for dx in range(kw)]
        a = jnp.concatenate(cols, axis=-1).reshape(B * OH * OW, kh * kw * C)
    res = None if residual is None else residual.reshape(B * OH * OW, mm.n)
    y = matmul(a, mm, relu=relu, residual=res)
    return y.reshape(B, OH, OW, mm.n)


def conv_transpose2d(x, phases, relu=False):
    """ConvTranspose2d(k=3, s=2, p=1, op=1) via the 4 output-phase
    sub-convolutions on the un-dilated input (no zero-insertion work)."""
    B, H, W, C = x.shape
    xp = jnp.pad(x, ((0, 0), (0, 1), (0, 1), (0, 0)))   # high-side pad (odd phases)
    outs = []
    for mm in phases:
        Ry, Rx = mm.kh, mm.kw
        if Ry == 1 and Rx == 1:
            a = x.reshape(B * H * W, C)
        else:
            cols = [xp[:, wy:wy + H, wx:wx + W, :]
                    for wy in range(Ry) for wx in range(Rx)]
            a = jnp.concatenate(cols, axis=-1).reshape(B * H * W, Ry * Rx * C)
        outs.append(matmul(a, mm, relu=relu).reshape(B, H, W, mm.n))
    cout = phases[0].n
    y = jnp.stack(outs, axis=0).reshape(2, 2, B, H, W, cout)
    # interleave phases: out[b, 2m+py, 2n+px, c] = phase(py,px)[b, m, n, c]
    return y.transpose(2, 3, 0, 4, 1, 5).reshape(B, 2 * H, 2 * W, cout)


def maxpool2d(x, k=3, s=2, p=1):
    # Tiny data-movement op; shifted slices + elementwise max (no Pallas needed).
    B, H, W, C = x.shape
    neg = float(jnp.finfo(x.dtype).min)
    xp = jnp.pad(x, ((0, 0), (p, p), (p, p), (0, 0)), constant_values=neg)
    OH = (H + 2 * p - k) // s + 1
    OW = (W + 2 * p - k) // s + 1
    out = None
    for dy in range(k):
        for dx in range(k):
            v = xp[:, dy:dy + s * (OH - 1) + 1:s, dx:dx + s * (OW - 1) + 1:s, :]
            out = v if out is None else jnp.maximum(out, v)
    return out


def _bilinear_matrix(in_size, out_size):
    # PyTorch bilinear, align_corners=False, no antialias; trace-time constant.
    scale = in_size / out_size
    dst = np.arange(out_size, dtype=np.float32)
    src = np.maximum((dst + 0.5) * scale - 0.5, 0.0)
    i0 = np.minimum(np.floor(src).astype(np.int32), in_size - 1)
    i1 = np.minimum(i0 + 1, in_size - 1)
    lam = (src - i0).astype(np.float32)
    R = np.zeros((out_size, in_size), np.float32)
    rows = np.arange(out_size)
    np.add.at(R, (rows, i0), 1.0 - lam)
    np.add.at(R, (rows, i1), lam)
    return jnp.asarray(R)


def resize_bilinear(x, out_h, out_w):
    B, H, W, C = x.shape
    Rh = _bilinear_matrix(H, out_h)
    Rw = _bilinear_matrix(W, out_w)
    x = x.astype(jnp.float32)
    x = jnp.einsum('oh,bhwc->bowc', Rh, x)
    x = jnp.einsum('pw,bowc->bopc', Rw, x)
    return x


# ----------------------------------------------------------------------------
# Deterministic parameter construction (synthetic, He-style init).
# ----------------------------------------------------------------------------
class ParamGen:
    def __init__(self, seed):
        self._key = jax.random.PRNGKey(seed)

    def next(self):
        self._key, sub = jax.random.split(self._key)
        return sub

    def normal(self, shape, std):
        return std * jax.random.normal(self.next(), shape, jnp.float32)


def init_params(coord_size, image_h, image_w, seed=42):
    pg = ParamGen(seed)
    p = {}

    # initial_fc: coord -> 128 -> 256 -> 512 -> 3*H*W (ReLU after each)
    dims = [coord_size, 128, 256, 512, 3 * image_h * image_w]
    p['fc'] = [(pg.normal((din, dout), (2.0 / din) ** 0.5),
                pg.normal((dout,), 0.01))
               for din, dout in zip(dims[:-1], dims[1:])]

    def conv_w(kh, kw, cin, cout):
        return pg.normal((kh, kw, cin, cout), (2.0 / (kh * kw * cin)) ** 0.5)

    def bn(c):
        return (1.0 + pg.normal((c,), 0.1),
                pg.normal((c,), 0.1),
                pg.normal((c,), 0.1),
                1.0 + 0.1 * jax.random.uniform(pg.next(), (c,), jnp.float32))

    # ResNet-50 stem (conv1 replaced in the module, same config, bias=False)
    p['conv1_w'] = conv_w(7, 7, 3, 64)
    p['bn1'] = bn(64)

    def bottleneck(cin, planes, stride):
        blk = {'w1': conv_w(1, 1, cin, planes), 'bn1': bn(planes),
               'w2': conv_w(3, 3, planes, planes), 'bn2': bn(planes),
               'w3': conv_w(1, 1, planes, 4 * planes), 'bn3': bn(4 * planes)}
        if stride != 1 or cin != 4 * planes:
            blk['wd'] = conv_w(1, 1, cin, 4 * planes)
            blk['bnd'] = bn(4 * planes)
        return blk

    layers = []
    cin = 64
    for planes, nblocks, stride in [(64, 3, 1), (128, 4, 2),
                                    (256, 6, 2), (512, 3, 2)]:
        blocks = [bottleneck(cin, planes, stride)]
        cin = 4 * planes
        for _ in range(nblocks - 1):
            blocks.append(bottleneck(cin, planes, 1))
        layers.append(blocks)
    p['layers'] = layers

    # ConvTranspose2d upsample stack (PyTorch weight layout (Cin, Cout, 3, 3))
    p['up'] = [(pg.normal((cin, cout, 3, 3), (2.0 / (cin * 9)) ** 0.5),
                pg.normal((cout,), 0.01))
               for cin, cout in [(2048, 1024), (1024, 512), (512, 256),
                                 (256, 128), (128, 3)]]
    return p


def prepare_params(params):
    """One-time weight preprocessing: fold BN, decompose deconvs into phases,
    reshape to (K,N), pad, cast to bf16.  Done OUTSIDE the jitted forward."""
    prepared = {'fc': [(w.astype(jnp.float32), b.astype(jnp.float32))
                       for (w, b) in params['fc']]}
    prepared['conv1'] = prep_conv(*fold_bn(params['conv1_w'], params['bn1']))

    layers = []
    for layer in params['layers']:
        blocks = []
        for blk in layer:
            pb = {'c1': prep_conv(*fold_bn(blk['w1'], blk['bn1'])),
                  'c2': prep_conv(*fold_bn(blk['w2'], blk['bn2'])),
                  'c3': prep_conv(*fold_bn(blk['w3'], blk['bn3']))}
            if 'wd' in blk:
                pb['cd'] = prep_conv(*fold_bn(blk['wd'], blk['bnd']))
            blocks.append(pb)
        layers.append(blocks)
    prepared['layers'] = layers

    prepared['up'] = [prep_deconv(w, b) for (w, b) in params['up']]
    return prepared


# ----------------------------------------------------------------------------
# Forward pass (matches CoordinateToImageResNet.forward semantics)
# ----------------------------------------------------------------------------
_LAYER_STRIDES = (1, 2, 2, 2)


def bottleneck_fwd(pb, x, stride):
    idn = conv2d(x, pb['cd'], stride=stride, pad=0) if 'cd' in pb else x
    out = conv2d(x, pb['c1'], relu=True)
    out = conv2d(out, pb['c2'], stride=stride, pad=1, relu=True)
    # residual add + final ReLU fused into the c3 matmul epilogue
    return conv2d(out, pb['c3'], relu=True, residual=idn)


def forward(prepared, coords, image_h, image_w):
    # initial_fc: tiny M — plain XLA dots (padded Pallas launch costs more).
    x = coords.astype(jnp.float32)
    for (w, b) in prepared['fc']:
        x = jnp.maximum(x @ w + b, 0.0)
    B = x.shape[0]
    x = x.reshape(B, 3, image_h, image_w).transpose(0, 2, 3, 1)
    x = x.astype(jnp.bfloat16)                    # bf16 activations from here on

    # backbone (children[:-2] of ResNet-50): conv1,bn1,relu,maxpool,layer1-4
    x = conv2d(x, prepared['conv1'], stride=2, pad=3, relu=True)
    x = maxpool2d(x, k=3, s=2, p=1)
    # TODO(synk): whole-bottleneck fusion (single Pallas call per block with the
    # activation resident in VMEM) would cut launch count further; not done.
    for li, layer in enumerate(prepared['layers']):
        for bi, pb in enumerate(layer):
            x = bottleneck_fwd(pb, x, _LAYER_STRIDES[li] if bi == 0 else 1)

    # upsample: 5 ConvTranspose2d, ReLU between (not after the last)
    n_up = len(prepared['up'])
    for i, phases in enumerate(prepared['up']):
        x = conv_transpose2d(x, phases, relu=(i < n_up - 1))

    # final bilinear resize to (H, W), align_corners=False
    x = resize_bilinear(x, image_h, image_w)
    return x.transpose(0, 3, 1, 2)                # back to NCHW like PyTorch


forward_jit = jax.jit(forward, static_argnums=(2, 3))


if __name__ == "__main__":
    COORD_SIZE, IMAGE_H, IMAGE_W, BATCH = 6, 16, 16, 2

    params = init_params(COORD_SIZE, IMAGE_H, IMAGE_W, seed=42)
    prepared = prepare_params(params)             # one-time weight prep

    coords = jax.random.normal(jax.random.PRNGKey(0),
                               (BATCH, COORD_SIZE), jnp.float32)

    out = forward_jit(prepared, coords, IMAGE_H, IMAGE_W)
    out = jax.block_until_ready(out)
    assert out.shape == (BATCH, 3, IMAGE_H, IMAGE_W), out.shape
    assert bool(jnp.all(jnp.isfinite(out)))
    print("KERNEL_OK")
</pallas_src>

<mosaic_0001>
module attributes {stable_mosaic.version = 11 : i64} {
  func.func @_mm_bias_relu_kernel(%arg0: i32, %arg1: i32, %arg2: i32, %arg3: memref<64x256xbf16, #tpu.memory_space<vmem>>, %arg4: memref<256x128xbf16, #tpu.memory_space<vmem>>, %arg5: memref<1x128xf32, #tpu.memory_space<vmem>>, %arg6: memref<64x128xbf16, #tpu.memory_space<vmem>>, %arg7: memref<64x128xf32, #tpu.memory_space<vmem>>) attributes {dimension_semantics = [#tpu.dimension_semantics<parallel>, #tpu.dimension_semantics<parallel>, #tpu.dimension_semantics<arbitrary>], iteration_bounds = array<i64: 2, 1, 1>, scalar_prefetch = 0 : i64, scratch_operands = 1 : i64, tpu.core_type = #tpu.core_type<tc>, window_params = [{transform_indices = @transform_0, window_bounds = array<i64: 64, 256>}, {transform_indices = @transform_1, window_bounds = array<i64: 256, 128>}, {transform_indices = @transform_2, window_bounds = array<i64: 1, 128>}, {transform_indices = @transform_3, window_bounds = array<i64: 64, 128>}]} {
    %c0_i32 = arith.constant 0 : i32
    %0 = arith.cmpi eq, %arg2, %c0_i32 : i32
    %1 = arith.extui %0 : i1 to i32
    %c0_i32_0 = arith.constant 0 : i32
    %2 = arith.cmpi ne, %1, %c0_i32_0 : i32
    scf.if %2 {
      %cst_10 = arith.constant 0.000000e+00 : f32
      %12 = vector.broadcast %cst_10 : f32 to vector<64x128xf32>
      %c0_11 = arith.constant 0 : index
      %c0_12 = arith.constant 0 : index
      %13 = vector.load %arg7[%c0_11, %c0_12] : memref<64x128xf32, #tpu.memory_space<vmem>>, vector<64x128xf32>
      tpu.vector_store %arg7[%c0_11, %c0_12], %12 {strides = array<i32>} : memref<64x128xf32, #tpu.memory_space<vmem>>, vector<64x128xf32>,
    } else {
    }
    %c0 = arith.constant 0 : index
    %c0_1 = arith.constant 0 : index
    %3 = vector.load %arg7[%c0, %c0_1] : memref<64x128xf32, #tpu.memory_space<vmem>>, vector<64x128xf32>
    %c0_2 = arith.constant 0 : index
    %c0_3 = arith.constant 0 : index
    %4 = vector.load %arg3[%c0_2, %c0_3] : memref<64x256xbf16, #tpu.memory_space<vmem>>, vector<64x256xbf16>
    %c0_4 = arith.constant 0 : index
    %c0_5 = arith.constant 0 : index
    %5 = vector.load %arg4[%c0_4, %c0_5] : memref<256x128xbf16, #tpu.memory_space<vmem>>, vector<256x128xbf16>
    %cst = arith.constant dense<0.000000e+00> : vector<64x128xf32>
    %6 = tpu.matmul %4, %5, %cst {dimension_numbers = #tpu.dot_dimension_numbers<[1], [0], [0], [1], [0, 0, 1, 1], [], []>} : vector<64x256xbf16>, vector<256x128xbf16>, vector<64x128xf32> -> vector<64x128xf32>
    %7 = arith.addf %3, %6 : vector<64x128xf32>
    %c0_6 = arith.constant 0 : index
    %c0_7 = arith.constant 0 : index
    %8 = vector.load %arg7[%c0_6, %c0_7] : memref<64x128xf32, #tpu.memory_space<vmem>>, vector<64x128xf32>
    tpu.vector_store %arg7[%c0_6, %c0_7], %7 {strides = array<i32>} : memref<64x128xf32, #tpu.memory_space<vmem>>, vector<64x128xf32>,
    %c0_i32_8 = arith.constant 0 : i32
    %9 = arith.cmpi eq, %arg2, %c0_i32_8 : i32
    %10 = arith.extui %9 : i1 to i32
    %c0_i32_9 = arith.constant 0 : i32
    %11 = arith.cmpi ne, %10, %c0_i32_9 : i32
    scf.if %11 {
      %c0_10 = arith.constant 0 : index
      %c0_11 = arith.constant 0 : index
      %12 = vector.load %arg7[%c0_10, %c0_11] : memref<64x128xf32, #tpu.memory_space<vmem>>, vector<64x128xf32>
      %c0_12 = arith.constant 0 : index
      %c0_13 = arith.constant 0 : index
      %13 = vector.load %arg5[%c0_12, %c0_13] : memref<1x128xf32, #tpu.memory_space<vmem>>, vector<1x128xf32>
      %14 = vector.broadcast %13 : vector<1x128xf32> to vector<64x128xf32>
      %15 = arith.addf %12, %14 : vector<64x128xf32>
      %cst_14 = arith.constant 0.000000e+00 : f32
      %16 = vector.broadcast %cst_14 : f32 to vector<64x128xf32>
      %17 = arith.maximumf %15, %16 : vector<64x128xf32>
      %18 = arith.truncf %17 : vector<64x128xf32> to vector<64x128xbf16>
      %c0_15 = arith.constant 0 : index
      %c0_16 = arith.constant 0 : index
      %19 = vector.load %arg6[%c0_15, %c0_16] : memref<64x128xbf16, #tpu.memory_space<vmem>>, vector<64x128xbf16>
      tpu.vector_store %arg6[%c0_15, %c0_16], %18 {strides = array<i32>} : memref<64x128xbf16, #tpu.memory_space<vmem>>, vector<64x128xbf16>,
    } else {
    }
    return
  }
  func.func @transform_0(%arg0: i32, %arg1: i32, %arg2: i32) -> (i32, i32) {
    %c0_i32 = arith.constant 0 : i32
    return %arg0, %arg2 : i32, i32
  }
  func.func @transform_1(%arg0: i32, %arg1: i32, %arg2: i32) -> (i32, i32) {
    %c0_i32 = arith.constant 0 : i32
    return %arg2, %arg1 : i32, i32
  }
  func.func @transform_2(%arg0: i32, %arg1: i32, %arg2: i32) -> (i32, i32) {
    %c0_i32 = arith.constant 0 : i32
    %c0_i32_0 = arith.constant 0 : i32
    return %c0_i32, %arg1 : i32, i32
  }
  func.func @transform_3(%arg0: i32, %arg1: i32, %arg2: i32) -> (i32, i32) {
    %c0_i32 = arith.constant 0 : i32
    return %arg0, %arg1 : i32, i32
  }
}

module attributes {stable_mosaic.version = 11 : i64} {
  func.func @_mm_bias_relu_kernel(%arg0: i32, %arg1: i32, %arg2: i32, %arg3: memref<64x512xbf16, #tpu.memory_space<vmem>>, %arg4: memref<512x128xbf16, #tpu.memory_space<vmem>>, %arg5: memref<1x128xf32, #tpu.memory_space<vmem>>, %arg6: memref<64x128xbf16, #tpu.memory_space<vmem>>, %arg7: memref<64x128xf32, #tpu.memory_space<vmem>>) attributes {dimension_semantics = [#tpu.dimension_semantics<parallel>, #tpu.dimension_semantics<parallel>, #tpu.dimension_semantics<arbitrary>], iteration_bounds = array<i64: 2, 1, 1>, scalar_prefetch = 0 : i64, scratch_operands = 1 : i64, tpu.core_type = #tpu.core_type<tc>, window_params = [{transform_indices = @transform_0, window_bounds = array<i64: 64, 512>}, {transform_indices = @transform_1, window_bounds = array<i64: 512, 128>}, {transform_indices = @transform_2, window_bounds = array<i64: 1, 128>}, {transform_indices = @transform_3, window_bounds = array<i64: 64, 128>}]} {
    %c0_i32 = arith.constant 0 : i32
    %0 = arith.cmpi eq, %arg2, %c0_i32 : i32
    %1 = arith.extui %0 : i1 to i32
    %c0_i32_0 = arith.constant 0 : i32
    %2 = arith.cmpi ne, %1, %c0_i32_0 : i32
    scf.if %2 {
      %cst_10 = arith.constant 0.000000e+00 : f32
      %12 = vector.broadcast %cst_10 : f32 to vector<64x128xf32>
      %c0_11 = arith.constant 0 : index
      %c0_12 = arith.constant 0 : index
      %13 = vector.load %arg7[%c0_11, %c0_12] : memref<64x128xf32, #tpu.memory_space<vmem>>, vector<64x128xf32>
      tpu.vector_store %arg7[%c0_11, %c0_12], %12 {strides = array<i32>} : memref<64x128xf32, #tpu.memory_space<vmem>>, vector<64x128xf32>,
    } else {
    }
    %c0 = arith.constant 0 : index
    %c0_1 = arith.constant 0 : index
    %3 = vector.load %arg7[%c0, %c0_1] : memref<64x128xf32, #tpu.memory_space<vmem>>, vector<64x128xf32>
    %c0_2 = arith.constant 0 : index
    %c0_3 = arith.constant 0 : index
    %4 = vector.load %arg3[%c0_2, %c0_3] : memref<64x512xbf16, #tpu.memory_space<vmem>>, vector<64x512xbf16>
    %c0_4 = arith.constant 0 : index
    %c0_5 = arith.constant 0 : index
    %5 = vector.load %arg4[%c0_4, %c0_5] : memref<512x128xbf16, #tpu.memory_space<vmem>>, vector<512x128xbf16>
    %cst = arith.constant dense<0.000000e+00> : vector<64x128xf32>
    %6 = tpu.matmul %4, %5, %cst {dimension_numbers = #tpu.dot_dimension_numbers<[1], [0], [0], [1], [0, 0, 1, 1], [], []>} : vector<64x512xbf16>, vector<512x128xbf16>, vector<64x128xf32> -> vector<64x128xf32>
    %7 = arith.addf %3, %6 : vector<64x128xf32>
    %c0_6 = arith.constant 0 : index
    %c0_7 = arith.constant 0 : index
    %8 = vector.load %arg7[%c0_6, %c0_7] : memref<64x128xf32, #tpu.memory_space<vmem>>, vector<64x128xf32>
    tpu.vector_store %arg7[%c0_6, %c0_7], %7 {strides = array<i32>} : memref<64x128xf32, #tpu.memory_space<vmem>>, vector<64x128xf32>,
    %c0_i32_8 = arith.constant 0 : i32
    %9 = arith.cmpi eq, %arg2, %c0_i32_8 : i32
    %10 = arith.extui %9 : i1 to i32
    %c0_i32_9 = arith.constant 0 : i32
    %11 = arith.cmpi ne, %10, %c0_i32_9 : i32
    scf.if %11 {
      %c0_10 = arith.constant 0 : index
      %c0_11 = arith.constant 0 : index
      %12 = vector.load %arg7[%c0_10, %c0_11] : memref<64x128xf32, #tpu.memory_space<vmem>>, vector<64x128xf32>
      %c0_12 = arith.constant 0 : index
      %c0_13 = arith.constant 0 : index
      %13 = vector.load %arg5[%c0_12, %c0_13] : memref<1x128xf32, #tpu.memory_space<vmem>>, vector<1x128xf32>
      %14 = vector.broadcast %13 : vector<1x128xf32> to vector<64x128xf32>
      %15 = arith.addf %12, %14 : vector<64x128xf32>
      %cst_14 = arith.constant 0.000000e+00 : f32
      %16 = vector.broadcast %cst_14 : f32 to vector<64x128xf32>
      %17 = arith.maximumf %15, %16 : vector<64x128xf32>
      %18 = arith.truncf %17 : vector<64x128xf32> to vector<64x128xbf16>
      %c0_15 = arith.constant 0 : index
      %c0_16 = arith.constant 0 : index
      %19 = vector.load %arg6[%c0_15, %c0_16] : memref<64x128xbf16, #tpu.memory_space<vmem>>, vector<64x128xbf16>
      tpu.vector_store %arg6[%c0_15, %c0_16], %18 {strides = array<i32>} : memref<64x128xbf16, #tpu.memory_space<vmem>>, vector<64x128xbf16>,
    } else {
    }
    return
  }
  func.func @transform_0(%arg0: i32, %arg1: i32, %arg2: i32) -> (i32, i32) {
    %c0_i32 = arith.constant 0 : i32
    return %arg0, %arg2 : i32, i32
  }
  func.func @transform_1(%arg0: i32, %arg1: i32, %arg2: i32) -> (i32, i32) {
    %c0_i32 = arith.constant 0 : i32
    return %arg2, %arg1 : i32, i32
  }
  func.func @transform_2(%arg0: i32, %arg1: i32, %arg2: i32) -> (i32, i32) {
    %c0_i32 = arith.constant 0 : i32
    %c0_i32_0 = arith.constant 0 : i32
    return %c0_i32, %arg1 : i32, i32
  }
  func.func @transform_3(%arg0: i32, %arg1: i32, %arg2: i32) -> (i32, i32) {
    %c0_i32 = arith.constant 0 : i32
    return %arg0, %arg1 : i32, i32
  }
}

module attributes {stable_mosaic.version = 11 : i64} {
  func.func @_mm_bias_relu_kernel(%arg0: i32, %arg1: i32, %arg2: i32, %arg3: memref<64x1024xbf16, #tpu.memory_space<vmem>>, %arg4: memref<1024x128xbf16, #tpu.memory_space<vmem>>, %arg5: memref<1x128xf32, #tpu.memory_space<vmem>>, %arg6: memref<64x128xbf16, #tpu.memory_space<vmem>>, %arg7: memref<64x128xf32, #tpu.memory_space<vmem>>) attributes {dimension_semantics = [#tpu.dimension_semantics<parallel>, #tpu.dimension_semantics<parallel>, #tpu.dimension_semantics<arbitrary>], iteration_bounds = array<i64: 2, 1, 1>, scalar_prefetch = 0 : i64, scratch_operands = 1 : i64, tpu.core_type = #tpu.core_type<tc>, window_params = [{transform_indices = @transform_0, window_bounds = array<i64: 64, 1024>}, {transform_indices = @transform_1, window_bounds = array<i64: 1024, 128>}, {transform_indices = @transform_2, window_bounds = array<i64: 1, 128>}, {transform_indices = @transform_3, window_bounds = array<i64: 64, 128>}]} {
    %c0_i32 = arith.constant 0 : i32
    %0 = arith.cmpi eq, %arg2, %c0_i32 : i32
    %1 = arith.extui %0 : i1 to i32
    %c0_i32_0 = arith.constant 0 : i32
    %2 = arith.cmpi ne, %1, %c0_i32_0 : i32
    scf.if %2 {
      %cst_10 = arith.constant 0.000000e+00 : f32
      %12 = vector.broadcast %cst_10 : f32 to vector<64x128xf32>
      %c0_11 = arith.constant 0 : index
      %c0_12 = arith.constant 0 : index
      %13 = vector.load %arg7[%c0_11, %c0_12] : memref<64x128xf32, #tpu.memory_space<vmem>>, vector<64x128xf32>
      tpu.vector_store %arg7[%c0_11, %c0_12], %12 {strides = array<i32>} : memref<64x128xf32, #tpu.memory_space<vmem>>, vector<64x128xf32>,
    } else {
    }
    %c0 = arith.constant 0 : index
    %c0_1 = arith.constant 0 : index
    %3 = vector.load %arg7[%c0, %c0_1] : memref<64x128xf32, #tpu.memory_space<vmem>>, vector<64x128xf32>
    %c0_2 = arith.constant 0 : index
    %c0_3 = arith.constant 0 : index
    %4 = vector.load %arg3[%c0_2, %c0_3] : memref<64x1024xbf16, #tpu.memory_space<vmem>>, vector<64x1024xbf16>
    %c0_4 = arith.constant 0 : index
    %c0_5 = arith.constant 0 : index
    %5 = vector.load %arg4[%c0_4, %c0_5] : memref<1024x128xbf16, #tpu.memory_space<vmem>>, vector<1024x128xbf16>
    %cst = arith.constant dense<0.000000e+00> : vector<64x128xf32>
    %6 = tpu.matmul %4, %5, %cst {dimension_numbers = #tpu.dot_dimension_numbers<[1], [0], [0], [1], [0, 0, 1, 1], [], []>} : vector<64x1024xbf16>, vector<1024x128xbf16>, vector<64x128xf32> -> vector<64x128xf32>
    %7 = arith.addf %3, %6 : vector<64x128xf32>
    %c0_6 = arith.constant 0 : index
    %c0_7 = arith.constant 0 : index
    %8 = vector.load %arg7[%c0_6, %c0_7] : memref<64x128xf32, #tpu.memory_space<vmem>>, vector<64x128xf32>
    tpu.vector_store %arg7[%c0_6, %c0_7], %7 {strides = array<i32>} : memref<64x128xf32, #tpu.memory_space<vmem>>, vector<64x128xf32>,
    %c0_i32_8 = arith.constant 0 : i32
    %9 = arith.cmpi eq, %arg2, %c0_i32_8 : i32
    %10 = arith.extui %9 : i1 to i32
    %c0_i32_9 = arith.constant 0 : i32
    %11 = arith.cmpi ne, %10, %c0_i32_9 : i32
    scf.if %11 {
      %c0_10 = arith.constant 0 : index
      %c0_11 = arith.constant 0 : index
      %12 = vector.load %arg7[%c0_10, %c0_11] : memref<64x128xf32, #tpu.memory_space<vmem>>, vector<64x128xf32>
      %c0_12 = arith.constant 0 : index
      %c0_13 = arith.constant 0 : index
      %13 = vector.load %arg5[%c0_12, %c0_13] : memref<1x128xf32, #tpu.memory_space<vmem>>, vector<1x128xf32>
      %14 = vector.broadcast %13 : vector<1x128xf32> to vector<64x128xf32>
      %15 = arith.addf %12, %14 : vector<64x128xf32>
      %cst_14 = arith.constant 0.000000e+00 : f32
      %16 = vector.broadcast %cst_14 : f32 to vector<64x128xf32>
      %17 = arith.maximumf %15, %16 : vector<64x128xf32>
      %18 = arith.truncf %17 : vector<64x128xf32> to vector<64x128xbf16>
      %c0_15 = arith.constant 0 : index
      %c0_16 = arith.constant 0 : index
      %19 = vector.load %arg6[%c0_15, %c0_16] : memref<64x128xbf16, #tpu.memory_space<vmem>>, vector<64x128xbf16>
      tpu.vector_store %arg6[%c0_15, %c0_16], %18 {strides = array<i32>} : memref<64x128xbf16, #tpu.memory_space<vmem>>, vector<64x128xbf16>,
    } else {
    }
    return
  }
  func.func @transform_0(%arg0: i32, %arg1: i32, %arg2: i32) -> (i32, i32) {
    %c0_i32 = arith.constant 0 : i32
    return %arg0, %arg2 : i32, i32
  }
  func.func @transform_1(%arg0: i32, %arg1: i32, %arg2: i32) -> (i32, i32) {
    %c0_i32 = arith.constant 0 : i32
    return %arg2, %arg1 : i32, i32
  }
  func.func @transform_2(%arg0: i32, %arg1: i32, %arg2: i32) -> (i32, i32) {
    %c0_i32 = arith.constant 0 : i32
    %c0_i32_0 = arith.constant 0 : i32
    return %c0_i32, %arg1 : i32, i32
  }
  func.func @transform_3(%arg0: i32, %arg1: i32, %arg2: i32) -> (i32, i32) {
    %c0_i32 = arith.constant 0 : i32
    return %arg0, %arg1 : i32, i32
  }
}

module attributes {stable_mosaic.version = 11 : i64} {
  func.func @_mm_bias_relu_kernel(%arg0: i32, %arg1: i32, %arg2: i32, %arg3: memref<256x256xbf16, #tpu.memory_space<vmem>>, %arg4: memref<256x128xbf16, #tpu.memory_space<vmem>>, %arg5: memref<1x128xf32, #tpu.memory_space<vmem>>, %arg6: memref<256x128xbf16, #tpu.memory_space<vmem>>, %arg7: memref<256x128xf32, #tpu.memory_space<vmem>>) attributes {dimension_semantics = [#tpu.dimension_semantics<parallel>, #tpu.dimension_semantics<parallel>, #tpu.dimension_semantics<arbitrary>], iteration_bounds = array<i64: 2, 1, 1>, scalar_prefetch = 0 : i64, scratch_operands = 1 : i64, tpu.core_type = #tpu.core_type<tc>, window_params = [{transform_indices = @transform_0, window_bounds = array<i64: 256, 256>}, {transform_indices = @transform_1, window_bounds = array<i64: 256, 128>}, {transform_indices = @transform_2, window_bounds = array<i64: 1, 128>}, {transform_indices = @transform_3, window_bounds = array<i64: 256, 128>}]} {
    %c0_i32 = arith.constant 0 : i32
    %0 = arith.cmpi eq, %arg2, %c0_i32 : i32
    %1 = arith.extui %0 : i1 to i32
    %c0_i32_0 = arith.constant 0 : i32
    %2 = arith.cmpi ne, %1, %c0_i32_0 : i32
    scf.if %2 {
      %cst_10 = arith.constant 0.000000e+00 : f32
      %12 = vector.broadcast %cst_10 : f32 to vector<256x128xf32>
      %c0_11 = arith.constant 0 : index
      %c0_12 = arith.constant 0 : index
      %13 = vector.load %arg7[%c0_11, %c0_12] : memref<256x128xf32, #tpu.memory_space<vmem>>, vector<256x128xf32>
      tpu.vector_store %arg7[%c0_11, %c0_12], %12 {strides = array<i32>} : memref<256x128xf32, #tpu.memory_space<vmem>>, vector<256x128xf32>,
    } else {
    }
    %c0 = arith.constant 0 : index
    %c0_1 = arith.constant 0 : index
    %3 = vector.load %arg7[%c0, %c0_1] : memref<256x128xf32, #tpu.memory_space<vmem>>, vector<256x128xf32>
    %c0_2 = arith.constant 0 : index
    %c0_3 = arith.constant 0 : index
    %4 = vector.load %arg3[%c0_2, %c0_3] : memref<256x256xbf16, #tpu.memory_space<vmem>>, vector<256x256xbf16>
    %c0_4 = arith.constant 0 : index
    %c0_5 = arith.constant 0 : index
    %5 = vector.load %arg4[%c0_4, %c0_5] : memref<256x128xbf16, #tpu.memory_space<vmem>>, vector<256x128xbf16>
    %cst = arith.constant dense<0.000000e+00> : vector<256x128xf32>
    %6 = tpu.matmul %4, %5, %cst {dimension_numbers = #tpu.dot_dimension_numbers<[1], [0], [0], [1], [0, 0, 1, 1], [], []>} : vector<256x256xbf16>, vector<256x128xbf16>, vector<256x128xf32> -> vector<256x128xf32>
    %7 = arith.addf %3, %6 : vector<256x128xf32>
    %c0_6 = arith.constant 0 : index
    %c0_7 = arith.constant 0 : index
    %8 = vector.load %arg7[%c0_6, %c0_7] : memref<256x128xf32, #tpu.memory_space<vmem>>, vector<256x128xf32>
    tpu.vector_store %arg7[%c0_6, %c0_7], %7 {strides = array<i32>} : memref<256x128xf32, #tpu.memory_space<vmem>>, vector<256x128xf32>,
    %c0_i32_8 = arith.constant 0 : i32
    %9 = arith.cmpi eq, %arg2, %c0_i32_8 : i32
    %10 = arith.extui %9 : i1 to i32
    %c0_i32_9 = arith.constant 0 : i32
    %11 = arith.cmpi ne, %10, %c0_i32_9 : i32
    scf.if %11 {
      %c0_10 = arith.constant 0 : index
      %c0_11 = arith.constant 0 : index
      %12 = vector.load %arg7[%c0_10, %c0_11] : memref<256x128xf32, #tpu.memory_space<vmem>>, vector<256x128xf32>
      %c0_12 = arith.constant 0 : index
      %c0_13 = arith.constant 0 : index
      %13 = vector.load %arg5[%c0_12, %c0_13] : memref<1x128xf32, #tpu.memory_space<vmem>>, vector<1x128xf32>
      %14 = vector.broadcast %13 : vector<1x128xf32> to vector<256x128xf32>
      %15 = arith.addf %12, %14 : vector<256x128xf32>
      %16 = arith.truncf %15 : vector<256x128xf32> to vector<256x128xbf16>
      %c0_14 = arith.constant 0 : index
      %c0_15 = arith.constant 0 : index
      %17 = vector.load %arg6[%c0_14, %c0_15] : memref<256x128xbf16, #tpu.memory_space<vmem>>, vector<256x128xbf16>
      tpu.vector_store %arg6[%c0_14, %c0_15], %16 {strides = array<i32>} : memref<256x128xbf16, #tpu.memory_space<vmem>>, vector<256x128xbf16>,
    } else {
    }
    return
  }
  func.func @transform_0(%arg0: i32, %arg1: i32, %arg2: i32) -> (i32, i32) {
    %c0_i32 = arith.constant 0 : i32
    return %arg0, %arg2 : i32, i32
  }
  func.func @transform_1(%arg0: i32, %arg1: i32, %arg2: i32) -> (i32, i32) {
    %c0_i32 = arith.constant 0 : i32
    return %arg2, %arg1 : i32, i32
  }
  func.func @transform_2(%arg0: i32, %arg1: i32, %arg2: i32) -> (i32, i32) {
    %c0_i32 = arith.constant 0 : i32
    %c0_i32_0 = arith.constant 0 : i32
    return %c0_i32, %arg1 : i32, i32
  }
  func.func @transform_3(%arg0: i32, %arg1: i32, %arg2: i32) -> (i32, i32) {
    %c0_i32 = arith.constant 0 : i32
    return %arg0, %arg1 : i32, i32
  }
}

module attributes {stable_mosaic.version = 11 : i64} {
  func.func @_mm_bias_relu_kernel(%arg0: i32, %arg1: i32, %arg2: i32, %arg3: memref<256x512xbf16, #tpu.memory_space<vmem>>, %arg4: memref<512x128xbf16, #tpu.memory_space<vmem>>, %arg5: memref<1x128xf32, #tpu.memory_space<vmem>>, %arg6: memref<256x128xbf16, #tpu.memory_space<vmem>>, %arg7: memref<256x128xf32, #tpu.memory_space<vmem>>) attributes {dimension_semantics = [#tpu.dimension_semantics<parallel>, #tpu.dimension_semantics<parallel>, #tpu.dimension_semantics<arbitrary>], iteration_bounds = array<i64: 2, 1, 1>, scalar_prefetch = 0 : i64, scratch_operands = 1 : i64, tpu.core_type = #tpu.core_type<tc>, window_params = [{transform_indices = @transform_0, window_bounds = array<i64: 256, 512>}, {transform_indices = @transform_1, window_bounds = array<i64: 512, 128>}, {transform_indices = @transform_2, window_bounds = array<i64: 1, 128>}, {transform_indices = @transform_3, window_bounds = array<i64: 256, 128>}]} {
    %c0_i32 = arith.constant 0 : i32
    %0 = arith.cmpi eq, %arg2, %c0_i32 : i32
    %1 = arith.extui %0 : i1 to i32
    %c0_i32_0 = arith.constant 0 : i32
    %2 = arith.cmpi ne, %1, %c0_i32_0 : i32
    scf.if %2 {
      %cst_10 = arith.constant 0.000000e+00 : f32
      %12 = vector.broadcast %cst_10 : f32 to vector<256x128xf32>
      %c0_11 = arith.constant 0 : index
      %c0_12 = arith.constant 0 : index
      %13 = vector.load %arg7[%c0_11, %c0_12] : memref<256x128xf32, #tpu.memory_space<vmem>>, vector<256x128xf32>
      tpu.vector_store %arg7[%c0_11, %c0_12], %12 {strides = array<i32>} : memref<256x128xf32, #tpu.memory_space<vmem>>, vector<256x128xf32>,
    } else {
    }
    %c0 = arith.constant 0 : index
    %c0_1 = arith.constant 0 : index
    %3 = vector.load %arg7[%c0, %c0_1] : memref<256x128xf32, #tpu.memory_space<vmem>>, vector<256x128xf32>
    %c0_2 = arith.constant 0 : index
    %c0_3 = arith.constant 0 : index
    %4 = vector.load %arg3[%c0_2, %c0_3] : memref<256x512xbf16, #tpu.memory_space<vmem>>, vector<256x512xbf16>
    %c0_4 = arith.constant 0 : index
    %c0_5 = arith.constant 0 : index
    %5 = vector.load %arg4[%c0_4, %c0_5] : memref<512x128xbf16, #tpu.memory_space<vmem>>, vector<512x128xbf16>
    %cst = arith.constant dense<0.000000e+00> : vector<256x128xf32>
    %6 = tpu.matmul %4, %5, %cst {dimension_numbers = #tpu.dot_dimension_numbers<[1], [0], [0], [1], [0, 0, 1, 1], [], []>} : vector<256x512xbf16>, vector<512x128xbf16>, vector<256x128xf32> -> vector<256x128xf32>
    %7 = arith.addf %3, %6 : vector<256x128xf32>
    %c0_6 = arith.constant 0 : index
    %c0_7 = arith.constant 0 : index
    %8 = vector.load %arg7[%c0_6, %c0_7] : memref<256x128xf32, #tpu.memory_space<vmem>>, vector<256x128xf32>
    tpu.vector_store %arg7[%c0_6, %c0_7], %7 {strides = array<i32>} : memref<256x128xf32, #tpu.memory_space<vmem>>, vector<256x128xf32>,
    %c0_i32_8 = arith.constant 0 : i32
    %9 = arith.cmpi eq, %arg2, %c0_i32_8 : i32
    %10 = arith.extui %9 : i1 to i32
    %c0_i32_9 = arith.constant 0 : i32
    %11 = arith.cmpi ne, %10, %c0_i32_9 : i32
    scf.if %11 {
      %c0_10 = arith.constant 0 : index
      %c0_11 = arith.constant 0 : index
      %12 = vector.load %arg7[%c0_10, %c0_11] : memref<256x128xf32, #tpu.memory_space<vmem>>, vector<256x128xf32>
      %c0_12 = arith.constant 0 : index
      %c0_13 = arith.constant 0 : index
      %13 = vector.load %arg5[%c0_12, %c0_13] : memref<1x128xf32, #tpu.memory_space<vmem>>, vector<1x128xf32>
      %14 = vector.broadcast %13 : vector<1x128xf32> to vector<256x128xf32>
      %15 = arith.addf %12, %14 : vector<256x128xf32>
      %16 = arith.truncf %15 : vector<256x128xf32> to vector<256x128xbf16>
      %c0_14 = arith.constant 0 : index
      %c0_15 = arith.constant 0 : index
      %17 = vector.load %arg6[%c0_14, %c0_15] : memref<256x128xbf16, #tpu.memory_space<vmem>>, vector<256x128xbf16>
      tpu.vector_store %arg6[%c0_14, %c0_15], %16 {strides = array<i32>} : memref<256x128xbf16, #tpu.memory_space<vmem>>, vector<256x128xbf16>,
    } else {
    }
    return
  }
  func.func @transform_0(%arg0: i32, %arg1: i32, %arg2: i32) -> (i32, i32) {
    %c0_i32 = arith.constant 0 : i32
    return %arg0, %arg2 : i32, i32
  }
  func.func @transform_1(%arg0: i32, %arg1: i32, %arg2: i32) -> (i32, i32) {
    %c0_i32 = arith.constant 0 : i32
    return %arg2, %arg1 : i32, i32
  }
  func.func @transform_2(%arg0: i32, %arg1: i32, %arg2: i32) -> (i32, i32) {
    %c0_i32 = arith.constant 0 : i32
    %c0_i32_0 = arith.constant 0 : i32
    return %c0_i32, %arg1 : i32, i32
  }
  func.func @transform_3(%arg0: i32, %arg1: i32, %arg2: i32) -> (i32, i32) {
    %c0_i32 = arith.constant 0 : i32
    return %arg0, %arg1 : i32, i32
  }
}

module attributes {stable_mosaic.version = 11 : i64} {
  func.func @_mm_bias_relu_kernel(%arg0: i32, %arg1: i32, %arg2: i32, %arg3: memref<256x128xbf16, #tpu.memory_space<vmem>>, %arg4: memref<128x128xbf16, #tpu.memory_space<vmem>>, %arg5: memref<1x128xf32, #tpu.memory_space<vmem>>, %arg6: memref<256x128xbf16, #tpu.memory_space<vmem>>, %arg7: memref<256x128xf32, #tpu.memory_space<vmem>>) attributes {dimension_semantics = [#tpu.dimension_semantics<parallel>, #tpu.dimension_semantics<parallel>, #tpu.dimension_semantics<arbitrary>], iteration_bounds = array<i64: 2, 1, 1>, scalar_prefetch = 0 : i64, scratch_operands = 1 : i64, tpu.core_type = #tpu.core_type<tc>, window_params = [{transform_indices = @transform_0, window_bounds = array<i64: 256, 128>}, {transform_indices = @transform_1, window_bounds = array<i64: 128, 128>}, {transform_indices = @transform_2, window_bounds = array<i64: 1, 128>}, {transform_indices = @transform_3, window_bounds = array<i64: 256, 128>}]} {
    %c0_i32 = arith.constant 0 : i32
    %0 = arith.cmpi eq, %arg2, %c0_i32 : i32
    %1 = arith.extui %0 : i1 to i32
    %c0_i32_0 = arith.constant 0 : i32
    %2 = arith.cmpi ne, %1, %c0_i32_0 : i32
    scf.if %2 {
      %cst_10 = arith.constant 0.000000e+00 : f32
      %12 = vector.broadcast %cst_10 : f32 to vector<256x128xf32>
      %c0_11 = arith.constant 0 : index
      %c0_12 = arith.constant 0 : index
      %13 = vector.load %arg7[%c0_11, %c0_12] : memref<256x128xf32, #tpu.memory_space<vmem>>, vector<256x128xf32>
      tpu.vector_store %arg7[%c0_11, %c0_12], %12 {strides = array<i32>} : memref<256x128xf32, #tpu.memory_space<vmem>>, vector<256x128xf32>,
    } else {
    }
    %c0 = arith.constant 0 : index
    %c0_1 = arith.constant 0 : index
    %3 = vector.load %arg7[%c0, %c0_1] : memref<256x128xf32, #tpu.memory_space<vmem>>, vector<256x128xf32>
    %c0_2 = arith.constant 0 : index
    %c0_3 = arith.constant 0 : index
    %4 = vector.load %arg3[%c0_2, %c0_3] : memref<256x128xbf16, #tpu.memory_space<vmem>>, vector<256x128xbf16>
    %c0_4 = arith.constant 0 : index
    %c0_5 = arith.constant 0 : index
    %5 = vector.load %arg4[%c0_4, %c0_5] : memref<128x128xbf16, #tpu.memory_space<vmem>>, vector<128x128xbf16>
    %cst = arith.constant dense<0.000000e+00> : vector<256x128xf32>
    %6 = tpu.matmul %4, %5, %cst {dimension_numbers = #tpu.dot_dimension_numbers<[1], [0], [0], [1], [0, 0, 1, 1], [], []>} : vector<256x128xbf16>, vector<128x128xbf16>, vector<256x128xf32> -> vector<256x128xf32>
    %7 = arith.addf %3, %6 : vector<256x128xf32>
    %c0_6 = arith.constant 0 : index
    %c0_7 = arith.constant 0 : index
    %8 = vector.load %arg7[%c0_6, %c0_7] : memref<256x128xf32, #tpu.memory_space<vmem>>, vector<256x128xf32>
    tpu.vector_store %arg7[%c0_6, %c0_7], %7 {strides = array<i32>} : memref<256x128xf32, #tpu.memory_space<vmem>>, vector<256x128xf32>,
    %c0_i32_8 = arith.constant 0 : i32
    %9 = arith.cmpi eq, %arg2, %c0_i32_8 : i32
    %10 = arith.extui %9 : i1 to i32
    %c0_i32_9 = arith.constant 0 : i32
    %11 = arith.cmpi ne, %10, %c0_i32_9 : i32
    scf.if %11 {
      %c0_10 = arith.constant 0 : index
      %c0_11 = arith.constant 0 : index
      %12 = vector.load %arg7[%c0_10, %c0_11] : memref<256x128xf32, #tpu.memory_space<vmem>>, vector<256x128xf32>
      %c0_12 = arith.constant 0 : index
      %c0_13 = arith.constant 0 : index
      %13 = vector.load %arg5[%c0_12, %c0_13] : memref<1x128xf32, #tpu.memory_space<vmem>>, vector<1x128xf32>
      %14 = vector.broadcast %13 : vector<1x128xf32> to vector<256x128xf32>
      %15 = arith.addf %12, %14 : vector<256x128xf32>
      %16 = arith.truncf %15 : vector<256x128xf32> to vector<256x128xbf16>
      %c0_14 = arith.constant 0 : index
      %c0_15 = arith.constant 0 : index
      %17 = vector.load %arg6[%c0_14, %c0_15] : memref<256x128xbf16, #tpu.memory_space<vmem>>, vector<256x128xbf16>
      tpu.vector_store %arg6[%c0_14, %c0_15], %16 {strides = array<i32>} : memref<256x128xbf16, #tpu.memory_space<vmem>>, vector<256x128xbf16>,
    } else {
    }
    return
  }
  func.func @transform_0(%arg0: i32, %arg1: i32, %arg2: i32) -> (i32, i32) {
    %c0_i32 = arith.constant 0 : i32
    return %arg0, %arg2 : i32, i32
  }
  func.func @transform_1(%arg0: i32, %arg1: i32, %arg2: i32) -> (i32, i32) {
    %c0_i32 = arith.constant 0 : i32
    return %arg2, %arg1 : i32, i32
  }
  func.func @transform_2(%arg0: i32, %arg1: i32, %arg2: i32) -> (i32, i32) {
    %c0_i32 = arith.constant 0 : i32
    %c0_i32_0 = arith.constant 0 : i32
    return %c0_i32, %arg1 : i32, i32
  }
  func.func @transform_3(%arg0: i32, %arg1: i32, %arg2: i32) -> (i32, i32) {
    %c0_i32 = arith.constant 0 : i32
    return %arg0, %arg1 : i32, i32
  }
}

</mosaic_0001>

<bundles_post_ra>
// kernel: forward.9
= control target key start
LH: loop header
LB: loop body
LE: loop exit
PB: predicated region body
PF: predicated region fallthrough
CT: control target
= control target key end

     0   :  { %s941_s12 = smov 0   ;;  %s943_s13 = smov 0   ;;  %s1056_s0 = inlined_call_operand.vmem [shape: bf16[128,256], index: 0, kind: input, shape index: {}]   ;;  %s1057_s1 = inlined_call_operand.vmem [shape: bf16[256,128], index: 1, kind: input, shape index: {}]   ;;  %s1058_s2 = inlined_call_operand.vmem [shape: f32[1,128], index: 2, kind: input, shape index: {}]   ;;  %s1059_s3 = inlined_call_operand.vmem [shape: bf16[128,128], index: 3, kind: output, shape index: {}]  }
   0x1   :  { %s945_s14 = smov 0  }
   0x2 LB: > { %s32_s15 = sadd.s32 1, %s915_s13  ;;  %p704_p0 = scmp.ge.s32.totalorder %s919_s14, 1  ;;  %s919_s14 = sphi %s945_s14, %s13_s14   ;;  %s915_s13 = sphi %s943_s13, %s1061_s13   ;;  %s911_s12 = sphi %s941_s12, %s1060_s12  }
   0x3   : > { %p34_p1 = scmp.ge.s32.totalorder %s32_s15, 2  ;;  %p191_p2 = scmp.lt.s32.totalorder %s919_s14, 3 }
   0x5   : > { %s1063_s15 = smov (%p34_p1, %s32_s15), 0  ;;  %p192_p3 = pnand %p704_p0, %p191_p2 }
   0x6   : > { %s705_s28 = sshll.u32 (!%p192_p3), %s911_s12, 3 }
   0x7   : > { %195 = sbr.rel (%p192_p3) target bundleno = 210 (0xd2), region = 32  ;;  %p236_p4 = scmp.lt.s32.totalorder (!%p192_p3), %s705_s28, 15 }
   0xc   : > { %v824_v0 = vld [vmem:[%s1057_s1 + $0x38] sm:$0xff]  ;;  %v823_v2 = vld [vmem:[%s1057_s1 + $0x30] sm:$0xff]  ;;  %v822_v4 = vld [vmem:[%s1057_s1 + $0x28] sm:$0xff]  ;;  %s1065_s28 = smov (!%p236_p4, %s705_s28), 15 }
   0xd   : > { %v832_v1 = vld [vmem:[%s1057_s1 + $0x78] sm:$0xff]  ;;  %463 = vmatpush.bf16.msra.mxu0 %v824_v0  ;;  %856 = vmatpush.bf16.msra.mxu2 %v824_v0  ;;  %v831_v3 = vld [vmem:[%s1057_s1 + $0x70] sm:$0xff]  ;;  %v830_v5 = vld [vmem:[%s1057_s1 + $0x68] sm:$0xff]  ;;  %s808_s17 = sshll.u32 %s1065_s28, 3  ;;  %s709_s5 = sshll.u32 %s1065_s28, 2 }
   0xe   : > { %492 = vmatpush.bf16.msra.mxu1 %v832_v1  ;;  %864 = vmatpush.bf16.msra.mxu3 %v832_v1  ;;  %v821_v6 = vld [vmem:[%s1057_s1 + $0x20] sm:$0xff]  ;;  %v820_v8 = vld [vmem:[%s1057_s1 + $0x18] sm:$0xff]  ;;  %v819_v10 = vld [vmem:[%s1057_s1 + $0x10] sm:$0xff]  ;;  %s1007_s22 = scalar_lea.vmem %s1056_s0, %s808_s17  ;;  %s1041_s8 = scalar_lea.vmem %s1059_s3, %s709_s5 }
   0xf   : > { %v829_v7 = vld [vmem:[%s1057_s1 + $0x60] sm:$0xff]  ;;  %v828_v9 = vld [vmem:[%s1057_s1 + $0x58] sm:$0xff]  ;;  %v827_v11 = vld [vmem:[%s1057_s1 + $0x50] sm:$0xff] }
  0x10   : > { %v818_v12 = vld [vmem:[%s1057_s1 + $0x8] sm:$0xff]  ;;  %v817_v14 = vld [vmem:[%s1057_s1] sm:$0xff]  ;;  %v720_v28 = vld [vmem:[%s1007_s22 + $0x10] sm:$0xf] }
  0x11   : > { %464 = vmatpush.bf16.msra.mxu0 %v823_v2  ;;  %857 = vmatpush.bf16.msra.mxu2 %v823_v2  ;;  %v826_v13 = vld [vmem:[%s1057_s1 + $0x48] sm:$0xff]  ;;  %v825_v15 = vld [vmem:[%s1057_s1 + $0x40] sm:$0xff]  ;;  %v812_v29 = vld [vmem:[%s1007_s22 + $0x14] sm:$0xf0] }
  0x12   : > { %493 = vmatpush.bf16.msra.mxu1 %v831_v3  ;;  %865 = vmatpush.bf16.msra.mxu3 %v831_v3  ;;  %v712_v16 = vld [vmem:[%s1007_s22] sm:$0xf]  ;;  %v810_v17 = vld [vmem:[%s1007_s22 + $0x4] sm:$0xf0]  ;;  %v809_v20 = vld [vmem:[%s1007_s22 + $0x4] sm:$0xf]  ;;  %v721_v36 = vor.u32 %v812_v29, %v720_v28 }
  0x13   : > { %v728_v18 = vld [vmem:[%s1007_s22 + $0x20] sm:$0xf]  ;;  %v814_v19 = vld [vmem:[%s1007_s22 + $0x24] sm:$0xf0]  ;;  %v714_v21 = vld [vmem:[%s1007_s22 + $0x8] sm:$0xf0]  ;;  %v713_v24 = vor.u32 %v810_v17, %v712_v16 }
  0x14   : > { %v813_v22 = vld [vmem:[%s1007_s22 + $0x24] sm:$0xf]  ;;  %v730_v23 = vld [vmem:[%s1007_s22 + $0x28] sm:$0xf0]  ;;  %v729_v25 = vor.u32 %v814_v19, %v728_v18  ;;  %v717_v26 = vor.u32 %v809_v20, %v714_v21  ;;  %v736_v30 = vld [vmem:[%s1007_s22 + $0x30] sm:$0xf] }
  0x15   : > { %465 = vmatpush.bf16.msra.mxu0 %v822_v4  ;;  %858 = vmatpush.bf16.msra.mxu2 %v822_v4  ;;  %v733_v27 = vor.u32 %v813_v22, %v730_v23  ;;  %v816_v31 = vld [vmem:[%s1007_s22 + $0x34] sm:$0xf0]  ;;  %v811_v32 = vld [vmem:[%s1007_s22 + $0x14] sm:$0xf]  ;;  %v722_v33 = vld [vmem:[%s1007_s22 + $0x18] sm:$0xf0] }
  0x16   : > { %494 = vmatpush.bf16.msra.mxu1 %v830_v5  ;;  %866 = vmatpush.bf16.msra.mxu3 %v830_v5  ;;  %v815_v34 = vld [vmem:[%s1007_s22 + $0x34] sm:$0xf]  ;;  %v738_v35 = vld [vmem:[%s1007_s22 + $0x38] sm:$0xf0]  ;;  %v737_v37 = vor.u32 %v816_v31, %v736_v30  ;;  %v725_v38 = vor.u32 %v811_v32, %v722_v33  ;;  %v896_v43 = vld [vmem:[%s1058_s2] ss:$0 sm:$0xff] }
  0x17   : > { %v741_v39 = vor.u32 %v815_v34, %v738_v35 }
  0x19   : > { %466 = vmatpush.bf16.msra.mxu0 %v821_v6  ;;  %859 = vmatpush.bf16.msra.mxu2 %v821_v6 }
  0x1a   : > { %495 = vmatpush.bf16.msra.mxu1 %v829_v7  ;;  %867 = vmatpush.bf16.msra.mxu3 %v829_v7 }
  0x1d   : > { %467 = vmatpush.bf16.msra.mxu0 %v820_v8  ;;  %860 = vmatpush.bf16.msra.mxu2 %v820_v8 }
  0x1e   : > { %496 = vmatpush.bf16.msra.mxu1 %v828_v9  ;;  %868 = vmatpush.bf16.msra.mxu3 %v828_v9 }
  0x21   : > { %468 = vmatpush.bf16.msra.mxu0 %v819_v10  ;;  %861 = vmatpush.bf16.msra.mxu2 %v819_v10 }
  0x22   : > { %497 = vmatpush.bf16.msra.mxu1 %v827_v11  ;;  %869 = vmatpush.bf16.msra.mxu3 %v827_v11 }
  0x25   : > { %469 = vmatpush.bf16.msra.mxu0 %v818_v12  ;;  %862 = vmatpush.bf16.msra.mxu2 %v818_v12 }
  0x26   : > { %498 = vmatpush.bf16.msra.mxu1 %v826_v13  ;;  %870 = vmatpush.bf16.msra.mxu3 %v826_v13 }
  0x29   : > { %470 = vmatpush.bf16.msra.mxu0 %v817_v14  ;;  %863 = vmatpush.bf16.msra.mxu2 %v817_v14 }
  0x2a   : > { %499 = vmatpush.bf16.msra.mxu1 %v825_v15  ;;  %871 = vmatpush.bf16.msra.mxu3 %v825_v15 }
  0x2c   : > { %471 = vmatmul.bf16.vlgmr.msra.gmra.mxu0 %v713_v24  ;;  %481 = vmatmul.bf16.vlgmr.msra.gmra.mxu2 %v729_v25 }
  0x2d   : > { %500 = vmatmul.bf16.vlgmr.msra.gmra.mxu1 %v717_v26  ;;  %510 = vmatmul.bf16.vlgmr.msra.gmra.mxu3 %v733_v27 }
  0x3c   : > { %476 = vmatmul.bf16.gmra.mxu0 %v721_v36  ;;  %486 = vmatmul.bf16.gmra.mxu2 %v737_v37 }
  0x3d   : > { %505 = vmatmul.bf16.gmra.mxu1 %v725_v38  ;;  %515 = vmatmul.bf16.gmra.mxu3 %v741_v39 }
  0xa9   : > { %v472_v40 = vpop.f32.mrf.mxu0 }
  0xaa   : > { %v501_v41 = vpop.f32.mrf.mxu1 }
  0xab   : > { %v502_v42 = vadd.f32 %v501_v41, %v472_v40 }
  0xad   : > { %v552_v48 = vadd.f32 %v896_v43, %v502_v42 }
  0xaf   : > { %v482_v44 = vpop.f32.mrf.mxu2  ;;  %v560_v52 = vmax.f32 %v552_v48, 0.0 }
  0xb0   : > { %v511_v45 = vpop.f32.mrf.mxu3 }
  0xb1   : > { %v474_v46 = vpop.f32.mrf.mxu0  ;;  %v512_v50 = vadd.f32 %v511_v45, %v482_v44 }
  0xb2   : > { %v503_v47 = vpop.f32.mrf.mxu1 }
  0xb3   : > { %v504_v49 = vadd.f32 %v503_v47, %v474_v46  ;;  %v556_v56 = vadd.f32 %v896_v43, %v512_v50 }
  0xb5   : > { %v553_v51 = vadd.f32 %v896_v43, %v504_v49  ;;  %v564_v62 = vmax.f32 %v556_v56, 0.0 }
  0xb7   : > { %v561_v53 = vmax.f32 %v553_v51, 0.0  ;;  %v484_v54 = vpop.f32.mrf.mxu2 }
  0xb8   : > { %v513_v55 = vpop.f32.mrf.mxu3 }
  0xb9   : > { %v836_v57 = vpack.c.bf16 %v561_v53, %v560_v52  ;;  %v514_v58 = vadd.f32 %v513_v55, %v484_v54  ;;  %v477_v59 = vpop.f32.mrf.mxu0 }
  0xba   : > { %v506_v60 = vpop.f32.mrf.mxu1 }
  0xbb   : > { %837 = vst [vmem:[%s1041_s8] sm:$0xff] %v836_v57   ;;  %v557_v61 = vadd.f32 %v896_v43, %v514_v58  ;;  %v507_v1 = vadd.f32 %v506_v60, %v477_v59 }
  0xbd   : > { %v565_v63 = vmax.f32 %v557_v61, 0.0  ;;  %v554_v6 = vadd.f32 %v896_v43, %v507_v1 }
  0xbf   : > { %v846_v0 = vpack.c.bf16 %v565_v63, %v564_v62  ;;  %v487_v2 = vpop.f32.mrf.mxu2  ;;  %v562_v10 = vmax.f32 %v554_v6, 0.0 }
  0xc0   : > { %v516_v3 = vpop.f32.mrf.mxu3 }
  0xc1   : > { %854 = vst [vmem:[%s1041_s8 + $0x10] sm:$0xff] %v846_v0   ;;  %v479_v4 = vpop.f32.mrf.mxu0  ;;  %v517_v8 = vadd.f32 %v516_v3, %v487_v2 }
  0xc2   : > { %v508_v5 = vpop.f32.mrf.mxu1 }
  0xc3   : > { %v509_v7 = vadd.f32 %v508_v5, %v479_v4  ;;  %v558_v14 = vadd.f32 %v896_v43, %v517_v8 }
  0xc5   : > { %v555_v9 = vadd.f32 %v896_v43, %v509_v7  ;;  %v566_v18 = vmax.f32 %v558_v14, 0.0 }
  0xc7   : > { %v563_v11 = vmax.f32 %v555_v9, 0.0  ;;  %v489_v12 = vpop.f32.mrf.mxu2 }
  0xc8   : > { %v518_v13 = vpop.f32.mrf.mxu3 }
  0xc9   : > { %v841_v15 = vpack.c.bf16 %v563_v11, %v562_v10  ;;  %v519_v16 = vadd.f32 %v518_v13, %v489_v12 }
  0xcb   : > { %853 = vst [vmem:[%s1041_s8 + $0x8] sm:$0xff] %v841_v15   ;;  %v559_v17 = vadd.f32 %v896_v43, %v519_v16 }
  0xcd   : > { %v567_v19 = vmax.f32 %v559_v17, 0.0 }
  0xcf   : > { %v851_v20 = vpack.c.bf16 %v567_v19, %v566_v18 }
  0xd1   : > { %855 = vst [vmem:[%s1041_s8 + $0x18] sm:$0xff] %v851_v20  }
  0xd2 PF: > { %s13_s14 = sadd.s32 1, %s919_s14   ;;  %s1060_s12 = smov %s915_s13 }
  0xd3   : > { %p10_p5 = scmp.ge.s32.totalorder %s13_s14, 4   ;;  %s1061_s13 = smov %s1063_s15 }
  0xd5   :  { %12 = sbr.rel (!%p10_p5) target bundleno = 2 (0x2), region = 76 }

// kernel: forward.11
= control target key start
LH: loop header
LB: loop body
LE: loop exit
PB: predicated region body
PF: predicated region fallthrough
CT: control target
= control target key end

     0   :  { %s1279_s12 = smov 0   ;;  %s1281_s13 = smov 0   ;;  %s1468_s0 = inlined_call_operand.vmem [shape: bf16[128,512], index: 0, kind: input, shape index: {}]   ;;  %s1469_s1 = inlined_call_operand.vmem [shape: bf16[512,128], index: 1, kind: input, shape index: {}]   ;;  %s1470_s2 = inlined_call_operand.vmem [shape: f32[1,128], index: 2, kind: input, shape index: {}]   ;;  %s1471_s3 = inlined_call_operand.vmem [shape: bf16[128,128], index: 3, kind: output, shape index: {}]  }
   0x1   :  { %s1283_s14 = smov 0  }
   0x2 LB: > { %s32_s15 = sadd.s32 1, %s1253_s13  ;;  %p938_p0 = scmp.ge.s32.totalorder %s1257_s14, 1  ;;  %s1257_s14 = sphi %s1283_s14, %s13_s14   ;;  %s1253_s13 = sphi %s1281_s13, %s1473_s13   ;;  %s1249_s12 = sphi %s1279_s12, %s1472_s12  }
   0x3   : > { %p34_p1 = scmp.ge.s32.totalorder %s32_s15, 2  ;;  %p191_p2 = scmp.lt.s32.totalorder %s1257_s14, 3 }
   0x5   : > { %s1475_s15 = smov (%p34_p1, %s32_s15), 0  ;;  %p192_p3 = pnand %p938_p0, %p191_p2 }
   0x6   : > { %s939_s17 = sshll.u32 (!%p192_p3), %s1249_s12, 3 }
   0x7   : > { %195 = sbr.rel (%p192_p3) target bundleno = 245 (0xf5), region = 32  ;;  %p236_p4 = scmp.lt.s32.totalorder (!%p192_p3), %s939_s17, 15 }
   0xc   : > { %v1162_v0 = vld [vmem:[%s1469_s1 + $0x38] sm:$0xff]  ;;  %v1161_v4 = vld [vmem:[%s1469_s1 + $0x30] sm:$0xff]  ;;  %v1160_v8 = vld [vmem:[%s1469_s1 + $0x28] sm:$0xff]  ;;  %s1477_s17 = smov (!%p236_p4, %s939_s17), 15 }
   0xd   : > { %v1170_v1 = vld [vmem:[%s1469_s1 + $0x78] sm:$0xff]  ;;  %639 = vmatpush.bf16.msra.mxu0 %v1162_v0  ;;  %v1169_v5 = vld [vmem:[%s1469_s1 + $0x70] sm:$0xff]  ;;  %v1168_v9 = vld [vmem:[%s1469_s1 + $0x68] sm:$0xff]  ;;  %s1138_s19 = sshll.u32 %s1477_s17, 4  ;;  %s943_s18 = sshll.u32 %s1477_s17, 2 }
   0xe   : > { %v1178_v2 = vld [vmem:[%s1469_s1 + $0xb8] sm:$0xff]  ;;  %668 = vmatpush.bf16.msra.mxu1 %v1170_v1  ;;  %v1177_v6 = vld [vmem:[%s1469_s1 + $0xb0] sm:$0xff]  ;;  %v1176_v10 = vld [vmem:[%s1469_s1 + $0xa8] sm:$0xff]  ;;  %s1384_s12 = scalar_lea.vmem %s1468_s0, %s1138_s19  ;;  %s1447_s21 = scalar_lea.vmem %s1471_s3, %s943_s18 }
   0xf   : > { %v1186_v3 = vld [vmem:[%s1469_s1 + $0xf8] sm:$0xff]  ;;  %697 = vmatpush.bf16.msra.mxu2 %v1178_v2  ;;  %v1185_v7 = vld [vmem:[%s1469_s1 + $0xf0] sm:$0xff]  ;;  %v1184_v11 = vld [vmem:[%s1469_s1 + $0xe8] sm:$0xff] }
  0x10   : > { %726 = vmatpush.bf16.msra.mxu3 %v1186_v3  ;;  %v1159_v12 = vld [vmem:[%s1469_s1 + $0x20] sm:$0xff]  ;;  %v1158_v16 = vld [vmem:[%s1469_s1 + $0x18] sm:$0xff]  ;;  %v1157_v20 = vld [vmem:[%s1469_s1 + $0x10] sm:$0xff] }
  0x11   : > { %640 = vmatpush.bf16.msra.mxu0 %v1161_v4  ;;  %v1167_v13 = vld [vmem:[%s1469_s1 + $0x60] sm:$0xff]  ;;  %v1166_v17 = vld [vmem:[%s1469_s1 + $0x58] sm:$0xff]  ;;  %v1165_v21 = vld [vmem:[%s1469_s1 + $0x50] sm:$0xff] }
  0x12   : > { %669 = vmatpush.bf16.msra.mxu1 %v1169_v5  ;;  %v1175_v14 = vld [vmem:[%s1469_s1 + $0xa0] sm:$0xff]  ;;  %v1174_v18 = vld [vmem:[%s1469_s1 + $0x98] sm:$0xff]  ;;  %v1173_v22 = vld [vmem:[%s1469_s1 + $0x90] sm:$0xff] }
  0x13   : > { %698 = vmatpush.bf16.msra.mxu2 %v1177_v6  ;;  %v1183_v15 = vld [vmem:[%s1469_s1 + $0xe0] sm:$0xff]  ;;  %v1182_v19 = vld [vmem:[%s1469_s1 + $0xd8] sm:$0xff]  ;;  %v1181_v23 = vld [vmem:[%s1469_s1 + $0xd0] sm:$0xff] }
  0x14   : > { %727 = vmatpush.bf16.msra.mxu3 %v1185_v7  ;;  %v1156_v24 = vld [vmem:[%s1469_s1 + $0x8] sm:$0xff]  ;;  %v1155_v28 = vld [vmem:[%s1469_s1] sm:$0xff]  ;;  %v1141_v33 = vld [vmem:[%s1384_s12 + $0xc] sm:$0xf0] }
  0x15   : > { %641 = vmatpush.bf16.msra.mxu0 %v1160_v8  ;;  %v1164_v25 = vld [vmem:[%s1469_s1 + $0x48] sm:$0xff]  ;;  %v1163_v29 = vld [vmem:[%s1469_s1 + $0x40] sm:$0xff]  ;;  %v948_v35 = vld [vmem:[%s1384_s12 + $0x10] sm:$0xf0] }
  0x16   : > { %670 = vmatpush.bf16.msra.mxu1 %v1168_v9  ;;  %v1172_v26 = vld [vmem:[%s1469_s1 + $0x88] sm:$0xff]  ;;  %v1171_v30 = vld [vmem:[%s1469_s1 + $0x80] sm:$0xff]  ;;  %v1142_v37 = vld [vmem:[%s1384_s12 + $0x14] sm:$0xf0] }
  0x17   : > { %699 = vmatpush.bf16.msra.mxu2 %v1176_v10  ;;  %v1180_v27 = vld [vmem:[%s1469_s1 + $0xc8] sm:$0xff]  ;;  %v1179_v31 = vld [vmem:[%s1469_s1 + $0xc0] sm:$0xff]  ;;  %v956_v39 = vld [vmem:[%s1384_s12 + $0x18] sm:$0xf0] }
  0x18   : > { %728 = vmatpush.bf16.msra.mxu3 %v1184_v11  ;;  %v946_v32 = vld [vmem:[%s1384_s12] sm:$0xf]  ;;  %v1139_v34 = vld [vmem:[%s1384_s12 + $0x4] sm:$0xf]  ;;  %v954_v36 = vld [vmem:[%s1384_s12 + $0x8] sm:$0xf] }
  0x19   : > { %642 = vmatpush.bf16.msra.mxu0 %v1159_v12  ;;  %v1140_v38 = vld [vmem:[%s1384_s12 + $0xc] sm:$0xf]  ;;  %v947_v40 = vor.u32 %v1141_v33, %v946_v32  ;;  %v951_v41 = vor.u32 %v1139_v34, %v948_v35  ;;  %v955_v42 = vor.u32 %v1142_v37, %v954_v36  ;;  %v962_v44 = vld [vmem:[%s1384_s12 + $0x20] sm:$0xf]  ;;  %v1145_v45 = vld [vmem:[%s1384_s12 + $0x2c] sm:$0xf0] }
  0x1a   : > { %671 = vmatpush.bf16.msra.mxu1 %v1167_v13  ;;  %v959_v43 = vor.u32 %v1140_v38, %v956_v39  ;;  %v1143_v46 = vld [vmem:[%s1384_s12 + $0x24] sm:$0xf]  ;;  %v964_v47 = vld [vmem:[%s1384_s12 + $0x30] sm:$0xf0]  ;;  %v970_v48 = vld [vmem:[%s1384_s12 + $0x28] sm:$0xf]  ;;  %v963_v52 = vor.u32 %v1145_v45, %v962_v44 }
  0x1b   : > { %700 = vmatpush.bf16.msra.mxu2 %v1175_v14  ;;  %v1146_v49 = vld [vmem:[%s1384_s12 + $0x34] sm:$0xf0]  ;;  %v1144_v50 = vld [vmem:[%s1384_s12 + $0x2c] sm:$0xf]  ;;  %v972_v51 = vld [vmem:[%s1384_s12 + $0x38] sm:$0xf0]  ;;  %v967_v53 = vor.u32 %v1143_v46, %v964_v47 }
  0x1c   : > { %729 = vmatpush.bf16.msra.mxu3 %v1183_v15  ;;  %v971_v54 = vor.u32 %v1146_v49, %v970_v48  ;;  %v975_v55 = vor.u32 %v1144_v50, %v972_v51  ;;  %v978_v56 = vld [vmem:[%s1384_s12 + $0x40] sm:$0xf]  ;;  %v1149_v57 = vld [vmem:[%s1384_s12 + $0x4c] sm:$0xf0]  ;;  %v1147_v58 = vld [vmem:[%s1384_s12 + $0x44] sm:$0xf] }
  0x1d   : > { %643 = vmatpush.bf16.msra.mxu0 %v1158_v16  ;;  %v980_v59 = vld [vmem:[%s1384_s12 + $0x50] sm:$0xf0]  ;;  %v986_v60 = vld [vmem:[%s1384_s12 + $0x48] sm:$0xf]  ;;  %v1150_v61 = vld [vmem:[%s1384_s12 + $0x54] sm:$0xf0]  ;;  %v979_v0 = vor.u32 %v1149_v57, %v978_v56 }
  0x1e   : > { %672 = vmatpush.bf16.msra.mxu1 %v1166_v17  ;;  %v1148_v62 = vld [vmem:[%s1384_s12 + $0x4c] sm:$0xf]  ;;  %v988_v63 = vld [vmem:[%s1384_s12 + $0x58] sm:$0xf0]  ;;  %v983_v1 = vor.u32 %v1147_v58, %v980_v59  ;;  %v987_v2 = vor.u32 %v1150_v61, %v986_v60  ;;  %v994_v4 = vld [vmem:[%s1384_s12 + $0x60] sm:$0xf] }
  0x1f   : > { %701 = vmatpush.bf16.msra.mxu2 %v1174_v18  ;;  %v991_v3 = vor.u32 %v1148_v62, %v988_v63  ;;  %v1153_v5 = vld [vmem:[%s1384_s12 + $0x6c] sm:$0xf0]  ;;  %v1151_v6 = vld [vmem:[%s1384_s12 + $0x64] sm:$0xf]  ;;  %v996_v7 = vld [vmem:[%s1384_s12 + $0x70] sm:$0xf0] }
  0x20   : > { %730 = vmatpush.bf16.msra.mxu3 %v1182_v19  ;;  %v1002_v8 = vld [vmem:[%s1384_s12 + $0x68] sm:$0xf]  ;;  %v1154_v9 = vld [vmem:[%s1384_s12 + $0x74] sm:$0xf0]  ;;  %v1152_v10 = vld [vmem:[%s1384_s12 + $0x6c] sm:$0xf]  ;;  %v995_v12 = vor.u32 %v1153_v5, %v994_v4  ;;  %v999_v13 = vor.u32 %v1151_v6, %v996_v7 }
  0x21   : > { %644 = vmatpush.bf16.msra.mxu0 %v1157_v20  ;;  %v1004_v11 = vld [vmem:[%s1384_s12 + $0x78] sm:$0xf0]  ;;  %v1003_v14 = vor.u32 %v1154_v9, %v1002_v8 }
  0x22   : > { %673 = vmatpush.bf16.msra.mxu1 %v1165_v21  ;;  %v1007_v15 = vor.u32 %v1152_v10, %v1004_v11 }
  0x23   : > { %702 = vmatpush.bf16.msra.mxu2 %v1173_v22 }
  0x24   : > { %731 = vmatpush.bf16.msra.mxu3 %v1181_v23 }
  0x25   : > { %645 = vmatpush.bf16.msra.mxu0 %v1156_v24 }
  0x26   : > { %674 = vmatpush.bf16.msra.mxu1 %v1164_v25  ;;  %v1439_v25 = vld [vmem:[%s1470_s2] ss:$0 sm:$0xff] }
  0x27   : > { %703 = vmatpush.bf16.msra.mxu2 %v1172_v26 }
  0x28   : > { %732 = vmatpush.bf16.msra.mxu3 %v1180_v27 }
  0x29   : > { %646 = vmatpush.bf16.msra.mxu0 %v1155_v28 }
  0x2a   : > { %675 = vmatpush.bf16.msra.mxu1 %v1163_v29 }
  0x2b   : > { %704 = vmatpush.bf16.msra.mxu2 %v1171_v30 }
  0x2c   : > { %733 = vmatpush.bf16.msra.mxu3 %v1179_v31  ;;  %647 = vmatmul.bf16.vlgmr.msra.gmra.mxu0 %v947_v40 }
  0x2d   : > { %676 = vmatmul.bf16.vlgmr.msra.gmra.mxu1 %v951_v41 }
  0x2e   : > { %705 = vmatmul.bf16.vlgmr.msra.gmra.mxu2 %v955_v42 }
  0x2f   : > { %734 = vmatmul.bf16.vlgmr.msra.gmra.mxu3 %v959_v43 }
  0x3c   : > { %652 = vmatmul.bf16.gmra.mxu0 %v963_v52 }
  0x3d   : > { %681 = vmatmul.bf16.gmra.mxu1 %v967_v53 }
  0x3e   : > { %710 = vmatmul.bf16.gmra.mxu2 %v971_v54 }
  0x3f   : > { %739 = vmatmul.bf16.gmra.mxu3 %v975_v55 }
  0x4c   : > { %657 = vmatmul.bf16.gmra.mxu0 %v979_v0 }
  0x4d   : > { %686 = vmatmul.bf16.gmra.mxu1 %v983_v1 }
  0x4e   : > { %715 = vmatmul.bf16.gmra.mxu2 %v987_v2 }
  0x4f   : > { %744 = vmatmul.bf16.gmra.mxu3 %v991_v3 }
  0x5c   : > { %662 = vmatmul.bf16.gmra.mxu0 %v995_v12 }
  0x5d   : > { %691 = vmatmul.bf16.gmra.mxu1 %v999_v13 }
  0x5e   : > { %720 = vmatmul.bf16.gmra.mxu2 %v1003_v14 }
  0x5f   : > { %749 = vmatmul.bf16.gmra.mxu3 %v1007_v15 }
  0xa9   : > { %v648_v16 = vpop.f32.mrf.mxu0 }
  0xaa   : > { %v677_v17 = vpop.f32.mrf.mxu1 }
  0xab   : > { %v678_v18 = vadd.f32 %v677_v17, %v648_v16 }
  0xb1   : > { %v706_v19 = vpop.f32.mrf.mxu2  ;;  %v650_v21 = vpop.f32.mrf.mxu0 }
  0xb2   : > { %v735_v20 = vpop.f32.mrf.mxu3  ;;  %v679_v22 = vpop.f32.mrf.mxu1  ;;  %v707_v23 = vadd.f32 %v706_v19, %v678_v18 }
  0xb3   : > { %v680_v26 = vadd.f32 %v679_v22, %v650_v21 }
  0xb4   : > { %v736_v24 = vadd.f32 %v735_v20, %v707_v23 }
  0xb6   : > { %v786_v32 = vadd.f32 %v1439_v25, %v736_v24 }
  0xb8   : > { %v794_v35 = vmax.f32 %v786_v32, 0.0 }
  0xb9   : > { %v708_v27 = vpop.f32.mrf.mxu2  ;;  %v653_v30 = vpop.f32.mrf.mxu0 }
  0xba   : > { %v737_v28 = vpop.f32.mrf.mxu3  ;;  %v709_v29 = vadd.f32 %v708_v27, %v680_v26  ;;  %v682_v31 = vpop.f32.mrf.mxu1 }
  0xbb   : > { %v683_v37 = vadd.f32 %v682_v31, %v653_v30 }
  0xbc   : > { %v738_v33 = vadd.f32 %v737_v28, %v709_v29 }
  0xbe   : > { %v787_v34 = vadd.f32 %v1439_v25, %v738_v33 }
  0xc0   : > { %v795_v36 = vmax.f32 %v787_v34, 0.0 }
  0xc1   : > { %v711_v38 = vpop.f32.mrf.mxu2  ;;  %v655_v41 = vpop.f32.mrf.mxu0 }
  0xc2   : > { %v740_v39 = vpop.f32.mrf.mxu3  ;;  %v1190_v40 = vpack.c.bf16 %v795_v36, %v794_v35  ;;  %v684_v42 = vpop.f32.mrf.mxu1  ;;  %v712_v43 = vadd.f32 %v711_v38, %v683_v37 }
  0xc3   : > { %v685_v45 = vadd.f32 %v684_v42, %v655_v41 }
  0xc4   : > { %1191 = vst [vmem:[%s1447_s21] sm:$0xff] %v1190_v40   ;;  %v741_v44 = vadd.f32 %v740_v39, %v712_v43 }
  0xc6   : > { %v788_v51 = vadd.f32 %v1439_v25, %v741_v44 }
  0xc8   : > { %v796_v54 = vmax.f32 %v788_v51, 0.0 }
  0xc9   : > { %v713_v46 = vpop.f32.mrf.mxu2  ;;  %v658_v49 = vpop.f32.mrf.mxu0 }
  0xca   : > { %v742_v47 = vpop.f32.mrf.mxu3  ;;  %v714_v48 = vadd.f32 %v713_v46, %v685_v45  ;;  %v687_v50 = vpop.f32.mrf.mxu1 }
  0xcb   : > { %v688_v56 = vadd.f32 %v687_v50, %v658_v49 }
  0xcc   : > { %v743_v52 = vadd.f32 %v742_v47, %v714_v48 }
  0xce   : > { %v789_v53 = vadd.f32 %v1439_v25, %v743_v52 }
  0xd0   : > { %v797_v55 = vmax.f32 %v789_v53, 0.0 }
  0xd1   : > { %v716_v57 = vpop.f32.mrf.mxu2  ;;  %v660_v60 = vpop.f32.mrf.mxu0 }
  0xd2   : > { %v745_v58 = vpop.f32.mrf.mxu3  ;;  %v1195_v59 = vpack.c.bf16 %v797_v55, %v796_v54  ;;  %v689_v61 = vpop.f32.mrf.mxu1  ;;  %v717_v62 = vadd.f32 %v716_v57, %v688_v56 }
  0xd3   : > { %v690_v0 = vadd.f32 %v689_v61, %v660_v60 }
  0xd4   : > { %1207 = vst [vmem:[%s1447_s21 + $0x8] sm:$0xff] %v1195_v59   ;;  %v746_v63 = vadd.f32 %v745_v58, %v717_v62 }
  0xd6   : > { %v790_v6 = vadd.f32 %v1439_v25, %v746_v63 }
  0xd8   : > { %v798_v9 = vmax.f32 %v790_v6, 0.0 }
  0xd9   : > { %v718_v1 = vpop.f32.mrf.mxu2  ;;  %v663_v4 = vpop.f32.mrf.mxu0 }
  0xda   : > { %v747_v2 = vpop.f32.mrf.mxu3  ;;  %v719_v3 = vadd.f32 %v718_v1, %v690_v0  ;;  %v692_v5 = vpop.f32.mrf.mxu1 }
  0xdb   : > { %v693_v11 = vadd.f32 %v692_v5, %v663_v4 }
  0xdc   : > { %v748_v7 = vadd.f32 %v747_v2, %v719_v3 }
  0xde   : > { %v791_v8 = vadd.f32 %v1439_v25, %v748_v7 }
  0xe0   : > { %v799_v10 = vmax.f32 %v791_v8, 0.0 }
  0xe1   : > { %v721_v12 = vpop.f32.mrf.mxu2  ;;  %v665_v16 = vpop.f32.mrf.mxu0 }
  0xe2   : > { %v750_v13 = vpop.f32.mrf.mxu3  ;;  %v1200_v14 = vpack.c.bf16 %v799_v10, %v798_v9  ;;  %v722_v15 = vadd.f32 %v721_v12, %v693_v11  ;;  %v694_v17 = vpop.f32.mrf.mxu1 }
  0xe3   : > { %v695_v19 = vadd.f32 %v694_v17, %v665_v16 }
  0xe4   : > { %1208 = vst [vmem:[%s1447_s21 + $0x10] sm:$0xff] %v1200_v14   ;;  %v751_v18 = vadd.f32 %v750_v13, %v722_v15 }
  0xe6   : > { %v792_v23 = vadd.f32 %v1439_v25, %v751_v18 }
  0xe8   : > { %v800_v27 = vmax.f32 %v792_v23, 0.0 }
  0xe9   : > { %v723_v20 = vpop.f32.mrf.mxu2 }
  0xea   : > { %v724_v21 = vadd.f32 %v723_v20, %v695_v19  ;;  %v752_v22 = vpop.f32.mrf.mxu3 }
  0xec   : > { %v753_v24 = vadd.f32 %v752_v22, %v724_v21 }
  0xee   : > { %v793_v26 = vadd.f32 %v1439_v25, %v753_v24 }
  0xf0   : > { %v801_v28 = vmax.f32 %v793_v26, 0.0 }
  0xf2   : > { %v1205_v29 = vpack.c.bf16 %v801_v28, %v800_v27 }
  0xf4   : > { %1209 = vst [vmem:[%s1447_s21 + $0x18] sm:$0xff] %v1205_v29  }
  0xf5 PF: > { %s13_s14 = sadd.s32 1, %s1257_s14   ;;  %s1472_s12 = smov %s1253_s13 }
  0xf6   : > { %p10_p5 = scmp.ge.s32.totalorder %s13_s14, 4   ;;  %s1473_s13 = smov %s1475_s15 }
  0xf8   :  { %12 = sbr.rel (!%p10_p5) target bundleno = 2 (0x2), region = 76 }

// kernel: forward.13
= control target key start
LH: loop header
LB: loop body
LE: loop exit
PB: predicated region body
PF: predicated region fallthrough
CT: control target
= control target key end

     0   :  { %s1987_s12 = smov 0   ;;  %s1989_s13 = smov 0   ;;  %s2334_s0 = inlined_call_operand.vmem [shape: bf16[128,1024], index: 0, kind: input, shape index: {}]   ;;  %s2335_s1 = inlined_call_operand.vmem [shape: bf16[1024,128], index: 1, kind: input, shape index: {}]   ;;  %s2336_s2 = inlined_call_operand.vmem [shape: f32[1,128], index: 2, kind: input, shape index: {}]   ;;  %s2337_s3 = inlined_call_operand.vmem [shape: bf16[128,128], index: 3, kind: output, shape index: {}]  }
   0x1   :  { %s1991_s14 = smov 0  }
   0x2 LB: > { %s32_s15 = sadd.s32 1, %s1961_s13  ;;  %p1406_p0 = scmp.ge.s32.totalorder %s1965_s14, 1  ;;  %s1965_s14 = sphi %s1991_s14, %s13_s14   ;;  %s1961_s13 = sphi %s1989_s13, %s2339_s13   ;;  %s1957_s12 = sphi %s1987_s12, %s2338_s12  }
   0x3   : > { %p34_p1 = scmp.ge.s32.totalorder %s32_s15, 2  ;;  %p191_p2 = scmp.lt.s32.totalorder %s1965_s14, 3 }
   0x5   : > { %s2341_s15 = smov (%p34_p1, %s32_s15), 0  ;;  %p192_p3 = pnand %p1406_p0, %p191_p2 }
   0x6   : > { %s1407_s17 = sshll.u32 (!%p192_p3), %s1957_s12, 3 }
   0x7   : > { %195 = sbr.rel (%p192_p3) target bundleno = 309 (0x135), region = 32  ;;  %p236_p4 = scmp.lt.s32.totalorder (!%p192_p3), %s1407_s17, 15 }
   0xc   : > { %v1838_v0 = vld [vmem:[%s2335_s1 + $0x38] sm:$0xff]  ;;  %v1837_v4 = vld [vmem:[%s2335_s1 + $0x30] sm:$0xff]  ;;  %v1836_v8 = vld [vmem:[%s2335_s1 + $0x28] sm:$0xff]  ;;  %s2343_s17 = smov (!%p236_p4, %s1407_s17), 15 }
   0xd   : > { %v1846_v1 = vld [vmem:[%s2335_s1 + $0x78] sm:$0xff]  ;;  %991 = vmatpush.bf16.msra.mxu0 %v1838_v0  ;;  %v1845_v5 = vld [vmem:[%s2335_s1 + $0x70] sm:$0xff]  ;;  %v1844_v9 = vld [vmem:[%s2335_s1 + $0x68] sm:$0xff]  ;;  %s1798_s19 = sshll.u32 %s2343_s17, 5  ;;  %s1411_s10 = sshll.u32 %s2343_s17, 2 }
   0xe   : > { %v1854_v2 = vld [vmem:[%s2335_s1 + $0xb8] sm:$0xff]  ;;  %1020 = vmatpush.bf16.msra.mxu1 %v1846_v1  ;;  %v1853_v6 = vld [vmem:[%s2335_s1 + $0xb0] sm:$0xff]  ;;  %v1852_v10 = vld [vmem:[%s2335_s1 + $0xa8] sm:$0xff]  ;;  %s2092_s12 = scalar_lea.vmem %s2334_s0, %s1798_s19  ;;  %s2303_s18 = scalar_lea.vmem %s2337_s3, %s1411_s10 }
   0xf   : > { %v1862_v3 = vld [vmem:[%s2335_s1 + $0xf8] sm:$0xff]  ;;  %1049 = vmatpush.bf16.msra.mxu2 %v1854_v2  ;;  %v1861_v7 = vld [vmem:[%s2335_s1 + $0xf0] sm:$0xff]  ;;  %v1860_v11 = vld [vmem:[%s2335_s1 + $0xe8] sm:$0xff] }
  0x10   : > { %1078 = vmatpush.bf16.msra.mxu3 %v1862_v3  ;;  %v1835_v12 = vld [vmem:[%s2335_s1 + $0x20] sm:$0xff]  ;;  %v1834_v16 = vld [vmem:[%s2335_s1 + $0x18] sm:$0xff]  ;;  %v1833_v20 = vld [vmem:[%s2335_s1 + $0x10] sm:$0xff] }
  0x11   : > { %992 = vmatpush.bf16.msra.mxu0 %v1837_v4  ;;  %v1843_v13 = vld [vmem:[%s2335_s1 + $0x60] sm:$0xff]  ;;  %v1842_v17 = vld [vmem:[%s2335_s1 + $0x58] sm:$0xff]  ;;  %v1841_v21 = vld [vmem:[%s2335_s1 + $0x50] sm:$0xff] }
  0x12   : > { %1021 = vmatpush.bf16.msra.mxu1 %v1845_v5  ;;  %v1851_v14 = vld [vmem:[%s2335_s1 + $0xa0] sm:$0xff]  ;;  %v1850_v18 = vld [vmem:[%s2335_s1 + $0x98] sm:$0xff]  ;;  %v1849_v22 = vld [vmem:[%s2335_s1 + $0x90] sm:$0xff] }
  0x13   : > { %1050 = vmatpush.bf16.msra.mxu2 %v1853_v6  ;;  %v1859_v15 = vld [vmem:[%s2335_s1 + $0xe0] sm:$0xff]  ;;  %v1858_v19 = vld [vmem:[%s2335_s1 + $0xd8] sm:$0xff]  ;;  %v1857_v23 = vld [vmem:[%s2335_s1 + $0xd0] sm:$0xff] }
  0x14   : > { %1079 = vmatpush.bf16.msra.mxu3 %v1861_v7  ;;  %v1832_v24 = vld [vmem:[%s2335_s1 + $0x8] sm:$0xff]  ;;  %v1831_v28 = vld [vmem:[%s2335_s1] sm:$0xff]  ;;  %v1886_v40 = vld [vmem:[%s2335_s1 + $0x1b8] sm:$0xff] }
  0x15   : > { %993 = vmatpush.bf16.msra.mxu0 %v1836_v8  ;;  %v1840_v25 = vld [vmem:[%s2335_s1 + $0x48] sm:$0xff]  ;;  %v1839_v29 = vld [vmem:[%s2335_s1 + $0x40] sm:$0xff]  ;;  %v1870_v41 = vld [vmem:[%s2335_s1 + $0x138] sm:$0xff] }
  0x16   : > { %1022 = vmatpush.bf16.msra.mxu1 %v1844_v9  ;;  %v1848_v26 = vld [vmem:[%s2335_s1 + $0x88] sm:$0xff]  ;;  %v1847_v30 = vld [vmem:[%s2335_s1 + $0x80] sm:$0xff]  ;;  %v1894_v46 = vld [vmem:[%s2335_s1 + $0x1f8] sm:$0xff] }
  0x17   : > { %1051 = vmatpush.bf16.msra.mxu2 %v1852_v10  ;;  %v1856_v27 = vld [vmem:[%s2335_s1 + $0xc8] sm:$0xff]  ;;  %v1855_v31 = vld [vmem:[%s2335_s1 + $0xc0] sm:$0xff]  ;;  %v1878_v47 = vld [vmem:[%s2335_s1 + $0x178] sm:$0xff] }
  0x18   : > { %1080 = vmatpush.bf16.msra.mxu3 %v1860_v11  ;;  %v1414_v32 = vld [vmem:[%s2092_s12] sm:$0xf]  ;;  %v1799_v34 = vld [vmem:[%s2092_s12 + $0x4] sm:$0xf]  ;;  %v1422_v36 = vld [vmem:[%s2092_s12 + $0x8] sm:$0xf] }
  0x19   : > { %994 = vmatpush.bf16.msra.mxu0 %v1835_v12  ;;  %v1803_v33 = vld [vmem:[%s2092_s12 + $0x1c] sm:$0xf0]  ;;  %v1416_v35 = vld [vmem:[%s2092_s12 + $0x20] sm:$0xf0]  ;;  %v1804_v37 = vld [vmem:[%s2092_s12 + $0x24] sm:$0xf0] }
  0x1a   : > { %1023 = vmatpush.bf16.msra.mxu1 %v1843_v13  ;;  %v1800_v38 = vld [vmem:[%s2092_s12 + $0xc] sm:$0xf]  ;;  %v1415_v42 = vor.u32 %v1803_v33, %v1414_v32  ;;  %v1419_v43 = vor.u32 %v1799_v34, %v1416_v35  ;;  %v1423_v44 = vor.u32 %v1804_v37, %v1422_v36  ;;  %v1885_v48 = vld [vmem:[%s2335_s1 + $0x1b0] sm:$0xff]  ;;  %v1446_v56 = vld [vmem:[%s2092_s12 + $0x40] sm:$0xf] }
  0x1b   : > { %1052 = vmatpush.bf16.msra.mxu2 %v1851_v14  ;;  %v1424_v39 = vld [vmem:[%s2092_s12 + $0x28] sm:$0xf0]  ;;  %v1869_v49 = vld [vmem:[%s2335_s1 + $0x130] sm:$0xff]  ;;  %v1883_v57 = vld [vmem:[%s2335_s1 + $0x1a0] sm:$0xff] }
  0x1c   : > { %1081 = vmatpush.bf16.msra.mxu3 %v1859_v15  ;;  %v1427_v45 = vor.u32 %v1800_v38, %v1424_v39  ;;  %v1893_v50 = vld [vmem:[%s2335_s1 + $0x1f0] sm:$0xff]  ;;  %v1884_v52 = vld [vmem:[%s2335_s1 + $0x1a8] sm:$0xff]  ;;  %v1867_v58 = vld [vmem:[%s2335_s1 + $0x120] sm:$0xff] }
  0x1d   : > { %995 = vmatpush.bf16.msra.mxu0 %v1834_v16  ;;  %v1877_v51 = vld [vmem:[%s2335_s1 + $0x170] sm:$0xff]  ;;  %v1868_v53 = vld [vmem:[%s2335_s1 + $0x128] sm:$0xff]  ;;  %v1811_v59 = vld [vmem:[%s2092_s12 + $0x5c] sm:$0xf0] }
  0x1e   : > { %1024 = vmatpush.bf16.msra.mxu1 %v1842_v17  ;;  %v1892_v54 = vld [vmem:[%s2335_s1 + $0x1e8] sm:$0xff]  ;;  %v1807_v60 = vld [vmem:[%s2092_s12 + $0x44] sm:$0xf]  ;;  %v1882_v4 = vld [vmem:[%s2335_s1 + $0x198] sm:$0xff]  ;;  %v1447_v6 = vor.u32 %v1811_v59, %v1446_v56 }
  0x1f   : > { %1053 = vmatpush.bf16.msra.mxu2 %v1850_v18  ;;  %v1876_v55 = vld [vmem:[%s2335_s1 + $0x168] sm:$0xff]  ;;  %v1448_v61 = vld [vmem:[%s2092_s12 + $0x60] sm:$0xf0]  ;;  %v1866_v5 = vld [vmem:[%s2335_s1 + $0x118] sm:$0xff] }
  0x20   : > { %1082 = vmatpush.bf16.msra.mxu3 %v1858_v19  ;;  %v1454_v62 = vld [vmem:[%s2092_s12 + $0x48] sm:$0xf]  ;;  %v1808_v0 = vld [vmem:[%s2092_s12 + $0x4c] sm:$0xf]  ;;  %v1891_v2 = vld [vmem:[%s2335_s1 + $0x1e0] sm:$0xff]  ;;  %v1451_v7 = vor.u32 %v1807_v60, %v1448_v61 }
  0x21   : > { %996 = vmatpush.bf16.msra.mxu0 %v1833_v20  ;;  %v1812_v63 = vld [vmem:[%s2092_s12 + $0x64] sm:$0xf0]  ;;  %v1456_v1 = vld [vmem:[%s2092_s12 + $0x68] sm:$0xf0]  ;;  %v1875_v3 = vld [vmem:[%s2335_s1 + $0x160] sm:$0xff] }
  0x22   : > { %1025 = vmatpush.bf16.msra.mxu1 %v1841_v21  ;;  %v1455_v8 = vor.u32 %v1812_v63, %v1454_v62  ;;  %v1459_v9 = vor.u32 %v1808_v0, %v1456_v1  ;;  %v1890_v10 = vld [vmem:[%s2335_s1 + $0x1d8] sm:$0xff]  ;;  %v1881_v12 = vld [vmem:[%s2335_s1 + $0x190] sm:$0xff]  ;;  %v1880_v16 = vld [vmem:[%s2335_s1 + $0x188] sm:$0xff] }
  0x23   : > { %1054 = vmatpush.bf16.msra.mxu2 %v1849_v22  ;;  %v1874_v11 = vld [vmem:[%s2335_s1 + $0x158] sm:$0xff]  ;;  %v1865_v13 = vld [vmem:[%s2335_s1 + $0x110] sm:$0xff]  ;;  %v1864_v17 = vld [vmem:[%s2335_s1 + $0x108] sm:$0xff] }
  0x24   : > { %1083 = vmatpush.bf16.msra.mxu3 %v1857_v23  ;;  %v1889_v14 = vld [vmem:[%s2335_s1 + $0x1d0] sm:$0xff]  ;;  %v1888_v18 = vld [vmem:[%s2335_s1 + $0x1c8] sm:$0xff]  ;;  %v1478_v20 = vld [vmem:[%s2092_s12 + $0x80] sm:$0xf] }
  0x25   : > { %997 = vmatpush.bf16.msra.mxu0 %v1832_v24  ;;  %v1873_v15 = vld [vmem:[%s2335_s1 + $0x150] sm:$0xff]  ;;  %v1872_v19 = vld [vmem:[%s2335_s1 + $0x148] sm:$0xff]  ;;  %v1879_v21 = vld [vmem:[%s2335_s1 + $0x180] sm:$0xff] }
  0x26   : > { %1026 = vmatpush.bf16.msra.mxu1 %v1840_v25  ;;  %v1863_v22 = vld [vmem:[%s2335_s1 + $0x100] sm:$0xff]  ;;  %v1462_v60 = vld [vmem:[%s2092_s12 + $0x50] sm:$0xf]  ;;  %v1809_v62 = vld [vmem:[%s2092_s12 + $0x54] sm:$0xf] }
  0x27   : > { %1055 = vmatpush.bf16.msra.mxu2 %v1848_v26  ;;  %v1819_v23 = vld [vmem:[%s2092_s12 + $0x9c] sm:$0xf0]  ;;  %v1815_v24 = vld [vmem:[%s2092_s12 + $0x84] sm:$0xf]  ;;  %v1486_v26 = vld [vmem:[%s2092_s12 + $0x88] sm:$0xf] }
  0x28   : > { %1084 = vmatpush.bf16.msra.mxu3 %v1856_v27  ;;  %v1480_v25 = vld [vmem:[%s2092_s12 + $0xa0] sm:$0xf0]  ;;  %v1820_v27 = vld [vmem:[%s2092_s12 + $0xa4] sm:$0xf0]  ;;  %v1479_v32 = vor.u32 %v1819_v23, %v1478_v20  ;;  %v1510_v36 = vld [vmem:[%s2092_s12 + $0xc0] sm:$0xf] }
  0x29   : > { %998 = vmatpush.bf16.msra.mxu0 %v1831_v28  ;;  %v1816_v28 = vld [vmem:[%s2092_s12 + $0x8c] sm:$0xf]  ;;  %v1483_v33 = vor.u32 %v1815_v24, %v1480_v25  ;;  %v1487_v34 = vor.u32 %v1820_v27, %v1486_v26  ;;  %v1827_v37 = vld [vmem:[%s2092_s12 + $0xdc] sm:$0xf0]  ;;  %v1823_v38 = vld [vmem:[%s2092_s12 + $0xc4] sm:$0xf] }
  0x2a   : > { %1027 = vmatpush.bf16.msra.mxu1 %v1839_v29  ;;  %v1488_v29 = vld [vmem:[%s2092_s12 + $0xa8] sm:$0xf0]  ;;  %v1512_v39 = vld [vmem:[%s2092_s12 + $0xe0] sm:$0xf0]  ;;  %v1813_v61 = vld [vmem:[%s2092_s12 + $0x6c] sm:$0xf0] }
  0x2b   : > { %1056 = vmatpush.bf16.msra.mxu2 %v1847_v30  ;;  %v1887_v30 = vld [vmem:[%s2335_s1 + $0x1c0] sm:$0xff]  ;;  %v1491_v35 = vor.u32 %v1816_v28, %v1488_v29  ;;  %v1464_v63 = vld [vmem:[%s2092_s12 + $0x70] sm:$0xf0]  ;;  %v1470_v0 = vld [vmem:[%s2092_s12 + $0x58] sm:$0xf] }
  0x2c   : > { %1085 = vmatpush.bf16.msra.mxu3 %v1855_v31  ;;  %999 = vmatmul.bf16.vlgmr.msra.gmra.mxu0 %v1415_v42  ;;  %v1871_v31 = vld [vmem:[%s2335_s1 + $0x140] sm:$0xff]  ;;  %v1824_v42 = vld [vmem:[%s2092_s12 + $0xcc] sm:$0xf]  ;;  %v1814_v1 = vld [vmem:[%s2092_s12 + $0x74] sm:$0xf0] }
  0x2d   : > { %1107 = vmatpush.bf16.msrb.mxu0 %v1870_v41  ;;  %1028 = vmatmul.bf16.vlgmr.msra.gmra.mxu1 %v1419_v43  ;;  %v1828_v41 = vld [vmem:[%s2092_s12 + $0xe4] sm:$0xf0]  ;;  %v1520_v43 = vld [vmem:[%s2092_s12 + $0xe8] sm:$0xf0]  ;;  %v1526_v20 = vld [vmem:[%s2092_s12 + $0xd0] sm:$0xf] }
  0x2e   : > { %1057 = vmatmul.bf16.vlgmr.msra.gmra.mxu2 %v1423_v44  ;;  %1136 = vmatpush.bf16.msrb.mxu1 %v1878_v47  ;;  %v1511_v44 = vor.u32 %v1827_v37, %v1510_v36  ;;  %v1523_v47 = vor.u32 %v1824_v42, %v1520_v43  ;;  %v1528_v23 = vld [vmem:[%s2092_s12 + $0xf0] sm:$0xf0]  ;;  %v1534_v24 = vld [vmem:[%s2092_s12 + $0xd8] sm:$0xf]  ;;  %v1826_v26 = vld [vmem:[%s2092_s12 + $0xdc] sm:$0xf] }
  0x2f   : > { %1165 = vmatpush.bf16.msrb.mxu2 %v1886_v40  ;;  %1086 = vmatmul.bf16.vlgmr.msra.gmra.mxu3 %v1427_v45  ;;  %v1518_v40 = vld [vmem:[%s2092_s12 + $0xc8] sm:$0xf]  ;;  %v1515_v45 = vor.u32 %v1823_v38, %v1512_v39  ;;  %v1830_v25 = vld [vmem:[%s2092_s12 + $0xf4] sm:$0xf0]  ;;  %v1536_v27 = vld [vmem:[%s2092_s12 + $0xf8] sm:$0xf0] }
  0x30   : > { %1194 = vmatpush.bf16.msrb.mxu3 %v1894_v46  ;;  %v1519_v46 = vor.u32 %v1828_v41, %v1518_v40 }
  0x31   : > { %1108 = vmatpush.bf16.msrb.mxu0 %v1869_v49  ;;  %v1805_v49 = vld [vmem:[%s2092_s12 + $0x2c] sm:$0xf0] }
  0x32   : > { %1137 = vmatpush.bf16.msrb.mxu1 %v1877_v51  ;;  %v1432_v51 = vld [vmem:[%s2092_s12 + $0x30] sm:$0xf0] }
  0x33   : > { %1166 = vmatpush.bf16.msrb.mxu2 %v1885_v48  ;;  %v1430_v48 = vld [vmem:[%s2092_s12 + $0x10] sm:$0xf] }
  0x34   : > { %1195 = vmatpush.bf16.msrb.mxu3 %v1893_v50  ;;  %v1801_v50 = vld [vmem:[%s2092_s12 + $0x14] sm:$0xf]  ;;  %v1431_v56 = vor.u32 %v1805_v49, %v1430_v48 }
  0x35   : > { %1109 = vmatpush.bf16.msrb.mxu0 %v1868_v53  ;;  %v1806_v53 = vld [vmem:[%s2092_s12 + $0x34] sm:$0xf0] }
  0x36   : > { %1138 = vmatpush.bf16.msrb.mxu1 %v1876_v55  ;;  %v1440_v55 = vld [vmem:[%s2092_s12 + $0x38] sm:$0xf0] }
  0x37   : > { %1167 = vmatpush.bf16.msrb.mxu2 %v1884_v52  ;;  %v1438_v52 = vld [vmem:[%s2092_s12 + $0x18] sm:$0xf] }
  0x38   : > { %1196 = vmatpush.bf16.msrb.mxu3 %v1892_v54  ;;  %v1802_v54 = vld [vmem:[%s2092_s12 + $0x1c] sm:$0xf] }
  0x39   : > { %1110 = vmatpush.bf16.msrb.mxu0 %v1867_v58  ;;  %v1439_v58 = vor.u32 %v1806_v53, %v1438_v52  ;;  %v1443_v59 = vor.u32 %v1802_v54, %v1440_v55 }
  0x3a   : > { %1139 = vmatpush.bf16.msrb.mxu1 %v1875_v3  ;;  %v1472_v3 = vld [vmem:[%s2092_s12 + $0x78] sm:$0xf0] }
  0x3b   : > { %1168 = vmatpush.bf16.msrb.mxu2 %v1883_v57  ;;  %v1435_v57 = vor.u32 %v1801_v50, %v1432_v51 }
  0x3c   : > { %1197 = vmatpush.bf16.msrb.mxu3 %v1891_v2  ;;  %1004 = vmatmul.bf16.gmra.mxu0 %v1447_v6  ;;  %v1810_v2 = vld [vmem:[%s2092_s12 + $0x5c] sm:$0xf]  ;;  %v1471_v6 = vor.u32 %v1814_v1, %v1470_v0 }
  0x3d   : > { %1111 = vmatpush.bf16.msrb.mxu0 %v1866_v5  ;;  %1033 = vmatmul.bf16.gmra.mxu1 %v1451_v7  ;;  %v1467_v5 = vor.u32 %v1809_v62, %v1464_v63  ;;  %v1475_v7 = vor.u32 %v1810_v2, %v1472_v3 }
  0x3e   : > { %1062 = vmatmul.bf16.gmra.mxu2 %v1455_v8  ;;  %1140 = vmatpush.bf16.msrb.mxu1 %v1874_v11  ;;  %v1494_v8 = vld [vmem:[%s2092_s12 + $0x90] sm:$0xf]  ;;  %v1496_v11 = vld [vmem:[%s2092_s12 + $0xb0] sm:$0xf0] }
  0x3f   : > { %1169 = vmatpush.bf16.msrb.mxu2 %v1882_v4  ;;  %1091 = vmatmul.bf16.gmra.mxu3 %v1459_v9  ;;  %v1463_v4 = vor.u32 %v1813_v61, %v1462_v60  ;;  %v1821_v9 = vld [vmem:[%s2092_s12 + $0xac] sm:$0xf0] }
  0x40   : > { %1198 = vmatpush.bf16.msrb.mxu3 %v1890_v10  ;;  %v1817_v10 = vld [vmem:[%s2092_s12 + $0x94] sm:$0xf] }
  0x41   : > { %1112 = vmatpush.bf16.msrb.mxu0 %v1865_v13  ;;  %v1822_v13 = vld [vmem:[%s2092_s12 + $0xb4] sm:$0xf0] }
  0x42   : > { %1141 = vmatpush.bf16.msrb.mxu1 %v1873_v15  ;;  %v1504_v15 = vld [vmem:[%s2092_s12 + $0xb8] sm:$0xf0] }
  0x43   : > { %1170 = vmatpush.bf16.msrb.mxu2 %v1881_v12  ;;  %v1502_v12 = vld [vmem:[%s2092_s12 + $0x98] sm:$0xf] }
  0x44   : > { %1199 = vmatpush.bf16.msrb.mxu3 %v1889_v14  ;;  %v1818_v14 = vld [vmem:[%s2092_s12 + $0x9c] sm:$0xf] }
  0x45   : > { %1113 = vmatpush.bf16.msrb.mxu0 %v1864_v17  ;;  %v1499_v17 = vor.u32 %v1817_v10, %v1496_v11 }
  0x46   : > { %1142 = vmatpush.bf16.msrb.mxu1 %v1872_v19  ;;  %v1507_v19 = vor.u32 %v1818_v14, %v1504_v15 }
  0x47   : > { %1171 = vmatpush.bf16.msrb.mxu2 %v1880_v16  ;;  %v1495_v16 = vor.u32 %v1821_v9, %v1494_v8 }
  0x48   : > { %1200 = vmatpush.bf16.msrb.mxu3 %v1888_v18  ;;  %v1503_v18 = vor.u32 %v1822_v13, %v1502_v12 }
  0x49   : > { %1114 = vmatpush.bf16.msrb.mxu0 %v1863_v22  ;;  %v1825_v22 = vld [vmem:[%s2092_s12 + $0xd4] sm:$0xf] }
  0x4a   : > { %1143 = vmatpush.bf16.msrb.mxu1 %v1871_v31  ;;  %v1531_v29 = vor.u32 %v1825_v22, %v1528_v23  ;;  %v1539_v31 = vor.u32 %v1826_v26, %v1536_v27  ;;  %v2295_v26 = vld [vmem:[%s2336_s2] ss:$0 sm:$0xff] }
  0x4b   : > { %1172 = vmatpush.bf16.msrb.mxu2 %v1879_v21  ;;  %v1829_v21 = vld [vmem:[%s2092_s12 + $0xec] sm:$0xf0] }
  0x4c   : > { %1201 = vmatpush.bf16.msrb.mxu3 %v1887_v30  ;;  %1009 = vmatmul.bf16.gmra.mxu0 %v1479_v32  ;;  %v1527_v28 = vor.u32 %v1829_v21, %v1526_v20  ;;  %v1535_v30 = vor.u32 %v1830_v25, %v1534_v24 }
  0x4d   : > { %1038 = vmatmul.bf16.gmra.mxu1 %v1483_v33 }
  0x4e   : > { %1067 = vmatmul.bf16.gmra.mxu2 %v1487_v34 }
  0x4f   : > { %1096 = vmatmul.bf16.gmra.mxu3 %v1491_v35 }
  0x5c   : > { %1014 = vmatmul.bf16.gmra.mxu0 %v1511_v44 }
  0x5d   : > { %1043 = vmatmul.bf16.gmra.mxu1 %v1515_v45 }
  0x5e   : > { %1072 = vmatmul.bf16.gmra.mxu2 %v1519_v46 }
  0x5f   : > { %1101 = vmatmul.bf16.gmra.mxu3 %v1523_v47 }
  0x6c   : > { %1115 = vmatmul.bf16.vlgmr.msrb.gmra.mxu0 %v1431_v56 }
  0x6d   : > { %1144 = vmatmul.bf16.vlgmr.msrb.gmra.mxu1 %v1435_v57 }
  0x6e   : > { %1173 = vmatmul.bf16.vlgmr.msrb.gmra.mxu2 %v1439_v58 }
  0x6f   : > { %1202 = vmatmul.bf16.vlgmr.msrb.gmra.mxu3 %v1443_v59 }
  0x7c   : > { %1120 = vmatmul.bf16.gmra.mxu0 %v1463_v4 }
  0x7d   : > { %1149 = vmatmul.bf16.gmra.mxu1 %v1467_v5 }
  0x7e   : > { %1178 = vmatmul.bf16.gmra.mxu2 %v1471_v6 }
  0x7f   : > { %1207 = vmatmul.bf16.gmra.mxu3 %v1475_v7 }
  0x8c   : > { %1125 = vmatmul.bf16.gmra.mxu0 %v1495_v16 }
  0x8d   : > { %1154 = vmatmul.bf16.gmra.mxu1 %v1499_v17 }
  0x8e   : > { %1183 = vmatmul.bf16.gmra.mxu2 %v1503_v18 }
  0x8f   : > { %1212 = vmatmul.bf16.gmra.mxu3 %v1507_v19 }
  0x9c   : > { %1130 = vmatmul.bf16.gmra.mxu0 %v1527_v28 }
  0x9d   : > { %1159 = vmatmul.bf16.gmra.mxu1 %v1531_v29 }
  0x9e   : > { %1188 = vmatmul.bf16.gmra.mxu2 %v1535_v30 }
  0x9f   : > { %1217 = vmatmul.bf16.gmra.mxu3 %v1539_v31 }
  0xa9   : > { %v1000_v32 = vpop.f32.mrf.mxu0 }
  0xaa   : > { %v1029_v33 = vpop.f32.mrf.mxu1 }
  0xab   : > { %v1030_v34 = vadd.f32 %v1029_v33, %v1000_v32 }
  0xb1   : > { %v1058_v35 = vpop.f32.mrf.mxu2  ;;  %v1002_v38 = vpop.f32.mrf.mxu0 }
  0xb2   : > { %v1087_v36 = vpop.f32.mrf.mxu3  ;;  %v1059_v37 = vadd.f32 %v1058_v35, %v1030_v34  ;;  %v1031_v39 = vpop.f32.mrf.mxu1 }
  0xb3   : > { %v1032_v14 = vadd.f32 %v1031_v39, %v1002_v38 }
  0xb4   : > { %v1088_v40 = vadd.f32 %v1087_v36, %v1059_v37 }
  0xb9   : > { %v1060_v41 = vpop.f32.mrf.mxu2  ;;  %v1005_v43 = vpop.f32.mrf.mxu0 }
  0xba   : > { %v1089_v42 = vpop.f32.mrf.mxu3  ;;  %v1034_v44 = vpop.f32.mrf.mxu1  ;;  %v1061_v15 = vadd.f32 %v1060_v41, %v1032_v14 }
  0xbb   : > { %v1035_v45 = vadd.f32 %v1034_v44, %v1005_v43 }
  0xbc   : > { %v1090_v19 = vadd.f32 %v1089_v42, %v1061_v15 }
  0xc1   : > { %v1063_v46 = vpop.f32.mrf.mxu2  ;;  %v1007_v49 = vpop.f32.mrf.mxu0 }
  0xc2   : > { %v1092_v47 = vpop.f32.mrf.mxu3  ;;  %v1064_v48 = vadd.f32 %v1063_v46, %v1035_v45  ;;  %v1036_v50 = vpop.f32.mrf.mxu1 }
  0xc3   : > { %v1037_v33 = vadd.f32 %v1036_v50, %v1007_v49 }
  0xc4   : > { %v1093_v51 = vadd.f32 %v1092_v47, %v1064_v48 }
  0xc9   : > { %v1065_v52 = vpop.f32.mrf.mxu2  ;;  %v1010_v54 = vpop.f32.mrf.mxu0 }
  0xca   : > { %v1094_v53 = vpop.f32.mrf.mxu3  ;;  %v1039_v55 = vpop.f32.mrf.mxu1  ;;  %v1066_v36 = vadd.f32 %v1065_v52, %v1037_v33 }
  0xcb   : > { %v1040_v56 = vadd.f32 %v1039_v55, %v1010_v54 }
  0xcc   : > { %v1095_v43 = vadd.f32 %v1094_v53, %v1066_v36 }
  0xd1   : > { %v1068_v57 = vpop.f32.mrf.mxu2  ;;  %v2272_v60 = vpop.f32.mrf.mxu0 }
  0xd2   : > { %v1097_v58 = vpop.f32.mrf.mxu3  ;;  %v1069_v59 = vadd.f32 %v1068_v57, %v1040_v56  ;;  %v2274_v61 = vpop.f32.mrf.mxu1 }
  0xd4   : > { %v2276_v62 = vadd.f32 %v1097_v58, %v1069_v59  ;;  %v1042_v58 = vadd.f32 %v2274_v61, %v2272_v60 }
  0xd9   : > { %v2278_v63 = vpop.f32.mrf.mxu2  ;;  %v1015_v1 = vpop.f32.mrf.mxu0 }
  0xda   : > { %v2280_v0 = vpop.f32.mrf.mxu3  ;;  %v1044_v2 = vpop.f32.mrf.mxu1 }
  0xdb   : > { %v1045_v3 = vadd.f32 %v1044_v2, %v1015_v1  ;;  %v1071_v1 = vadd.f32 %v2278_v63, %v1042_v58 }
  0xe1   : > { %v1073_v4 = vpop.f32.mrf.mxu2  ;;  %v2282_v7 = vpop.f32.mrf.mxu0 }
  0xe2   : > { %v1102_v5 = vpop.f32.mrf.mxu3  ;;  %v1074_v6 = vadd.f32 %v1073_v4, %v1045_v3  ;;  %v2284_v8 = vpop.f32.mrf.mxu1 }
  0xe4   : > { %v2286_v9 = vadd.f32 %v1102_v5, %v1074_v6 }
  0xe9   : > { %v2288_v10 = vpop.f32.mrf.mxu2  ;;  %v1116_v12 = vpop.f32.mrf.mxu0 }
  0xea   : > { %v2290_v11 = vpop.f32.mrf.mxu3  ;;  %v1145_v13 = vpop.f32.mrf.mxu1  ;;  %v1117_v16 = vadd.f32 %v1116_v12, %v1088_v40 }
  0xec   : > { %v1146_v20 = vadd.f32 %v1145_v13, %v1117_v16  ;;  %v1100_v13 = vadd.f32 %v2280_v0, %v1071_v1 }
  0xf1   : > { %v1174_v17 = vpop.f32.mrf.mxu2  ;;  %v1118_v21 = vpop.f32.mrf.mxu0 }
  0xf2   : > { %v1203_v18 = vpop.f32.mrf.mxu3  ;;  %v1147_v22 = vpop.f32.mrf.mxu1  ;;  %v1175_v23 = vadd.f32 %v1174_v17, %v1146_v20  ;;  %v1119_v24 = vadd.f32 %v1118_v21, %v1090_v19 }
  0xf4   : > { %v1204_v25 = vadd.f32 %v1203_v18, %v1175_v23  ;;  %v1148_v27 = vadd.f32 %v1147_v22, %v1119_v24 }
  0xf6   : > { %v1254_v34 = vadd.f32 %v2295_v26, %v1204_v25 }
  0xf8   : > { %v1262_v39 = vmax.f32 %v1254_v34, 0.0 }
  0xf9   : > { %v1176_v28 = vpop.f32.mrf.mxu2  ;;  %v1121_v31 = vpop.f32.mrf.mxu0 }
  0xfa   : > { %v1205_v29 = vpop.f32.mrf.mxu3  ;;  %v1177_v30 = vadd.f32 %v1176_v28, %v1148_v27  ;;  %v1150_v32 = vpop.f32.mrf.mxu1  ;;  %v1122_v38 = vadd.f32 %v1121_v31, %v1093_v51 }
  0xfc   : > { %v1206_v35 = vadd.f32 %v1205_v29, %v1177_v30  ;;  %v1151_v45 = vadd.f32 %v1150_v32, %v1122_v38 }
  0xfe   : > { %v1255_v37 = vadd.f32 %v2295_v26, %v1206_v35 }
 0x100   : > { %v1263_v40 = vmax.f32 %v1255_v37, 0.0 }
 0x101   : > { %v1179_v41 = vpop.f32.mrf.mxu2  ;;  %v1123_v46 = vpop.f32.mrf.mxu0 }
 0x102   : > { %v1208_v42 = vpop.f32.mrf.mxu3  ;;  %v1898_v44 = vpack.c.bf16 %v1263_v40, %v1262_v39  ;;  %v1152_v47 = vpop.f32.mrf.mxu1  ;;  %v1180_v48 = vadd.f32 %v1179_v41, %v1151_v45  ;;  %v1124_v49 = vadd.f32 %v1123_v46, %v1095_v43 }
 0x104   : > { %1899 = vst [vmem:[%s2303_s18] sm:$0xff] %v1898_v44   ;;  %v1209_v50 = vadd.f32 %v1208_v42, %v1180_v48  ;;  %v1153_v51 = vadd.f32 %v1152_v47, %v1124_v49 }
 0x106   : > { %v1256_v53 = vadd.f32 %v2295_v26, %v1209_v50 }
 0x108   : > { %v1264_v4 = vmax.f32 %v1256_v53, 0.0 }
 0x109   : > { %v1181_v52 = vpop.f32.mrf.mxu2  ;;  %v1126_v56 = vpop.f32.mrf.mxu0 }
 0x10a   : > { %v1210_v54 = vpop.f32.mrf.mxu3  ;;  %v1182_v55 = vadd.f32 %v1181_v52, %v1153_v51  ;;  %v1155_v57 = vpop.f32.mrf.mxu1  ;;  %v1127_v3 = vadd.f32 %v1126_v56, %v2276_v62  ;;  %v1047_v62 = vadd.f32 %v2284_v8, %v2282_v7 }
 0x10c   : > { %v1211_v59 = vadd.f32 %v1210_v54, %v1182_v55  ;;  %v1156_v15 = vadd.f32 %v1155_v57, %v1127_v3  ;;  %v1076_v25 = vadd.f32 %v2288_v10, %v1047_v62 }
 0x10e   : > { %v1257_v2 = vadd.f32 %v2295_v26, %v1211_v59  ;;  %v1105_v33 = vadd.f32 %v2290_v11, %v1076_v25 }
 0x110   : > { %v1265_v5 = vmax.f32 %v1257_v2, 0.0 }
 0x111   : > { %v1184_v6 = vpop.f32.mrf.mxu2  ;;  %v1128_v16 = vpop.f32.mrf.mxu0 }
 0x112   : > { %v1213_v12 = vpop.f32.mrf.mxu3  ;;  %v1903_v14 = vpack.c.bf16 %v1265_v5, %v1264_v4  ;;  %v1157_v17 = vpop.f32.mrf.mxu1  ;;  %v1185_v60 = vadd.f32 %v1184_v6, %v1156_v15  ;;  %v1129_v61 = vadd.f32 %v1128_v16, %v1100_v13 }
 0x114   : > { %1915 = vst [vmem:[%s2303_s18 + $0x8] sm:$0xff] %v1903_v14   ;;  %v1214_v18 = vadd.f32 %v1213_v12, %v1185_v60  ;;  %v1158_v19 = vadd.f32 %v1157_v17, %v1129_v61 }
 0x116   : > { %v1258_v23 = vadd.f32 %v2295_v26, %v1214_v18 }
 0x118   : > { %v1266_v29 = vmax.f32 %v1258_v23, 0.0 }
 0x119   : > { %v1186_v63 = vpop.f32.mrf.mxu2  ;;  %v1131_v22 = vpop.f32.mrf.mxu0 }
 0x11a   : > { %v1215_v20 = vpop.f32.mrf.mxu3  ;;  %v1187_v21 = vadd.f32 %v1186_v63, %v1158_v19  ;;  %v1160_v24 = vpop.f32.mrf.mxu1  ;;  %v1132_v28 = vadd.f32 %v1131_v22, %v2286_v9 }
 0x11c   : > { %v1216_v0 = vadd.f32 %v1215_v20, %v1187_v21  ;;  %v1161_v35 = vadd.f32 %v1160_v24, %v1132_v28 }
 0x11e   : > { %v1259_v27 = vadd.f32 %v2295_v26, %v1216_v0 }
 0x120   : > { %v1267_v30 = vmax.f32 %v1259_v27, 0.0 }
 0x121   : > { %v1189_v31 = vpop.f32.mrf.mxu2  ;;  %v1133_v36 = vpop.f32.mrf.mxu0 }
 0x122   : > { %v1218_v32 = vpop.f32.mrf.mxu3  ;;  %v1908_v34 = vpack.c.bf16 %v1267_v30, %v1266_v29  ;;  %v1190_v7 = vadd.f32 %v1189_v31, %v1161_v35  ;;  %v1134_v8 = vadd.f32 %v1133_v36, %v1105_v33  ;;  %v1162_v37 = vpop.f32.mrf.mxu1 }
 0x124   : > { %1916 = vst [vmem:[%s2303_s18 + $0x10] sm:$0xff] %v1908_v34   ;;  %v1219_v38 = vadd.f32 %v1218_v32, %v1190_v7  ;;  %v1163_v10 = vadd.f32 %v1162_v37, %v1134_v8 }
 0x126   : > { %v1260_v9 = vadd.f32 %v2295_v26, %v1219_v38 }
 0x128   : > { %v1268_v44 = vmax.f32 %v1260_v9, 0.0 }
 0x129   : > { %v1191_v39 = vpop.f32.mrf.mxu2 }
 0x12a   : > { %v1192_v40 = vadd.f32 %v1191_v39, %v1163_v10  ;;  %v1220_v41 = vpop.f32.mrf.mxu3 }
 0x12c   : > { %v1221_v42 = vadd.f32 %v1220_v41, %v1192_v40 }
 0x12e   : > { %v1261_v43 = vadd.f32 %v2295_v26, %v1221_v42 }
 0x130   : > { %v1269_v11 = vmax.f32 %v1261_v43, 0.0 }
 0x132   : > { %v1913_v45 = vpack.c.bf16 %v1269_v11, %v1268_v44 }
 0x134   : > { %1917 = vst [vmem:[%s2303_s18 + $0x18] sm:$0xff] %v1913_v45  }
 0x135 PF: > { %s13_s14 = sadd.s32 1, %s1965_s14   ;;  %s2338_s12 = smov %s1961_s13 }
 0x136   : > { %p10_p5 = scmp.ge.s32.totalorder %s13_s14, 4   ;;  %s2339_s13 = smov %s2341_s15 }
 0x138   :  { %12 = sbr.rel (!%p10_p5) target bundleno = 2 (0x2), region = 76 }

// kernel: forward.15
= control target key start
LH: loop header
LB: loop body
LE: loop exit
PB: predicated region body
PF: predicated region fallthrough
CT: control target
= control target key end

     0   :  { %s1581_s12 = smov 0   ;;  %s1583_s13 = smov 0   ;;  %s1790_s0 = inlined_call_operand.vmem [shape: bf16[512,256], index: 0, kind: input, shape index: {}]   ;;  %s1791_s1 = inlined_call_operand.vmem [shape: bf16[256,128], index: 1, kind: input, shape index: {}]   ;;  %s1792_s2 = inlined_call_operand.vmem [shape: f32[1,128], index: 2, kind: input, shape index: {}]   ;;  %s1793_s3 = inlined_call_operand.vmem [shape: bf16[512,128], index: 3, kind: output, shape index: {}]  }
   0x1   :  { %s1585_s14 = smov 0  }
   0x2 LB: > { %s32_s15 = sadd.s32 1, %s1555_s13  ;;  %p1152_p0 = scmp.ge.s32.totalorder %s1559_s14, 1  ;;  %s1559_s14 = sphi %s1585_s14, %s13_s14   ;;  %s1555_s13 = sphi %s1583_s13, %s1795_s13   ;;  %s1551_s12 = sphi %s1581_s12, %s1794_s12  }
   0x3   : > { %p34_p1 = scmp.ge.s32.totalorder %s32_s15, 2  ;;  %p191_p2 = scmp.lt.s32.totalorder %s1559_s14, 3 }
   0x5   : > { %s1797_s15 = smov (%p34_p1, %s32_s15), 0  ;;  %p192_p3 = pnand %p1152_p0, %p191_p2 }
   0x6   : > { %s1153_s28 = sshll.u32 (!%p192_p3), %s1551_s12, 5 }
   0x7   : > { %195 = sbr.rel (%p192_p3) target bundleno = 304 (0x130), region = 32  ;;  %p236_p4 = scmp.lt.s32.totalorder (!%p192_p3), %s1153_s28, 63 }
   0xc   : > { %v1392_v0 = vld [vmem:[%s1791_s1 + $0x38] sm:$0xff]  ;;  %v1391_v2 = vld [vmem:[%s1791_s1 + $0x30] sm:$0xff]  ;;  %v1390_v4 = vld [vmem:[%s1791_s1 + $0x28] sm:$0xff]  ;;  %s1799_s28 = smov (!%p236_p4, %s1153_s28), 63 }
   0xd   : > { %v1400_v1 = vld [vmem:[%s1791_s1 + $0x78] sm:$0xff]  ;;  %655 = vmatpush.bf16.msra.mxu0 %v1392_v0  ;;  %1496 = vmatpush.bf16.msra.mxu2 %v1392_v0  ;;  %v1399_v3 = vld [vmem:[%s1791_s1 + $0x70] sm:$0xff]  ;;  %v1398_v5 = vld [vmem:[%s1791_s1 + $0x68] sm:$0xff]  ;;  %s1352_s17 = sshll.u32 %s1799_s28, 3  ;;  %s1157_s5 = sshll.u32 %s1799_s28, 2 }
   0xe   : > { %744 = vmatpush.bf16.msra.mxu1 %v1400_v1  ;;  %1504 = vmatpush.bf16.msra.mxu3 %v1400_v1  ;;  %v1389_v6 = vld [vmem:[%s1791_s1 + $0x20] sm:$0xff]  ;;  %v1388_v8 = vld [vmem:[%s1791_s1 + $0x18] sm:$0xff]  ;;  %v1387_v10 = vld [vmem:[%s1791_s1 + $0x10] sm:$0xff]  ;;  %s1647_s22 = scalar_lea.vmem %s1790_s0, %s1352_s17  ;;  %s1733_s8 = scalar_lea.vmem %s1793_s3, %s1157_s5 }
   0xf   : > { %v1397_v7 = vld [vmem:[%s1791_s1 + $0x60] sm:$0xff]  ;;  %v1396_v9 = vld [vmem:[%s1791_s1 + $0x58] sm:$0xff]  ;;  %v1395_v11 = vld [vmem:[%s1791_s1 + $0x50] sm:$0xff] }
  0x10   : > { %v1386_v12 = vld [vmem:[%s1791_s1 + $0x8] sm:$0xff]  ;;  %v1385_v14 = vld [vmem:[%s1791_s1] sm:$0xff]  ;;  %v1168_v28 = vld [vmem:[%s1647_s22 + $0x10] sm:$0xf] }
  0x11   : > { %656 = vmatpush.bf16.msra.mxu0 %v1391_v2  ;;  %1497 = vmatpush.bf16.msra.mxu2 %v1391_v2  ;;  %v1394_v13 = vld [vmem:[%s1791_s1 + $0x48] sm:$0xff]  ;;  %v1393_v15 = vld [vmem:[%s1791_s1 + $0x40] sm:$0xff]  ;;  %v1356_v29 = vld [vmem:[%s1647_s22 + $0x14] sm:$0xf0] }
  0x12   : > { %745 = vmatpush.bf16.msra.mxu1 %v1399_v3  ;;  %1505 = vmatpush.bf16.msra.mxu3 %v1399_v3  ;;  %v1160_v16 = vld [vmem:[%s1647_s22] sm:$0xf]  ;;  %v1354_v17 = vld [vmem:[%s1647_s22 + $0x4] sm:$0xf0]  ;;  %v1353_v20 = vld [vmem:[%s1647_s22 + $0x4] sm:$0xf]  ;;  %v1169_v36 = vor.u32 %v1356_v29, %v1168_v28 }
  0x13   : > { %v1224_v18 = vld [vmem:[%s1647_s22 + $0x80] sm:$0xf]  ;;  %v1370_v19 = vld [vmem:[%s1647_s22 + $0x84] sm:$0xf0]  ;;  %v1162_v21 = vld [vmem:[%s1647_s22 + $0x8] sm:$0xf0]  ;;  %v1161_v24 = vor.u32 %v1354_v17, %v1160_v16 }
  0x14   : > { %v1369_v22 = vld [vmem:[%s1647_s22 + $0x84] sm:$0xf]  ;;  %v1226_v23 = vld [vmem:[%s1647_s22 + $0x88] sm:$0xf0]  ;;  %v1225_v25 = vor.u32 %v1370_v19, %v1224_v18  ;;  %v1165_v26 = vor.u32 %v1353_v20, %v1162_v21  ;;  %v1232_v30 = vld [vmem:[%s1647_s22 + $0x90] sm:$0xf] }
  0x15   : > { %657 = vmatpush.bf16.msra.mxu0 %v1390_v4  ;;  %1498 = vmatpush.bf16.msra.mxu2 %v1390_v4  ;;  %v1229_v27 = vor.u32 %v1369_v22, %v1226_v23  ;;  %v1372_v31 = vld [vmem:[%s1647_s22 + $0x94] sm:$0xf0]  ;;  %v1355_v32 = vld [vmem:[%s1647_s22 + $0x14] sm:$0xf]  ;;  %v1170_v33 = vld [vmem:[%s1647_s22 + $0x18] sm:$0xf0] }
  0x16   : > { %746 = vmatpush.bf16.msra.mxu1 %v1398_v5  ;;  %1506 = vmatpush.bf16.msra.mxu3 %v1398_v5  ;;  %v1371_v34 = vld [vmem:[%s1647_s22 + $0x94] sm:$0xf]  ;;  %v1234_v35 = vld [vmem:[%s1647_s22 + $0x98] sm:$0xf0]  ;;  %v1233_v37 = vor.u32 %v1372_v31, %v1232_v30  ;;  %v1173_v38 = vor.u32 %v1355_v32, %v1170_v33  ;;  %v1176_v40 = vld [vmem:[%s1647_s22 + $0x20] sm:$0xf] }
  0x17   : > { %v1237_v39 = vor.u32 %v1371_v34, %v1234_v35  ;;  %v1358_v41 = vld [vmem:[%s1647_s22 + $0x24] sm:$0xf0]  ;;  %v1240_v42 = vld [vmem:[%s1647_s22 + $0xa0] sm:$0xf]  ;;  %v1357_v44 = vld [vmem:[%s1647_s22 + $0x24] sm:$0xf] }
  0x18   : > { %v1374_v43 = vld [vmem:[%s1647_s22 + $0xa4] sm:$0xf0]  ;;  %v1178_v45 = vld [vmem:[%s1647_s22 + $0x28] sm:$0xf0]  ;;  %v1373_v46 = vld [vmem:[%s1647_s22 + $0xa4] sm:$0xf]  ;;  %v1177_v48 = vor.u32 %v1358_v41, %v1176_v40 }
  0x19   : > { %658 = vmatpush.bf16.msra.mxu0 %v1389_v6  ;;  %1499 = vmatpush.bf16.msra.mxu2 %v1389_v6  ;;  %v1242_v47 = vld [vmem:[%s1647_s22 + $0xa8] sm:$0xf0]  ;;  %v1241_v49 = vor.u32 %v1374_v43, %v1240_v42  ;;  %v1181_v50 = vor.u32 %v1357_v44, %v1178_v45  ;;  %v1184_v52 = vld [vmem:[%s1647_s22 + $0x30] sm:$0xf]  ;;  %v1360_v53 = vld [vmem:[%s1647_s22 + $0x34] sm:$0xf0] }
  0x1a   : > { %747 = vmatpush.bf16.msra.mxu1 %v1397_v7  ;;  %1507 = vmatpush.bf16.msra.mxu3 %v1397_v7  ;;  %v1245_v51 = vor.u32 %v1373_v46, %v1242_v47  ;;  %v1248_v54 = vld [vmem:[%s1647_s22 + $0xb0] sm:$0xf]  ;;  %v1376_v55 = vld [vmem:[%s1647_s22 + $0xb4] sm:$0xf0]  ;;  %v1359_v56 = vld [vmem:[%s1647_s22 + $0x34] sm:$0xf]  ;;  %v1185_v60 = vor.u32 %v1360_v53, %v1184_v52 }
  0x1b   : > { %v1186_v57 = vld [vmem:[%s1647_s22 + $0x38] sm:$0xf0]  ;;  %v1375_v58 = vld [vmem:[%s1647_s22 + $0xb4] sm:$0xf]  ;;  %v1249_v61 = vor.u32 %v1376_v55, %v1248_v54  ;;  %v1192_v0 = vld [vmem:[%s1647_s22 + $0x40] sm:$0xf] }
  0x1c   : > { %v1250_v59 = vld [vmem:[%s1647_s22 + $0xb8] sm:$0xf0]  ;;  %v1189_v62 = vor.u32 %v1359_v56, %v1186_v57  ;;  %v1362_v1 = vld [vmem:[%s1647_s22 + $0x44] sm:$0xf0]  ;;  %v1256_v2 = vld [vmem:[%s1647_s22 + $0xc0] sm:$0xf] }
  0x1d   : > { %659 = vmatpush.bf16.msra.mxu0 %v1388_v8  ;;  %1500 = vmatpush.bf16.msra.mxu2 %v1388_v8  ;;  %v1253_v63 = vor.u32 %v1375_v58, %v1250_v59  ;;  %v1378_v3 = vld [vmem:[%s1647_s22 + $0xc4] sm:$0xf0]  ;;  %v1361_v4 = vld [vmem:[%s1647_s22 + $0x44] sm:$0xf]  ;;  %v1194_v5 = vld [vmem:[%s1647_s22 + $0x48] sm:$0xf0]  ;;  %v1193_v8 = vor.u32 %v1362_v1, %v1192_v0 }
  0x1e   : > { %748 = vmatpush.bf16.msra.mxu1 %v1396_v9  ;;  %1508 = vmatpush.bf16.msra.mxu3 %v1396_v9  ;;  %v1377_v6 = vld [vmem:[%s1647_s22 + $0xc4] sm:$0xf]  ;;  %v1258_v7 = vld [vmem:[%s1647_s22 + $0xc8] sm:$0xf0]  ;;  %v1257_v9 = vor.u32 %v1378_v3, %v1256_v2  ;;  %v1363_v16 = vld [vmem:[%s1647_s22 + $0x54] sm:$0xf] }
  0x1f   : > { %v1202_v17 = vld [vmem:[%s1647_s22 + $0x58] sm:$0xf0]  ;;  %v1379_v18 = vld [vmem:[%s1647_s22 + $0xd4] sm:$0xf]  ;;  %v1365_v28 = vld [vmem:[%s1647_s22 + $0x64] sm:$0xf] }
  0x20   : > { %v1266_v19 = vld [vmem:[%s1647_s22 + $0xd8] sm:$0xf0]  ;;  %v1205_v22 = vor.u32 %v1363_v16, %v1202_v17  ;;  %v1210_v29 = vld [vmem:[%s1647_s22 + $0x68] sm:$0xf0]  ;;  %v1381_v30 = vld [vmem:[%s1647_s22 + $0xe4] sm:$0xf] }
  0x21   : > { %660 = vmatpush.bf16.msra.mxu0 %v1387_v10  ;;  %1501 = vmatpush.bf16.msra.mxu2 %v1387_v10  ;;  %v1197_v10 = vor.u32 %v1361_v4, %v1194_v5  ;;  %v1269_v23 = vor.u32 %v1379_v18, %v1266_v19  ;;  %v1274_v31 = vld [vmem:[%s1647_s22 + $0xe8] sm:$0xf0]  ;;  %v1213_v34 = vor.u32 %v1365_v28, %v1210_v29  ;;  %v1367_v40 = vld [vmem:[%s1647_s22 + $0x74] sm:$0xf]  ;;  %v1218_v41 = vld [vmem:[%s1647_s22 + $0x78] sm:$0xf0] }
  0x22   : > { %749 = vmatpush.bf16.msra.mxu1 %v1395_v11  ;;  %1509 = vmatpush.bf16.msra.mxu3 %v1395_v11  ;;  %v1261_v11 = vor.u32 %v1377_v6, %v1258_v7  ;;  %v1277_v35 = vor.u32 %v1381_v30, %v1274_v31  ;;  %v1383_v42 = vld [vmem:[%s1647_s22 + $0xf4] sm:$0xf]  ;;  %v1282_v43 = vld [vmem:[%s1647_s22 + $0xf8] sm:$0xf0]  ;;  %v1221_v46 = vor.u32 %v1367_v40, %v1218_v41  ;;  %v1725_v53 = vld [vmem:[%s1792_s2] ss:$0 sm:$0xff] }
  0x23   : > { %v1285_v47 = vor.u32 %v1383_v42, %v1282_v43 }
  0x25   : > { %661 = vmatpush.bf16.msra.mxu0 %v1386_v12  ;;  %1502 = vmatpush.bf16.msra.mxu2 %v1386_v12  ;;  %v1200_v12 = vld [vmem:[%s1647_s22 + $0x50] sm:$0xf] }
  0x26   : > { %750 = vmatpush.bf16.msra.mxu1 %v1394_v13  ;;  %1510 = vmatpush.bf16.msra.mxu3 %v1394_v13  ;;  %v1364_v13 = vld [vmem:[%s1647_s22 + $0x54] sm:$0xf0] }
  0x27   : > { %v1201_v20 = vor.u32 %v1364_v13, %v1200_v12 }
  0x29   : > { %662 = vmatpush.bf16.msra.mxu0 %v1385_v14  ;;  %1503 = vmatpush.bf16.msra.mxu2 %v1385_v14  ;;  %v1264_v14 = vld [vmem:[%s1647_s22 + $0xd0] sm:$0xf] }
  0x2a   : > { %751 = vmatpush.bf16.msra.mxu1 %v1393_v15  ;;  %1511 = vmatpush.bf16.msra.mxu3 %v1393_v15  ;;  %v1380_v15 = vld [vmem:[%s1647_s22 + $0xd4] sm:$0xf0] }
  0x2b   : > { %v1265_v21 = vor.u32 %v1380_v15, %v1264_v14 }
  0x2c   : > { %663 = vmatmul.bf16.vlgmr.msra.gmra.mxu0 %v1161_v24  ;;  %703 = vmatmul.bf16.vlgmr.msra.gmra.mxu2 %v1225_v25  ;;  %v1208_v24 = vld [vmem:[%s1647_s22 + $0x60] sm:$0xf]  ;;  %v1366_v25 = vld [vmem:[%s1647_s22 + $0x64] sm:$0xf0] }
  0x2d   : > { %752 = vmatmul.bf16.vlgmr.msra.gmra.mxu1 %v1165_v26  ;;  %792 = vmatmul.bf16.vlgmr.msra.gmra.mxu3 %v1229_v27  ;;  %v1272_v26 = vld [vmem:[%s1647_s22 + $0xe0] sm:$0xf]  ;;  %v1382_v27 = vld [vmem:[%s1647_s22 + $0xe4] sm:$0xf0]  ;;  %v1209_v32 = vor.u32 %v1366_v25, %v1208_v24 }
  0x2e   : > { %v1273_v33 = vor.u32 %v1382_v27, %v1272_v26 }
  0x3c   : > { %668 = vmatmul.bf16.gmra.mxu0 %v1169_v36  ;;  %708 = vmatmul.bf16.gmra.mxu2 %v1233_v37  ;;  %v1216_v36 = vld [vmem:[%s1647_s22 + $0x70] sm:$0xf]  ;;  %v1368_v37 = vld [vmem:[%s1647_s22 + $0x74] sm:$0xf0] }
  0x3d   : > { %757 = vmatmul.bf16.gmra.mxu1 %v1173_v38  ;;  %797 = vmatmul.bf16.gmra.mxu3 %v1237_v39  ;;  %v1280_v38 = vld [vmem:[%s1647_s22 + $0xf0] sm:$0xf]  ;;  %v1384_v39 = vld [vmem:[%s1647_s22 + $0xf4] sm:$0xf0]  ;;  %v1217_v44 = vor.u32 %v1368_v37, %v1216_v36 }
  0x3e   : > { %v1281_v45 = vor.u32 %v1384_v39, %v1280_v38 }
  0x4c   : > { %673 = vmatmul.bf16.gmra.mxu0 %v1177_v48  ;;  %713 = vmatmul.bf16.gmra.mxu2 %v1241_v49 }
  0x4d   : > { %762 = vmatmul.bf16.gmra.mxu1 %v1181_v50  ;;  %802 = vmatmul.bf16.gmra.mxu3 %v1245_v51 }
  0x5c   : > { %678 = vmatmul.bf16.gmra.mxu0 %v1185_v60  ;;  %718 = vmatmul.bf16.gmra.mxu2 %v1249_v61 }
  0x5d   : > { %767 = vmatmul.bf16.gmra.mxu1 %v1189_v62  ;;  %807 = vmatmul.bf16.gmra.mxu3 %v1253_v63 }
  0x6c   : > { %683 = vmatmul.bf16.gmra.mxu0 %v1193_v8  ;;  %723 = vmatmul.bf16.gmra.mxu2 %v1257_v9 }
  0x6d   : > { %772 = vmatmul.bf16.gmra.mxu1 %v1197_v10  ;;  %812 = vmatmul.bf16.gmra.mxu3 %v1261_v11 }
  0x7c   : > { %688 = vmatmul.bf16.gmra.mxu0 %v1201_v20  ;;  %728 = vmatmul.bf16.gmra.mxu2 %v1265_v21 }
  0x7d   : > { %777 = vmatmul.bf16.gmra.mxu1 %v1205_v22  ;;  %817 = vmatmul.bf16.gmra.mxu3 %v1269_v23 }
  0x8c   : > { %693 = vmatmul.bf16.gmra.mxu0 %v1209_v32  ;;  %733 = vmatmul.bf16.gmra.mxu2 %v1273_v33 }
  0x8d   : > { %782 = vmatmul.bf16.gmra.mxu1 %v1213_v34  ;;  %822 = vmatmul.bf16.gmra.mxu3 %v1277_v35 }
  0x9c   : > { %698 = vmatmul.bf16.gmra.mxu0 %v1217_v44  ;;  %738 = vmatmul.bf16.gmra.mxu2 %v1281_v45 }
  0x9d   : > { %787 = vmatmul.bf16.gmra.mxu1 %v1221_v46  ;;  %827 = vmatmul.bf16.gmra.mxu3 %v1285_v47 }
  0xa9   : > { %v664_v48 = vpop.f32.mrf.mxu0 }
  0xaa   : > { %v753_v49 = vpop.f32.mrf.mxu1 }
  0xab   : > { %v754_v52 = vadd.f32 %v753_v49, %v664_v48 }
  0xad   : > { %v936_v57 = vadd.f32 %v1725_v53, %v754_v52 }
  0xaf   : > { %v704_v50 = vpop.f32.mrf.mxu2 }
  0xb0   : > { %v793_v51 = vpop.f32.mrf.mxu3 }
  0xb1   : > { %v666_v54 = vpop.f32.mrf.mxu0  ;;  %v794_v59 = vadd.f32 %v793_v51, %v704_v50 }
  0xb2   : > { %v755_v55 = vpop.f32.mrf.mxu1 }
  0xb3   : > { %v756_v56 = vadd.f32 %v755_v55, %v666_v54  ;;  %v952_v2 = vadd.f32 %v1725_v53, %v794_v59 }
  0xb5   : > { %v937_v58 = vadd.f32 %v1725_v53, %v756_v56 }
  0xb7   : > { %v1404_v60 = vpack.c.bf16 %v937_v58, %v936_v57  ;;  %v706_v61 = vpop.f32.mrf.mxu2 }
  0xb8   : > { %v795_v62 = vpop.f32.mrf.mxu3 }
  0xb9   : > { %1405 = vst [vmem:[%s1733_s8] sm:$0xff] %v1404_v60   ;;  %v796_v63 = vadd.f32 %v795_v62, %v706_v61  ;;  %v669_v0 = vpop.f32.mrf.mxu0 }
  0xba   : > { %v758_v1 = vpop.f32.mrf.mxu1 }
  0xbb   : > { %v953_v3 = vadd.f32 %v1725_v53, %v796_v63  ;;  %v759_v7 = vadd.f32 %v758_v1, %v669_v0 }
  0xbd   : > { %v1444_v4 = vpack.c.bf16 %v953_v3, %v952_v2  ;;  %v938_v11 = vadd.f32 %v1725_v53, %v759_v7 }
  0xbf   : > { %1488 = vst [vmem:[%s1733_s8 + $0x40] sm:$0xff] %v1444_v4   ;;  %v709_v5 = vpop.f32.mrf.mxu2 }
  0xc0   : > { %v798_v6 = vpop.f32.mrf.mxu3 }
  0xc1   : > { %v671_v8 = vpop.f32.mrf.mxu0  ;;  %v799_v13 = vadd.f32 %v798_v6, %v709_v5 }
  0xc2   : > { %v760_v9 = vpop.f32.mrf.mxu1 }
  0xc3   : > { %v761_v10 = vadd.f32 %v760_v9, %v671_v8  ;;  %v954_v20 = vadd.f32 %v1725_v53, %v799_v13 }
  0xc5   : > { %v939_v12 = vadd.f32 %v1725_v53, %v761_v10 }
  0xc7   : > { %v1409_v14 = vpack.c.bf16 %v939_v12, %v938_v11  ;;  %v711_v15 = vpop.f32.mrf.mxu2 }
  0xc8   : > { %v800_v16 = vpop.f32.mrf.mxu3 }
  0xc9   : > { %1481 = vst [vmem:[%s1733_s8 + $0x8] sm:$0xff] %v1409_v14   ;;  %v801_v17 = vadd.f32 %v800_v16, %v711_v15  ;;  %v674_v18 = vpop.f32.mrf.mxu0 }
  0xca   : > { %v763_v19 = vpop.f32.mrf.mxu1 }
  0xcb   : > { %v955_v21 = vadd.f32 %v1725_v53, %v801_v17  ;;  %v764_v25 = vadd.f32 %v763_v19, %v674_v18 }
  0xcd   : > { %v1449_v22 = vpack.c.bf16 %v955_v21, %v954_v20  ;;  %v940_v29 = vadd.f32 %v1725_v53, %v764_v25 }
  0xcf   : > { %1489 = vst [vmem:[%s1733_s8 + $0x48] sm:$0xff] %v1449_v22   ;;  %v714_v23 = vpop.f32.mrf.mxu2 }
  0xd0   : > { %v803_v24 = vpop.f32.mrf.mxu3 }
  0xd1   : > { %v676_v26 = vpop.f32.mrf.mxu0  ;;  %v804_v31 = vadd.f32 %v803_v24, %v714_v23 }
  0xd2   : > { %v765_v27 = vpop.f32.mrf.mxu1 }
  0xd3   : > { %v766_v28 = vadd.f32 %v765_v27, %v676_v26  ;;  %v956_v38 = vadd.f32 %v1725_v53, %v804_v31 }
  0xd5   : > { %v941_v30 = vadd.f32 %v1725_v53, %v766_v28 }
  0xd7   : > { %v1414_v32 = vpack.c.bf16 %v941_v30, %v940_v29  ;;  %v716_v33 = vpop.f32.mrf.mxu2 }
  0xd8   : > { %v805_v34 = vpop.f32.mrf.mxu3 }
  0xd9   : > { %1482 = vst [vmem:[%s1733_s8 + $0x10] sm:$0xff] %v1414_v32   ;;  %v806_v35 = vadd.f32 %v805_v34, %v716_v33  ;;  %v679_v36 = vpop.f32.mrf.mxu0 }
  0xda   : > { %v768_v37 = vpop.f32.mrf.mxu1 }
  0xdb   : > { %v957_v39 = vadd.f32 %v1725_v53, %v806_v35  ;;  %v769_v43 = vadd.f32 %v768_v37, %v679_v36 }
  0xdd   : > { %v1454_v40 = vpack.c.bf16 %v957_v39, %v956_v38  ;;  %v942_v47 = vadd.f32 %v1725_v53, %v769_v43 }
  0xdf   : > { %1490 = vst [vmem:[%s1733_s8 + $0x50] sm:$0xff] %v1454_v40   ;;  %v719_v41 = vpop.f32.mrf.mxu2 }
  0xe0   : > { %v808_v42 = vpop.f32.mrf.mxu3 }
  0xe1   : > { %v681_v44 = vpop.f32.mrf.mxu0  ;;  %v809_v49 = vadd.f32 %v808_v42, %v719_v41 }
  0xe2   : > { %v770_v45 = vpop.f32.mrf.mxu1 }
  0xe3   : > { %v771_v46 = vadd.f32 %v770_v45, %v681_v44  ;;  %v958_v57 = vadd.f32 %v1725_v53, %v809_v49 }
  0xe5   : > { %v943_v48 = vadd.f32 %v1725_v53, %v771_v46 }
  0xe7   : > { %v1419_v50 = vpack.c.bf16 %v943_v48, %v942_v47  ;;  %v721_v51 = vpop.f32.mrf.mxu2 }
  0xe8   : > { %v810_v52 = vpop.f32.mrf.mxu3 }
  0xe9   : > { %1483 = vst [vmem:[%s1733_s8 + $0x18] sm:$0xff] %v1419_v50   ;;  %v811_v54 = vadd.f32 %v810_v52, %v721_v51  ;;  %v684_v55 = vpop.f32.mrf.mxu0 }
  0xea   : > { %v773_v56 = vpop.f32.mrf.mxu1 }
  0xeb   : > { %v959_v58 = vadd.f32 %v1725_v53, %v811_v54  ;;  %v774_v62 = vadd.f32 %v773_v56, %v684_v55 }
  0xed   : > { %v1459_v59 = vpack.c.bf16 %v959_v58, %v958_v57  ;;  %v944_v2 = vadd.f32 %v1725_v53, %v774_v62 }
  0xef   : > { %1491 = vst [vmem:[%s1733_s8 + $0x58] sm:$0xff] %v1459_v59   ;;  %v724_v60 = vpop.f32.mrf.mxu2 }
  0xf0   : > { %v813_v61 = vpop.f32.mrf.mxu3 }
  0xf1   : > { %v686_v63 = vpop.f32.mrf.mxu0  ;;  %v814_v4 = vadd.f32 %v813_v61, %v724_v60 }
  0xf2   : > { %v775_v0 = vpop.f32.mrf.mxu1 }
  0xf3   : > { %v776_v1 = vadd.f32 %v775_v0, %v686_v63  ;;  %v960_v11 = vadd.f32 %v1725_v53, %v814_v4 }
  0xf5   : > { %v945_v3 = vadd.f32 %v1725_v53, %v776_v1 }
  0xf7   : > { %v1424_v5 = vpack.c.bf16 %v945_v3, %v944_v2  ;;  %v726_v6 = vpop.f32.mrf.mxu2 }
  0xf8   : > { %v815_v7 = vpop.f32.mrf.mxu3 }
  0xf9   : > { %1484 = vst [vmem:[%s1733_s8 + $0x20] sm:$0xff] %v1424_v5   ;;  %v816_v8 = vadd.f32 %v815_v7, %v726_v6  ;;  %v689_v9 = vpop.f32.mrf.mxu0 }
  0xfa   : > { %v778_v10 = vpop.f32.mrf.mxu1 }
  0xfb   : > { %v961_v12 = vadd.f32 %v1725_v53, %v816_v8  ;;  %v779_v16 = vadd.f32 %v778_v10, %v689_v9 }
  0xfd   : > { %v1464_v13 = vpack.c.bf16 %v961_v12, %v960_v11  ;;  %v946_v20 = vadd.f32 %v1725_v53, %v779_v16 }
  0xff   : > { %1492 = vst [vmem:[%s1733_s8 + $0x60] sm:$0xff] %v1464_v13   ;;  %v729_v14 = vpop.f32.mrf.mxu2 }
 0x100   : > { %v818_v15 = vpop.f32.mrf.mxu3 }
 0x101   : > { %v691_v17 = vpop.f32.mrf.mxu0  ;;  %v819_v22 = vadd.f32 %v818_v15, %v729_v14 }
 0x102   : > { %v780_v18 = vpop.f32.mrf.mxu1 }
 0x103   : > { %v781_v19 = vadd.f32 %v780_v18, %v691_v17  ;;  %v962_v29 = vadd.f32 %v1725_v53, %v819_v22 }
 0x105   : > { %v947_v21 = vadd.f32 %v1725_v53, %v781_v19 }
 0x107   : > { %v1429_v23 = vpack.c.bf16 %v947_v21, %v946_v20  ;;  %v731_v24 = vpop.f32.mrf.mxu2 }
 0x108   : > { %v820_v25 = vpop.f32.mrf.mxu3 }
 0x109   : > { %1485 = vst [vmem:[%s1733_s8 + $0x28] sm:$0xff] %v1429_v23   ;;  %v821_v26 = vadd.f32 %v820_v25, %v731_v24  ;;  %v694_v27 = vpop.f32.mrf.mxu0 }
 0x10a   : > { %v783_v28 = vpop.f32.mrf.mxu1 }
 0x10b   : > { %v963_v30 = vadd.f32 %v1725_v53, %v821_v26  ;;  %v784_v34 = vadd.f32 %v783_v28, %v694_v27 }
 0x10d   : > { %v1469_v31 = vpack.c.bf16 %v963_v30, %v962_v29  ;;  %v948_v38 = vadd.f32 %v1725_v53, %v784_v34 }
 0x10f   : > { %1493 = vst [vmem:[%s1733_s8 + $0x68] sm:$0xff] %v1469_v31   ;;  %v734_v32 = vpop.f32.mrf.mxu2 }
 0x110   : > { %v823_v33 = vpop.f32.mrf.mxu3 }
 0x111   : > { %v696_v35 = vpop.f32.mrf.mxu0  ;;  %v824_v40 = vadd.f32 %v823_v33, %v734_v32 }
 0x112   : > { %v785_v36 = vpop.f32.mrf.mxu1 }
 0x113   : > { %v786_v37 = vadd.f32 %v785_v36, %v696_v35  ;;  %v964_v47 = vadd.f32 %v1725_v53, %v824_v40 }
 0x115   : > { %v949_v39 = vadd.f32 %v1725_v53, %v786_v37 }
 0x117   : > { %v1434_v41 = vpack.c.bf16 %v949_v39, %v948_v38  ;;  %v736_v42 = vpop.f32.mrf.mxu2 }
 0x118   : > { %v825_v43 = vpop.f32.mrf.mxu3 }
 0x119   : > { %1486 = vst [vmem:[%s1733_s8 + $0x30] sm:$0xff] %v1434_v41   ;;  %v826_v44 = vadd.f32 %v825_v43, %v736_v42  ;;  %v699_v45 = vpop.f32.mrf.mxu0 }
 0x11a   : > { %v788_v46 = vpop.f32.mrf.mxu1 }
 0x11b   : > { %v965_v48 = vadd.f32 %v1725_v53, %v826_v44  ;;  %v789_v52 = vadd.f32 %v788_v46, %v699_v45 }
 0x11d   : > { %v1474_v49 = vpack.c.bf16 %v965_v48, %v964_v47  ;;  %v950_v57 = vadd.f32 %v1725_v53, %v789_v52 }
 0x11f   : > { %1494 = vst [vmem:[%s1733_s8 + $0x70] sm:$0xff] %v1474_v49   ;;  %v739_v50 = vpop.f32.mrf.mxu2 }
 0x120   : > { %v828_v51 = vpop.f32.mrf.mxu3 }
 0x121   : > { %v701_v54 = vpop.f32.mrf.mxu0  ;;  %v829_v59 = vadd.f32 %v828_v51, %v739_v50 }
 0x122   : > { %v790_v55 = vpop.f32.mrf.mxu1 }
 0x123   : > { %v791_v56 = vadd.f32 %v790_v55, %v701_v54  ;;  %v966_v0 = vadd.f32 %v1725_v53, %v829_v59 }
 0x125   : > { %v951_v58 = vadd.f32 %v1725_v53, %v791_v56 }
 0x127   : > { %v1439_v60 = vpack.c.bf16 %v951_v58, %v950_v57  ;;  %v741_v61 = vpop.f32.mrf.mxu2 }
 0x128   : > { %v830_v62 = vpop.f32.mrf.mxu3 }
 0x129   : > { %1487 = vst [vmem:[%s1733_s8 + $0x38] sm:$0xff] %v1439_v60   ;;  %v831_v63 = vadd.f32 %v830_v62, %v741_v61 }
 0x12b   : > { %v967_v1 = vadd.f32 %v1725_v53, %v831_v63 }
 0x12d   : > { %v1479_v2 = vpack.c.bf16 %v967_v1, %v966_v0 }
 0x12f   : > { %1495 = vst [vmem:[%s1733_s8 + $0x78] sm:$0xff] %v1479_v2  }
 0x130 PF: > { %s13_s14 = sadd.s32 1, %s1559_s14   ;;  %s1794_s12 = smov %s1555_s13 }
 0x131   : > { %p10_p5 = scmp.ge.s32.totalorder %s13_s14, 4   ;;  %s1795_s13 = smov %s1797_s15 }
 0x133   :  { %12 = sbr.rel (!%p10_p5) target bundleno = 2 (0x2), region = 76 }

// kernel: forward.17
= control target key start
LH: loop header
LB: loop body
LE: loop exit
PB: predicated region body
PF: predicated region fallthrough
CT: control target
= control target key end

     0   :  { %s2303_s12 = smov 0   ;;  %s2305_s13 = smov 0   ;;  %s2624_s0 = inlined_call_operand.vmem [shape: bf16[512,512], index: 0, kind: input, shape index: {}]   ;;  %s2625_s1 = inlined_call_operand.vmem [shape: bf16[512,128], index: 1, kind: input, shape index: {}]   ;;  %s2626_s2 = inlined_call_operand.vmem [shape: f32[1,128], index: 2, kind: input, shape index: {}]   ;;  %s2627_s3 = inlined_call_operand.vmem [shape: bf16[512,128], index: 3, kind: output, shape index: {}]  }
   0x1   :  { %s2307_s14 = smov 0  }
   0x2 LB: > { %s32_s15 = sadd.s32 1, %s2277_s13  ;;  %p1650_p0 = scmp.ge.s32.totalorder %s2281_s14, 1  ;;  %s2281_s14 = sphi %s2307_s14, %s13_s14   ;;  %s2277_s13 = sphi %s2305_s13, %s2629_s13   ;;  %s2273_s12 = sphi %s2303_s12, %s2628_s12  }
   0x3   : > { %p34_p1 = scmp.ge.s32.totalorder %s32_s15, 2  ;;  %p191_p2 = scmp.lt.s32.totalorder %s2281_s14, 3 }
   0x5   : > { %s2631_s15 = smov (%p34_p1, %s32_s15), 0  ;;  %p192_p3 = pnand %p1650_p0, %p191_p2 }
   0x6   : > { %s1651_s17 = sshll.u32 (!%p192_p3), %s2273_s12, 5 }
   0x7   : > { %195 = sbr.rel (%p192_p3) target bundleno = 435 (0x1b3), region = 32  ;;  %p236_p4 = scmp.lt.s32.totalorder (!%p192_p3), %s1651_s17, 63 }
   0xc   : > { %v2114_v0 = vld [vmem:[%s2625_s1 + $0x38] sm:$0xff]  ;;  %v2113_v4 = vld [vmem:[%s2625_s1 + $0x30] sm:$0xff]  ;;  %v2112_v8 = vld [vmem:[%s2625_s1 + $0x28] sm:$0xff]  ;;  %s2633_s17 = smov (!%p236_p4, %s1651_s17), 63 }
   0xd   : > { %v2122_v1 = vld [vmem:[%s2625_s1 + $0x78] sm:$0xff]  ;;  %975 = vmatpush.bf16.msra.mxu0 %v2114_v0  ;;  %v2121_v5 = vld [vmem:[%s2625_s1 + $0x70] sm:$0xff]  ;;  %v2120_v9 = vld [vmem:[%s2625_s1 + $0x68] sm:$0xff]  ;;  %s2042_s19 = sshll.u32 %s2633_s17, 4  ;;  %s1655_s18 = sshll.u32 %s2633_s17, 2 }
   0xe   : > { %v2130_v2 = vld [vmem:[%s2625_s1 + $0xb8] sm:$0xff]  ;;  %1064 = vmatpush.bf16.msra.mxu1 %v2122_v1  ;;  %v2129_v6 = vld [vmem:[%s2625_s1 + $0xb0] sm:$0xff]  ;;  %v2128_v10 = vld [vmem:[%s2625_s1 + $0xa8] sm:$0xff]  ;;  %s2408_s12 = scalar_lea.vmem %s2624_s0, %s2042_s19  ;;  %s2519_s17 = scalar_lea.vmem %s2627_s3, %s1655_s18 }
   0xf   : > { %v2138_v3 = vld [vmem:[%s2625_s1 + $0xf8] sm:$0xff]  ;;  %1153 = vmatpush.bf16.msra.mxu2 %v2130_v2  ;;  %v2137_v7 = vld [vmem:[%s2625_s1 + $0xf0] sm:$0xff]  ;;  %v2136_v11 = vld [vmem:[%s2625_s1 + $0xe8] sm:$0xff] }
  0x10   : > { %1242 = vmatpush.bf16.msra.mxu3 %v2138_v3  ;;  %v2111_v12 = vld [vmem:[%s2625_s1 + $0x20] sm:$0xff]  ;;  %v2110_v16 = vld [vmem:[%s2625_s1 + $0x18] sm:$0xff]  ;;  %v2109_v20 = vld [vmem:[%s2625_s1 + $0x10] sm:$0xff] }
  0x11   : > { %976 = vmatpush.bf16.msra.mxu0 %v2113_v4  ;;  %v2119_v13 = vld [vmem:[%s2625_s1 + $0x60] sm:$0xff]  ;;  %v2118_v17 = vld [vmem:[%s2625_s1 + $0x58] sm:$0xff]  ;;  %v2117_v21 = vld [vmem:[%s2625_s1 + $0x50] sm:$0xff] }
  0x12   : > { %1065 = vmatpush.bf16.msra.mxu1 %v2121_v5  ;;  %v2127_v14 = vld [vmem:[%s2625_s1 + $0xa0] sm:$0xff]  ;;  %v2126_v18 = vld [vmem:[%s2625_s1 + $0x98] sm:$0xff]  ;;  %v2125_v22 = vld [vmem:[%s2625_s1 + $0x90] sm:$0xff] }
  0x13   : > { %1154 = vmatpush.bf16.msra.mxu2 %v2129_v6  ;;  %v2135_v15 = vld [vmem:[%s2625_s1 + $0xe0] sm:$0xff]  ;;  %v2134_v19 = vld [vmem:[%s2625_s1 + $0xd8] sm:$0xff]  ;;  %v2133_v23 = vld [vmem:[%s2625_s1 + $0xd0] sm:$0xff] }
  0x14   : > { %1243 = vmatpush.bf16.msra.mxu3 %v2137_v7  ;;  %v2108_v24 = vld [vmem:[%s2625_s1 + $0x8] sm:$0xff]  ;;  %v2107_v28 = vld [vmem:[%s2625_s1] sm:$0xff]  ;;  %v2045_v33 = vld [vmem:[%s2408_s12 + $0xc] sm:$0xf0] }
  0x15   : > { %977 = vmatpush.bf16.msra.mxu0 %v2112_v8  ;;  %v2116_v25 = vld [vmem:[%s2625_s1 + $0x48] sm:$0xff]  ;;  %v2115_v29 = vld [vmem:[%s2625_s1 + $0x40] sm:$0xff]  ;;  %v1660_v35 = vld [vmem:[%s2408_s12 + $0x10] sm:$0xf0] }
  0x16   : > { %1066 = vmatpush.bf16.msra.mxu1 %v2120_v9  ;;  %v2124_v26 = vld [vmem:[%s2625_s1 + $0x88] sm:$0xff]  ;;  %v2123_v30 = vld [vmem:[%s2625_s1 + $0x80] sm:$0xff]  ;;  %v2046_v37 = vld [vmem:[%s2408_s12 + $0x14] sm:$0xf0] }
  0x17   : > { %1155 = vmatpush.bf16.msra.mxu2 %v2128_v10  ;;  %v2132_v27 = vld [vmem:[%s2625_s1 + $0xc8] sm:$0xff]  ;;  %v2131_v31 = vld [vmem:[%s2625_s1 + $0xc0] sm:$0xff]  ;;  %v1668_v39 = vld [vmem:[%s2408_s12 + $0x18] sm:$0xf0] }
  0x18   : > { %1244 = vmatpush.bf16.msra.mxu3 %v2136_v11  ;;  %v1658_v32 = vld [vmem:[%s2408_s12] sm:$0xf]  ;;  %v2043_v34 = vld [vmem:[%s2408_s12 + $0x4] sm:$0xf]  ;;  %v1666_v36 = vld [vmem:[%s2408_s12 + $0x8] sm:$0xf] }
  0x19   : > { %978 = vmatpush.bf16.msra.mxu0 %v2111_v12  ;;  %v2044_v38 = vld [vmem:[%s2408_s12 + $0xc] sm:$0xf]  ;;  %v1659_v40 = vor.u32 %v2045_v33, %v1658_v32  ;;  %v1663_v41 = vor.u32 %v2043_v34, %v1660_v35  ;;  %v1667_v42 = vor.u32 %v2046_v37, %v1666_v36  ;;  %v1674_v44 = vld [vmem:[%s2408_s12 + $0x20] sm:$0xf]  ;;  %v2049_v45 = vld [vmem:[%s2408_s12 + $0x2c] sm:$0xf0] }
  0x1a   : > { %1067 = vmatpush.bf16.msra.mxu1 %v2119_v13  ;;  %v1671_v43 = vor.u32 %v2044_v38, %v1668_v39  ;;  %v2047_v46 = vld [vmem:[%s2408_s12 + $0x24] sm:$0xf]  ;;  %v1676_v47 = vld [vmem:[%s2408_s12 + $0x30] sm:$0xf0]  ;;  %v1682_v48 = vld [vmem:[%s2408_s12 + $0x28] sm:$0xf]  ;;  %v1675_v52 = vor.u32 %v2049_v45, %v1674_v44 }
  0x1b   : > { %1156 = vmatpush.bf16.msra.mxu2 %v2127_v14  ;;  %v2050_v49 = vld [vmem:[%s2408_s12 + $0x34] sm:$0xf0]  ;;  %v2048_v50 = vld [vmem:[%s2408_s12 + $0x2c] sm:$0xf]  ;;  %v1684_v51 = vld [vmem:[%s2408_s12 + $0x38] sm:$0xf0]  ;;  %v1679_v53 = vor.u32 %v2047_v46, %v1676_v47 }
  0x1c   : > { %1245 = vmatpush.bf16.msra.mxu3 %v2135_v15  ;;  %v1683_v54 = vor.u32 %v2050_v49, %v1682_v48  ;;  %v1687_v55 = vor.u32 %v2048_v50, %v1684_v51  ;;  %v1690_v56 = vld [vmem:[%s2408_s12 + $0x40] sm:$0xf]  ;;  %v2053_v57 = vld [vmem:[%s2408_s12 + $0x4c] sm:$0xf0]  ;;  %v2051_v58 = vld [vmem:[%s2408_s12 + $0x44] sm:$0xf] }
  0x1d   : > { %979 = vmatpush.bf16.msra.mxu0 %v2110_v16  ;;  %v1692_v59 = vld [vmem:[%s2408_s12 + $0x50] sm:$0xf0]  ;;  %v1698_v60 = vld [vmem:[%s2408_s12 + $0x48] sm:$0xf]  ;;  %v2054_v61 = vld [vmem:[%s2408_s12 + $0x54] sm:$0xf0]  ;;  %v1691_v0 = vor.u32 %v2053_v57, %v1690_v56 }
  0x1e   : > { %1068 = vmatpush.bf16.msra.mxu1 %v2118_v17  ;;  %v2052_v62 = vld [vmem:[%s2408_s12 + $0x4c] sm:$0xf]  ;;  %v1700_v63 = vld [vmem:[%s2408_s12 + $0x58] sm:$0xf0]  ;;  %v1695_v1 = vor.u32 %v2051_v58, %v1692_v59  ;;  %v1699_v2 = vor.u32 %v2054_v61, %v1698_v60  ;;  %v1706_v4 = vld [vmem:[%s2408_s12 + $0x60] sm:$0xf] }
  0x1f   : > { %1157 = vmatpush.bf16.msra.mxu2 %v2126_v18  ;;  %v1703_v3 = vor.u32 %v2052_v62, %v1700_v63  ;;  %v2057_v5 = vld [vmem:[%s2408_s12 + $0x6c] sm:$0xf0]  ;;  %v2055_v6 = vld [vmem:[%s2408_s12 + $0x64] sm:$0xf]  ;;  %v1708_v7 = vld [vmem:[%s2408_s12 + $0x70] sm:$0xf0] }
  0x20   : > { %1246 = vmatpush.bf16.msra.mxu3 %v2134_v19  ;;  %v1714_v8 = vld [vmem:[%s2408_s12 + $0x68] sm:$0xf]  ;;  %v2058_v9 = vld [vmem:[%s2408_s12 + $0x74] sm:$0xf0]  ;;  %v2056_v10 = vld [vmem:[%s2408_s12 + $0x6c] sm:$0xf]  ;;  %v1707_v12 = vor.u32 %v2057_v5, %v1706_v4  ;;  %v1711_v13 = vor.u32 %v2055_v6, %v1708_v7 }
  0x21   : > { %980 = vmatpush.bf16.msra.mxu0 %v2109_v20  ;;  %v1716_v11 = vld [vmem:[%s2408_s12 + $0x78] sm:$0xf0]  ;;  %v1715_v14 = vor.u32 %v2058_v9, %v1714_v8  ;;  %v1722_v16 = vld [vmem:[%s2408_s12 + $0x80] sm:$0xf]  ;;  %v2061_v17 = vld [vmem:[%s2408_s12 + $0x8c] sm:$0xf0] }
  0x22   : > { %1069 = vmatpush.bf16.msra.mxu1 %v2117_v21  ;;  %v1719_v15 = vor.u32 %v2056_v10, %v1716_v11  ;;  %v2059_v18 = vld [vmem:[%s2408_s12 + $0x84] sm:$0xf]  ;;  %v1724_v19 = vld [vmem:[%s2408_s12 + $0x90] sm:$0xf0]  ;;  %v1730_v20 = vld [vmem:[%s2408_s12 + $0x88] sm:$0xf] }
  0x23   : > { %1158 = vmatpush.bf16.msra.mxu2 %v2125_v22  ;;  %v2062_v21 = vld [vmem:[%s2408_s12 + $0x94] sm:$0xf0]  ;;  %v2060_v22 = vld [vmem:[%s2408_s12 + $0x8c] sm:$0xf]  ;;  %v1746_v32 = vld [vmem:[%s2408_s12 + $0xa8] sm:$0xf] }
  0x24   : > { %1247 = vmatpush.bf16.msra.mxu3 %v2133_v23  ;;  %v1732_v23 = vld [vmem:[%s2408_s12 + $0x98] sm:$0xf0]  ;;  %v2066_v33 = vld [vmem:[%s2408_s12 + $0xb4] sm:$0xf0]  ;;  %v2064_v34 = vld [vmem:[%s2408_s12 + $0xac] sm:$0xf] }
  0x25   : > { %981 = vmatpush.bf16.msra.mxu0 %v2108_v24  ;;  %v1723_v24 = vor.u32 %v2061_v17, %v1722_v16  ;;  %v1748_v35 = vld [vmem:[%s2408_s12 + $0xb8] sm:$0xf0]  ;;  %v1747_v38 = vor.u32 %v2066_v33, %v1746_v32  ;;  %v1762_v44 = vld [vmem:[%s2408_s12 + $0xc8] sm:$0xf]  ;;  %v2070_v45 = vld [vmem:[%s2408_s12 + $0xd4] sm:$0xf0] }
  0x26   : > { %1070 = vmatpush.bf16.msra.mxu1 %v2116_v25  ;;  %v1727_v25 = vor.u32 %v2059_v18, %v1724_v19  ;;  %v1751_v39 = vor.u32 %v2064_v34, %v1748_v35  ;;  %v2068_v46 = vld [vmem:[%s2408_s12 + $0xcc] sm:$0xf]  ;;  %v1764_v47 = vld [vmem:[%s2408_s12 + $0xd8] sm:$0xf0]  ;;  %v1763_v50 = vor.u32 %v2070_v45, %v1762_v44  ;;  %v1778_v56 = vld [vmem:[%s2408_s12 + $0xe8] sm:$0xf] }
  0x27   : > { %1159 = vmatpush.bf16.msra.mxu2 %v2124_v26  ;;  %v1731_v26 = vor.u32 %v2062_v21, %v1730_v20  ;;  %v1767_v51 = vor.u32 %v2068_v46, %v1764_v47  ;;  %v2074_v57 = vld [vmem:[%s2408_s12 + $0xf4] sm:$0xf0]  ;;  %v2072_v58 = vld [vmem:[%s2408_s12 + $0xec] sm:$0xf]  ;;  %v1780_v59 = vld [vmem:[%s2408_s12 + $0xf8] sm:$0xf0] }
  0x28   : > { %1248 = vmatpush.bf16.msra.mxu3 %v2132_v27  ;;  %v1735_v27 = vor.u32 %v2060_v22, %v1732_v23  ;;  %v1779_v62 = vor.u32 %v2074_v57, %v1778_v56  ;;  %v1783_v63 = vor.u32 %v2072_v58, %v1780_v59  ;;  %v1794_v4 = vld [vmem:[%s2408_s12 + $0x108] sm:$0xf]  ;;  %v2078_v5 = vld [vmem:[%s2408_s12 + $0x114] sm:$0xf0]  ;;  %v2076_v6 = vld [vmem:[%s2408_s12 + $0x10c] sm:$0xf] }
  0x29   : > { %982 = vmatpush.bf16.msra.mxu0 %v2107_v28  ;;  %v1738_v28 = vld [vmem:[%s2408_s12 + $0xa0] sm:$0xf]  ;;  %v1796_v7 = vld [vmem:[%s2408_s12 + $0x118] sm:$0xf0]  ;;  %v2081_v20 = vld [vmem:[%s2408_s12 + $0x12c] sm:$0xf0] }
  0x2a   : > { %1071 = vmatpush.bf16.msra.mxu1 %v2115_v29  ;;  %v2065_v29 = vld [vmem:[%s2408_s12 + $0xac] sm:$0xf0]  ;;  %v1802_v19 = vld [vmem:[%s2408_s12 + $0x120] sm:$0xf]  ;;  %v2079_v22 = vld [vmem:[%s2408_s12 + $0x124] sm:$0xf] }
  0x2b   : > { %1160 = vmatpush.bf16.msra.mxu2 %v2123_v30  ;;  %v2063_v30 = vld [vmem:[%s2408_s12 + $0xa4] sm:$0xf]  ;;  %v1739_v36 = vor.u32 %v2065_v29, %v1738_v28  ;;  %v1804_v23 = vld [vmem:[%s2408_s12 + $0x130] sm:$0xf0]  ;;  %v2511_v34 = vld [vmem:[%s2626_s2] ss:$0 sm:$0xff] }
  0x2c   : > { %1249 = vmatpush.bf16.msra.mxu3 %v2131_v31  ;;  %983 = vmatmul.bf16.vlgmr.msra.gmra.mxu0 %v1659_v40  ;;  %v1740_v31 = vld [vmem:[%s2408_s12 + $0xb0] sm:$0xf0]  ;;  %v1754_v40 = vld [vmem:[%s2408_s12 + $0xc0] sm:$0xf]  ;;  %v1807_v32 = vor.u32 %v2079_v22, %v1804_v23  ;;  %v2084_v56 = vld [vmem:[%s2408_s12 + $0x14c] sm:$0xf] }
  0x2d   : > { %1072 = vmatmul.bf16.vlgmr.msra.gmra.mxu1 %v1663_v41  ;;  %v1743_v37 = vor.u32 %v2063_v30, %v1740_v31  ;;  %v2069_v41 = vld [vmem:[%s2408_s12 + $0xcc] sm:$0xf0]  ;;  %v1803_v31 = vor.u32 %v2081_v20, %v1802_v19  ;;  %v1828_v57 = vld [vmem:[%s2408_s12 + $0x158] sm:$0xf0]  ;;  %v1842_v19 = vld [vmem:[%s2408_s12 + $0x168] sm:$0xf] }
  0x2e   : > { %1161 = vmatmul.bf16.vlgmr.msra.gmra.mxu2 %v1667_v42  ;;  %v2067_v42 = vld [vmem:[%s2408_s12 + $0xc4] sm:$0xf]  ;;  %v1755_v48 = vor.u32 %v2069_v41, %v1754_v40  ;;  %v2090_v20 = vld [vmem:[%s2408_s12 + $0x174] sm:$0xf0]  ;;  %v1844_v22 = vld [vmem:[%s2408_s12 + $0x178] sm:$0xf0] }
  0x2f   : > { %1250 = vmatmul.bf16.vlgmr.msra.gmra.mxu3 %v1671_v43  ;;  %v1756_v43 = vld [vmem:[%s2408_s12 + $0xd0] sm:$0xf0] }
  0x30   : > { %v1759_v49 = vor.u32 %v2067_v42, %v1756_v43 }
  0x3c   : > { %988 = vmatmul.bf16.gmra.mxu0 %v1675_v52  ;;  %v1770_v52 = vld [vmem:[%s2408_s12 + $0xe0] sm:$0xf] }
  0x3d   : > { %1077 = vmatmul.bf16.gmra.mxu1 %v1679_v53  ;;  %v2073_v53 = vld [vmem:[%s2408_s12 + $0xec] sm:$0xf0] }
  0x3e   : > { %1166 = vmatmul.bf16.gmra.mxu2 %v1683_v54  ;;  %v2071_v54 = vld [vmem:[%s2408_s12 + $0xe4] sm:$0xf]  ;;  %v1771_v60 = vor.u32 %v2073_v53, %v1770_v52  ;;  %v1820_v53 = vld [vmem:[%s2408_s12 + $0x150] sm:$0xf0] }
  0x3f   : > { %1255 = vmatmul.bf16.gmra.mxu3 %v1687_v55  ;;  %v1772_v55 = vld [vmem:[%s2408_s12 + $0xf0] sm:$0xf0]  ;;  %v2083_v52 = vld [vmem:[%s2408_s12 + $0x144] sm:$0xf] }
  0x40   : > { %v1775_v61 = vor.u32 %v2071_v54, %v1772_v55  ;;  %v1826_v54 = vld [vmem:[%s2408_s12 + $0x148] sm:$0xf]  ;;  %v2086_v55 = vld [vmem:[%s2408_s12 + $0x154] sm:$0xf0] }
  0x4c   : > { %993 = vmatmul.bf16.gmra.mxu0 %v1691_v0  ;;  %v1786_v0 = vld [vmem:[%s2408_s12 + $0x100] sm:$0xf] }
  0x4d   : > { %1082 = vmatmul.bf16.gmra.mxu1 %v1695_v1  ;;  %v2077_v1 = vld [vmem:[%s2408_s12 + $0x10c] sm:$0xf0] }
  0x4e   : > { %1171 = vmatmul.bf16.gmra.mxu2 %v1699_v2  ;;  %v2075_v2 = vld [vmem:[%s2408_s12 + $0x104] sm:$0xf]  ;;  %v1787_v8 = vor.u32 %v2077_v1, %v1786_v0 }
  0x4f   : > { %1260 = vmatmul.bf16.gmra.mxu3 %v1703_v3  ;;  %v1788_v3 = vld [vmem:[%s2408_s12 + $0x110] sm:$0xf0] }
  0x50   : > { %v1791_v9 = vor.u32 %v2075_v2, %v1788_v3  ;;  %v1827_v3 = vor.u32 %v2086_v55, %v1826_v54 }
  0x5c   : > { %998 = vmatmul.bf16.gmra.mxu0 %v1707_v12  ;;  %v1795_v12 = vor.u32 %v2078_v5, %v1794_v4  ;;  %v1831_v4 = vor.u32 %v2084_v56, %v1828_v57 }
  0x5d   : > { %1087 = vmatmul.bf16.gmra.mxu1 %v1711_v13  ;;  %v1799_v13 = vor.u32 %v2076_v6, %v1796_v7 }
  0x5e   : > { %1176 = vmatmul.bf16.gmra.mxu2 %v1715_v14 }
  0x5f   : > { %1265 = vmatmul.bf16.gmra.mxu3 %v1719_v15 }
  0x6c   : > { %1003 = vmatmul.bf16.gmra.mxu0 %v1723_v24  ;;  %v1810_v24 = vld [vmem:[%s2408_s12 + $0x128] sm:$0xf] }
  0x6d   : > { %1092 = vmatmul.bf16.gmra.mxu1 %v1727_v25  ;;  %v2082_v25 = vld [vmem:[%s2408_s12 + $0x134] sm:$0xf0] }
  0x6e   : > { %1181 = vmatmul.bf16.gmra.mxu2 %v1731_v26  ;;  %v2080_v26 = vld [vmem:[%s2408_s12 + $0x12c] sm:$0xf] }
  0x6f   : > { %1270 = vmatmul.bf16.gmra.mxu3 %v1735_v27  ;;  %v1812_v27 = vld [vmem:[%s2408_s12 + $0x138] sm:$0xf0] }
  0x7c   : > { %1008 = vmatmul.bf16.gmra.mxu0 %v1739_v36 }
  0x7d   : > { %1097 = vmatmul.bf16.gmra.mxu1 %v1743_v37 }
  0x7e   : > { %1186 = vmatmul.bf16.gmra.mxu2 %v1747_v38  ;;  %v1811_v38 = vor.u32 %v2082_v25, %v1810_v24 }
  0x7f   : > { %1275 = vmatmul.bf16.gmra.mxu3 %v1751_v39  ;;  %v1815_v39 = vor.u32 %v2080_v26, %v1812_v27 }
  0x8c   : > { %1013 = vmatmul.bf16.gmra.mxu0 %v1755_v48 }
  0x8d   : > { %1102 = vmatmul.bf16.gmra.mxu1 %v1759_v49  ;;  %v1818_v49 = vld [vmem:[%s2408_s12 + $0x140] sm:$0xf] }
  0x8e   : > { %1191 = vmatmul.bf16.gmra.mxu2 %v1763_v50  ;;  %v2085_v50 = vld [vmem:[%s2408_s12 + $0x14c] sm:$0xf0] }
  0x8f   : > { %1280 = vmatmul.bf16.gmra.mxu3 %v1767_v51 }
  0x9c   : > { %1018 = vmatmul.bf16.gmra.mxu0 %v1771_v60 }
  0x9d   : > { %1107 = vmatmul.bf16.gmra.mxu1 %v1775_v61  ;;  %v1819_v61 = vor.u32 %v2085_v50, %v1818_v49  ;;  %v1858_v49 = vld [vmem:[%s2408_s12 + $0x188] sm:$0xf]  ;;  %v2094_v50 = vld [vmem:[%s2408_s12 + $0x194] sm:$0xf0] }
  0x9e   : > { %1196 = vmatmul.bf16.gmra.mxu2 %v1779_v62  ;;  %v1823_v62 = vor.u32 %v2083_v52, %v1820_v53  ;;  %v1860_v52 = vld [vmem:[%s2408_s12 + $0x198] sm:$0xf0] }
  0x9f   : > { %1285 = vmatmul.bf16.gmra.mxu3 %v1783_v63 }
  0xa9   : > { %v984_v10 = vpop.f32.mrf.mxu0 }
  0xaa   : > { %v1073_v11 = vpop.f32.mrf.mxu1 }
  0xab   : > { %v1074_v16 = vadd.f32 %v1073_v11, %v984_v10 }
  0xac   : > { %1023 = vmatmul.bf16.gmra.mxu0 %v1787_v8 }
  0xad   : > { %1112 = vmatmul.bf16.gmra.mxu1 %v1791_v9 }
  0xae   : > { %1201 = vmatmul.bf16.gmra.mxu2 %v1795_v12 }
  0xaf   : > { %1290 = vmatmul.bf16.gmra.mxu3 %v1799_v13 }
  0xb1   : > { %v1162_v14 = vpop.f32.mrf.mxu2  ;;  %v986_v17 = vpop.f32.mrf.mxu0 }
  0xb2   : > { %v1251_v15 = vpop.f32.mrf.mxu3  ;;  %v1075_v18 = vpop.f32.mrf.mxu1  ;;  %v1163_v21 = vadd.f32 %v1162_v14, %v1074_v16  ;;  %v1834_v14 = vld [vmem:[%s2408_s12 + $0x160] sm:$0xf] }
  0xb3   : > { %v1076_v28 = vadd.f32 %v1075_v18, %v986_v17  ;;  %v2087_v17 = vld [vmem:[%s2408_s12 + $0x164] sm:$0xf]  ;;  %v1836_v18 = vld [vmem:[%s2408_s12 + $0x170] sm:$0xf0] }
  0xb4   : > { %v1252_v33 = vadd.f32 %v1251_v15, %v1163_v21  ;;  %v2089_v15 = vld [vmem:[%s2408_s12 + $0x16c] sm:$0xf0]  ;;  %v2088_v21 = vld [vmem:[%s2408_s12 + $0x16c] sm:$0xf]  ;;  %v1839_v27 = vor.u32 %v2087_v17, %v1836_v18  ;;  %v1876_v17 = vld [vmem:[%s2408_s12 + $0x1b8] sm:$0xf0] }
  0xb5   : > { %v1835_v26 = vor.u32 %v2089_v15, %v1834_v14  ;;  %v1874_v14 = vld [vmem:[%s2408_s12 + $0x1a8] sm:$0xf]  ;;  %v2098_v15 = vld [vmem:[%s2408_s12 + $0x1b4] sm:$0xf0] }
  0xb6   : > { %v1434_v41 = vadd.f32 %v2511_v34, %v1252_v33  ;;  %v1847_v33 = vor.u32 %v2088_v21, %v1844_v22 }
  0xb9   : > { %v1164_v29 = vpop.f32.mrf.mxu2  ;;  %v989_v36 = vpop.f32.mrf.mxu0 }
  0xba   : > { %v1253_v30 = vpop.f32.mrf.mxu3  ;;  %v1165_v35 = vadd.f32 %v1164_v29, %v1076_v28  ;;  %v1078_v37 = vpop.f32.mrf.mxu1 }
  0xbb   : > { %v1079_v46 = vadd.f32 %v1078_v37, %v989_v36 }
  0xbc   : > { %v1254_v40 = vadd.f32 %v1253_v30, %v1165_v35  ;;  %1028 = vmatmul.bf16.gmra.mxu0 %v1803_v31 }
  0xbd   : > { %1117 = vmatmul.bf16.gmra.mxu1 %v1807_v32  ;;  %v1843_v32 = vor.u32 %v2090_v20, %v1842_v19 }
  0xbe   : > { %v1435_v42 = vadd.f32 %v2511_v34, %v1254_v40  ;;  %1206 = vmatmul.bf16.gmra.mxu2 %v1811_v38 }
  0xbf   : > { %1295 = vmatmul.bf16.gmra.mxu3 %v1815_v39 }
  0xc0   : > { %v2142_v43 = vpack.c.bf16 %v1435_v42, %v1434_v41 }
  0xc1   : > { %v1167_v44 = vpop.f32.mrf.mxu2  ;;  %v991_v47 = vpop.f32.mrf.mxu0 }
  0xc2   : > { %v1256_v45 = vpop.f32.mrf.mxu3  ;;  %2143 = vst [vmem:[%s2519_s17] sm:$0xff] %v2142_v43   ;;  %v1080_v48 = vpop.f32.mrf.mxu1  ;;  %v1168_v51 = vadd.f32 %v1167_v44, %v1079_v46  ;;  %v1850_v44 = vld [vmem:[%s2408_s12 + $0x180] sm:$0xf] }
  0xc3   : > { %v1081_v58 = vadd.f32 %v1080_v48, %v991_v47  ;;  %v2091_v47 = vld [vmem:[%s2408_s12 + $0x184] sm:$0xf]  ;;  %v1852_v48 = vld [vmem:[%s2408_s12 + $0x190] sm:$0xf0] }
  0xc4   : > { %v1257_v63 = vadd.f32 %v1256_v45, %v1168_v51  ;;  %v2093_v45 = vld [vmem:[%s2408_s12 + $0x18c] sm:$0xf0]  ;;  %v2092_v51 = vld [vmem:[%s2408_s12 + $0x18c] sm:$0xf]  ;;  %v1855_v57 = vor.u32 %v2091_v47, %v1852_v48  ;;  %v1892_v47 = vld [vmem:[%s2408_s12 + $0x1d8] sm:$0xf0] }
  0xc5   : > { %v1851_v56 = vor.u32 %v2093_v45, %v1850_v44  ;;  %v1890_v44 = vld [vmem:[%s2408_s12 + $0x1c8] sm:$0xf]  ;;  %v2102_v45 = vld [vmem:[%s2408_s12 + $0x1d4] sm:$0xf0] }
  0xc6   : > { %v1436_v6 = vadd.f32 %v2511_v34, %v1257_v63  ;;  %v1863_v63 = vor.u32 %v2092_v51, %v1860_v52 }
  0xc9   : > { %v1169_v59 = vpop.f32.mrf.mxu2  ;;  %v994_v1 = vpop.f32.mrf.mxu0 }
  0xca   : > { %v1258_v60 = vpop.f32.mrf.mxu3  ;;  %v1170_v0 = vadd.f32 %v1169_v59, %v1081_v58  ;;  %v1083_v2 = vpop.f32.mrf.mxu1 }
  0xcb   : > { %v1084_v11 = vadd.f32 %v1083_v2, %v994_v1 }
  0xcc   : > { %v1259_v5 = vadd.f32 %v1258_v60, %v1170_v0  ;;  %1033 = vmatmul.bf16.gmra.mxu0 %v1819_v61 }
  0xcd   : > { %1122 = vmatmul.bf16.gmra.mxu1 %v1823_v62  ;;  %v1859_v62 = vor.u32 %v2094_v50, %v1858_v49 }
  0xce   : > { %v1437_v7 = vadd.f32 %v2511_v34, %v1259_v5  ;;  %1211 = vmatmul.bf16.gmra.mxu2 %v1827_v3 }
  0xcf   : > { %1300 = vmatmul.bf16.gmra.mxu3 %v1831_v4 }
  0xd0   : > { %v2147_v8 = vpack.c.bf16 %v1437_v7, %v1436_v6 }
  0xd1   : > { %v1172_v9 = vpop.f32.mrf.mxu2  ;;  %v996_v12 = vpop.f32.mrf.mxu0 }
  0xd2   : > { %v1261_v10 = vpop.f32.mrf.mxu3  ;;  %2219 = vst [vmem:[%s2519_s17 + $0x8] sm:$0xff] %v2147_v8   ;;  %v1085_v13 = vpop.f32.mrf.mxu1  ;;  %v1173_v16 = vadd.f32 %v1172_v9, %v1084_v11  ;;  %v1866_v9 = vld [vmem:[%s2408_s12 + $0x1a0] sm:$0xf] }
  0xd3   : > { %v1086_v23 = vadd.f32 %v1085_v13, %v996_v12  ;;  %v2095_v12 = vld [vmem:[%s2408_s12 + $0x1a4] sm:$0xf]  ;;  %v1868_v13 = vld [vmem:[%s2408_s12 + $0x1b0] sm:$0xf0] }
  0xd4   : > { %v1262_v28 = vadd.f32 %v1261_v10, %v1173_v16  ;;  %v2097_v10 = vld [vmem:[%s2408_s12 + $0x1ac] sm:$0xf0]  ;;  %v2096_v16 = vld [vmem:[%s2408_s12 + $0x1ac] sm:$0xf]  ;;  %v1871_v22 = vor.u32 %v2095_v12, %v1868_v13  ;;  %v1908_v12 = vld [vmem:[%s2408_s12 + $0x1f8] sm:$0xf0] }
  0xd5   : > { %v1867_v21 = vor.u32 %v2097_v10, %v1866_v9  ;;  %v1906_v9 = vld [vmem:[%s2408_s12 + $0x1e8] sm:$0xf]  ;;  %v2106_v10 = vld [vmem:[%s2408_s12 + $0x1f4] sm:$0xf0] }
  0xd6   : > { %v1438_v36 = vadd.f32 %v2511_v34, %v1262_v28  ;;  %v1879_v28 = vor.u32 %v2096_v16, %v1876_v17 }
  0xd9   : > { %v1174_v24 = vpop.f32.mrf.mxu2  ;;  %v999_v30 = vpop.f32.mrf.mxu0 }
  0xda   : > { %v1263_v25 = vpop.f32.mrf.mxu3  ;;  %v1175_v29 = vadd.f32 %v1174_v24, %v1086_v23  ;;  %v1088_v31 = vpop.f32.mrf.mxu1 }
  0xdb   : > { %v1089_v41 = vadd.f32 %v1088_v31, %v999_v30 }
  0xdc   : > { %v1264_v35 = vadd.f32 %v1263_v25, %v1175_v29  ;;  %1038 = vmatmul.bf16.gmra.mxu0 %v1835_v26 }
  0xdd   : > { %1127 = vmatmul.bf16.gmra.mxu1 %v1839_v27  ;;  %v1875_v27 = vor.u32 %v2098_v15, %v1874_v14 }
  0xde   : > { %v1439_v37 = vadd.f32 %v2511_v34, %v1264_v35  ;;  %1216 = vmatmul.bf16.gmra.mxu2 %v1843_v32 }
  0xdf   : > { %1305 = vmatmul.bf16.gmra.mxu3 %v1847_v33 }
  0xe0   : > { %v2152_v38 = vpack.c.bf16 %v1439_v37, %v1438_v36 }
  0xe1   : > { %v1177_v39 = vpop.f32.mrf.mxu2  ;;  %v1001_v42 = vpop.f32.mrf.mxu0 }
  0xe2   : > { %v1266_v40 = vpop.f32.mrf.mxu3  ;;  %2220 = vst [vmem:[%s2519_s17 + $0x10] sm:$0xff] %v2152_v38   ;;  %v1090_v43 = vpop.f32.mrf.mxu1  ;;  %v1178_v46 = vadd.f32 %v1177_v39, %v1089_v41  ;;  %v1882_v39 = vld [vmem:[%s2408_s12 + $0x1c0] sm:$0xf] }
  0xe3   : > { %v1091_v53 = vadd.f32 %v1090_v43, %v1001_v42  ;;  %v2099_v42 = vld [vmem:[%s2408_s12 + $0x1c4] sm:$0xf]  ;;  %v1884_v43 = vld [vmem:[%s2408_s12 + $0x1d0] sm:$0xf0] }
  0xe4   : > { %v1267_v58 = vadd.f32 %v1266_v40, %v1178_v46  ;;  %v2101_v40 = vld [vmem:[%s2408_s12 + $0x1cc] sm:$0xf0]  ;;  %v2100_v46 = vld [vmem:[%s2408_s12 + $0x1cc] sm:$0xf]  ;;  %v1887_v52 = vor.u32 %v2099_v42, %v1884_v43 }
  0xe5   : > { %v1883_v51 = vor.u32 %v2101_v40, %v1882_v39 }
  0xe6   : > { %v1440_v1 = vadd.f32 %v2511_v34, %v1267_v58  ;;  %v1895_v58 = vor.u32 %v2100_v46, %v1892_v47 }
  0xe9   : > { %v1179_v54 = vpop.f32.mrf.mxu2  ;;  %v1004_v60 = vpop.f32.mrf.mxu0 }
  0xea   : > { %v1268_v55 = vpop.f32.mrf.mxu3  ;;  %v1180_v59 = vadd.f32 %v1179_v54, %v1091_v53  ;;  %v1093_v61 = vpop.f32.mrf.mxu1 }
  0xeb   : > { %v1094_v6 = vadd.f32 %v1093_v61, %v1004_v60 }
  0xec   : > { %v1269_v0 = vadd.f32 %v1268_v55, %v1180_v59  ;;  %1043 = vmatmul.bf16.gmra.mxu0 %v1851_v56 }
  0xed   : > { %1132 = vmatmul.bf16.gmra.mxu1 %v1855_v57  ;;  %v1891_v57 = vor.u32 %v2102_v45, %v1890_v44 }
  0xee   : > { %v1441_v2 = vadd.f32 %v2511_v34, %v1269_v0  ;;  %1221 = vmatmul.bf16.gmra.mxu2 %v1859_v62 }
  0xef   : > { %1310 = vmatmul.bf16.gmra.mxu3 %v1863_v63 }
  0xf0   : > { %v2157_v3 = vpack.c.bf16 %v1441_v2, %v1440_v1 }
  0xf1   : > { %v1182_v4 = vpop.f32.mrf.mxu2  ;;  %v1006_v7 = vpop.f32.mrf.mxu0 }
  0xf2   : > { %v1271_v5 = vpop.f32.mrf.mxu3  ;;  %2221 = vst [vmem:[%s2519_s17 + $0x18] sm:$0xff] %v2157_v3   ;;  %v1095_v8 = vpop.f32.mrf.mxu1  ;;  %v1183_v11 = vadd.f32 %v1182_v4, %v1094_v6  ;;  %v1898_v4 = vld [vmem:[%s2408_s12 + $0x1e0] sm:$0xf] }
  0xf3   : > { %v1096_v18 = vadd.f32 %v1095_v8, %v1006_v7  ;;  %v2103_v7 = vld [vmem:[%s2408_s12 + $0x1e4] sm:$0xf]  ;;  %v1900_v8 = vld [vmem:[%s2408_s12 + $0x1f0] sm:$0xf0] }
  0xf4   : > { %v1272_v23 = vadd.f32 %v1271_v5, %v1183_v11  ;;  %v2105_v5 = vld [vmem:[%s2408_s12 + $0x1ec] sm:$0xf0]  ;;  %v2104_v11 = vld [vmem:[%s2408_s12 + $0x1ec] sm:$0xf]  ;;  %v1903_v17 = vor.u32 %v2103_v7, %v1900_v8 }
  0xf5   : > { %v1899_v16 = vor.u32 %v2105_v5, %v1898_v4 }
  0xf6   : > { %v1442_v30 = vadd.f32 %v2511_v34, %v1272_v23  ;;  %v1911_v23 = vor.u32 %v2104_v11, %v1908_v12 }
  0xf9   : > { %v1184_v19 = vpop.f32.mrf.mxu2  ;;  %v1009_v25 = vpop.f32.mrf.mxu0 }
  0xfa   : > { %v1273_v20 = vpop.f32.mrf.mxu3  ;;  %v1185_v24 = vadd.f32 %v1184_v19, %v1096_v18  ;;  %v1098_v26 = vpop.f32.mrf.mxu1 }
  0xfb   : > { %v1099_v36 = vadd.f32 %v1098_v26, %v1009_v25 }
  0xfc   : > { %v1274_v29 = vadd.f32 %v1273_v20, %v1185_v24  ;;  %1048 = vmatmul.bf16.gmra.mxu0 %v1867_v21 }
  0xfd   : > { %1137 = vmatmul.bf16.gmra.mxu1 %v1871_v22  ;;  %v1907_v22 = vor.u32 %v2106_v10, %v1906_v9 }
  0xfe   : > { %v1443_v31 = vadd.f32 %v2511_v34, %v1274_v29  ;;  %1226 = vmatmul.bf16.gmra.mxu2 %v1875_v27 }
  0xff   : > { %1315 = vmatmul.bf16.gmra.mxu3 %v1879_v28 }
 0x100   : > { %v2162_v32 = vpack.c.bf16 %v1443_v31, %v1442_v30 }
 0x101   : > { %v1187_v33 = vpop.f32.mrf.mxu2  ;;  %v1011_v37 = vpop.f32.mrf.mxu0 }
 0x102   : > { %v1276_v35 = vpop.f32.mrf.mxu3  ;;  %2222 = vst [vmem:[%s2519_s17 + $0x20] sm:$0xff] %v2162_v32   ;;  %v1100_v38 = vpop.f32.mrf.mxu1  ;;  %v1188_v41 = vadd.f32 %v1187_v33, %v1099_v36 }
 0x103   : > { %v1101_v48 = vadd.f32 %v1100_v38, %v1011_v37 }
 0x104   : > { %v1277_v53 = vadd.f32 %v1276_v35, %v1188_v41 }
 0x106   : > { %v1444_v60 = vadd.f32 %v2511_v34, %v1277_v53 }
 0x109   : > { %v1189_v49 = vpop.f32.mrf.mxu2  ;;  %v1014_v55 = vpop.f32.mrf.mxu0 }
 0x10a   : > { %v1278_v50 = vpop.f32.mrf.mxu3  ;;  %v1190_v54 = vadd.f32 %v1189_v49, %v1101_v48  ;;  %v1103_v56 = vpop.f32.mrf.mxu1 }
 0x10b   : > { %v1104_v1 = vadd.f32 %v1103_v56, %v1014_v55 }
 0x10c   : > { %v1279_v59 = vadd.f32 %v1278_v50, %v1190_v54  ;;  %1053 = vmatmul.bf16.gmra.mxu0 %v1883_v51 }
 0x10d   : > { %1142 = vmatmul.bf16.gmra.mxu1 %v1887_v52 }
 0x10e   : > { %v1445_v61 = vadd.f32 %v2511_v34, %v1279_v59  ;;  %1231 = vmatmul.bf16.gmra.mxu2 %v1891_v57 }
 0x10f   : > { %1320 = vmatmul.bf16.gmra.mxu3 %v1895_v58 }
 0x110   : > { %v2167_v62 = vpack.c.bf16 %v1445_v61, %v1444_v60 }
 0x111   : > { %v1192_v63 = vpop.f32.mrf.mxu2  ;;  %v1016_v2 = vpop.f32.mrf.mxu0 }
 0x112   : > { %v1281_v0 = vpop.f32.mrf.mxu3  ;;  %2223 = vst [vmem:[%s2519_s17 + $0x28] sm:$0xff] %v2167_v62   ;;  %v1105_v3 = vpop.f32.mrf.mxu1  ;;  %v1193_v6 = vadd.f32 %v1192_v63, %v1104_v1 }
 0x113   : > { %v1106_v13 = vadd.f32 %v1105_v3, %v1016_v2 }
 0x114   : > { %v1282_v18 = vadd.f32 %v1281_v0, %v1193_v6 }
 0x116   : > { %v1446_v25 = vadd.f32 %v2511_v34, %v1282_v18 }
 0x119   : > { %v1194_v14 = vpop.f32.mrf.mxu2  ;;  %v1019_v20 = vpop.f32.mrf.mxu0 }
 0x11a   : > { %v1283_v15 = vpop.f32.mrf.mxu3  ;;  %v1195_v19 = vadd.f32 %v1194_v14, %v1106_v13  ;;  %v1108_v21 = vpop.f32.mrf.mxu1 }
 0x11b   : > { %v1109_v30 = vadd.f32 %v1108_v21, %v1019_v20 }
 0x11c   : > { %v1284_v24 = vadd.f32 %v1283_v15, %v1195_v19  ;;  %1058 = vmatmul.bf16.gmra.mxu0 %v1899_v16 }
 0x11d   : > { %1147 = vmatmul.bf16.gmra.mxu1 %v1903_v17 }
 0x11e   : > { %v1447_v26 = vadd.f32 %v2511_v34, %v1284_v24  ;;  %1236 = vmatmul.bf16.gmra.mxu2 %v1907_v22 }
 0x11f   : > { %1325 = vmatmul.bf16.gmra.mxu3 %v1911_v23 }
 0x120   : > { %v2172_v27 = vpack.c.bf16 %v1447_v26, %v1446_v25 }
 0x121   : > { %v1197_v28 = vpop.f32.mrf.mxu2  ;;  %v1021_v31 = vpop.f32.mrf.mxu0 }
 0x122   : > { %v1286_v29 = vpop.f32.mrf.mxu3  ;;  %2224 = vst [vmem:[%s2519_s17 + $0x30] sm:$0xff] %v2172_v27   ;;  %v1110_v32 = vpop.f32.mrf.mxu1  ;;  %v1198_v33 = vadd.f32 %v1197_v28, %v1109_v30 }
 0x123   : > { %v1111_v35 = vadd.f32 %v1110_v32, %v1021_v31 }
 0x124   : > { %v1287_v38 = vadd.f32 %v1286_v29, %v1198_v33 }
 0x126   : > { %v1448_v43 = vadd.f32 %v2511_v34, %v1287_v38 }
 0x129   : > { %v1199_v36 = vpop.f32.mrf.mxu2  ;;  %v1024_v40 = vpop.f32.mrf.mxu0 }
 0x12a   : > { %v1288_v37 = vpop.f32.mrf.mxu3  ;;  %v1200_v39 = vadd.f32 %v1199_v36, %v1111_v35  ;;  %v1113_v41 = vpop.f32.mrf.mxu1 }
 0x12b   : > { %v1114_v48 = vadd.f32 %v1113_v41, %v1024_v40 }
 0x12c   : > { %v1289_v42 = vadd.f32 %v1288_v37, %v1200_v39 }
 0x12e   : > { %v1449_v44 = vadd.f32 %v2511_v34, %v1289_v42 }
 0x130   : > { %v2177_v45 = vpack.c.bf16 %v1449_v44, %v1448_v43 }
 0x131   : > { %v1202_v46 = vpop.f32.mrf.mxu2  ;;  %v1026_v49 = vpop.f32.mrf.mxu0 }
 0x132   : > { %v1291_v47 = vpop.f32.mrf.mxu3  ;;  %2225 = vst [vmem:[%s2519_s17 + $0x38] sm:$0xff] %v2177_v45   ;;  %v1115_v50 = vpop.f32.mrf.mxu1  ;;  %v1203_v51 = vadd.f32 %v1202_v46, %v1114_v48 }
 0x133   : > { %v1116_v52 = vadd.f32 %v1115_v50, %v1026_v49 }
 0x134   : > { %v1292_v55 = vadd.f32 %v1291_v47, %v1203_v51 }
 0x136   : > { %v1450_v60 = vadd.f32 %v2511_v34, %v1292_v55 }
 0x139   : > { %v1204_v53 = vpop.f32.mrf.mxu2  ;;  %v1029_v57 = vpop.f32.mrf.mxu0 }
 0x13a   : > { %v1293_v54 = vpop.f32.mrf.mxu3  ;;  %v1205_v56 = vadd.f32 %v1204_v53, %v1116_v52  ;;  %v1118_v58 = vpop.f32.mrf.mxu1 }
 0x13b   : > { %v1119_v1 = vadd.f32 %v1118_v58, %v1029_v57 }
 0x13c   : > { %v1294_v59 = vadd.f32 %v1293_v54, %v1205_v56 }
 0x13e   : > { %v1451_v61 = vadd.f32 %v2511_v34, %v1294_v59 }
 0x140   : > { %v2182_v62 = vpack.c.bf16 %v1451_v61, %v1450_v60 }
 0x141   : > { %v1207_v63 = vpop.f32.mrf.mxu2  ;;  %v1031_v2 = vpop.f32.mrf.mxu0 }
 0x142   : > { %v1296_v0 = vpop.f32.mrf.mxu3  ;;  %2226 = vst [vmem:[%s2519_s17 + $0x40] sm:$0xff] %v2182_v62   ;;  %v1120_v3 = vpop.f32.mrf.mxu1  ;;  %v1208_v4 = vadd.f32 %v1207_v63, %v1119_v1 }
 0x143   : > { %v1121_v5 = vadd.f32 %v1120_v3, %v1031_v2 }
 0x144   : > { %v1297_v8 = vadd.f32 %v1296_v0, %v1208_v4 }
 0x146   : > { %v1452_v13 = vadd.f32 %v2511_v34, %v1297_v8 }
 0x149   : > { %v1209_v6 = vpop.f32.mrf.mxu2  ;;  %v1034_v10 = vpop.f32.mrf.mxu0 }
 0x14a   : > { %v1298_v7 = vpop.f32.mrf.mxu3  ;;  %v1210_v9 = vadd.f32 %v1209_v6, %v1121_v5  ;;  %v1123_v11 = vpop.f32.mrf.mxu1 }
 0x14b   : > { %v1124_v18 = vadd.f32 %v1123_v11, %v1034_v10 }
 0x14c   : > { %v1299_v12 = vadd.f32 %v1298_v7, %v1210_v9 }
 0x14e   : > { %v1453_v14 = vadd.f32 %v2511_v34, %v1299_v12 }
 0x150   : > { %v2187_v15 = vpack.c.bf16 %v1453_v14, %v1452_v13 }
 0x151   : > { %v1212_v16 = vpop.f32.mrf.mxu2  ;;  %v1036_v19 = vpop.f32.mrf.mxu0 }
 0x152   : > { %v1301_v17 = vpop.f32.mrf.mxu3  ;;  %2227 = vst [vmem:[%s2519_s17 + $0x48] sm:$0xff] %v2187_v15   ;;  %v1125_v20 = vpop.f32.mrf.mxu1  ;;  %v1213_v21 = vadd.f32 %v1212_v16, %v1124_v18 }
 0x153   : > { %v1126_v22 = vadd.f32 %v1125_v20, %v1036_v19 }
 0x154   : > { %v1302_v25 = vadd.f32 %v1301_v17, %v1213_v21 }
 0x156   : > { %v1454_v30 = vadd.f32 %v2511_v34, %v1302_v25 }
 0x159   : > { %v1214_v23 = vpop.f32.mrf.mxu2  ;;  %v1039_v27 = vpop.f32.mrf.mxu0 }
 0x15a   : > { %v1303_v24 = vpop.f32.mrf.mxu3  ;;  %v1215_v26 = vadd.f32 %v1214_v23, %v1126_v22  ;;  %v1128_v28 = vpop.f32.mrf.mxu1 }
 0x15b   : > { %v1129_v36 = vadd.f32 %v1128_v28, %v1039_v27 }
 0x15c   : > { %v1304_v29 = vadd.f32 %v1303_v24, %v1215_v26 }
 0x15e   : > { %v1455_v31 = vadd.f32 %v2511_v34, %v1304_v29 }
 0x160   : > { %v2192_v32 = vpack.c.bf16 %v1455_v31, %v1454_v30 }
 0x161   : > { %v1217_v33 = vpop.f32.mrf.mxu2  ;;  %v1041_v37 = vpop.f32.mrf.mxu0 }
 0x162   : > { %v1306_v35 = vpop.f32.mrf.mxu3  ;;  %2228 = vst [vmem:[%s2519_s17 + $0x50] sm:$0xff] %v2192_v32   ;;  %v1130_v38 = vpop.f32.mrf.mxu1  ;;  %v1218_v39 = vadd.f32 %v1217_v33, %v1129_v36 }
 0x163   : > { %v1131_v40 = vadd.f32 %v1130_v38, %v1041_v37 }
 0x164   : > { %v1307_v43 = vadd.f32 %v1306_v35, %v1218_v39 }
 0x166   : > { %v1456_v48 = vadd.f32 %v2511_v34, %v1307_v43 }
 0x169   : > { %v1219_v41 = vpop.f32.mrf.mxu2  ;;  %v1044_v45 = vpop.f32.mrf.mxu0 }
 0x16a   : > { %v1308_v42 = vpop.f32.mrf.mxu3  ;;  %v1220_v44 = vadd.f32 %v1219_v41, %v1131_v40  ;;  %v1133_v46 = vpop.f32.mrf.mxu1 }
 0x16b   : > { %v1134_v53 = vadd.f32 %v1133_v46, %v1044_v45 }
 0x16c   : > { %v1309_v47 = vadd.f32 %v1308_v42, %v1220_v44 }
 0x16e   : > { %v1457_v49 = vadd.f32 %v2511_v34, %v1309_v47 }
 0x170   : > { %v2197_v50 = vpack.c.bf16 %v1457_v49, %v1456_v48 }
 0x171   : > { %v1222_v51 = vpop.f32.mrf.mxu2  ;;  %v1046_v54 = vpop.f32.mrf.mxu0 }
 0x172   : > { %v1311_v52 = vpop.f32.mrf.mxu3  ;;  %2229 = vst [vmem:[%s2519_s17 + $0x58] sm:$0xff] %v2197_v50   ;;  %v1135_v55 = vpop.f32.mrf.mxu1  ;;  %v1223_v56 = vadd.f32 %v1222_v51, %v1134_v53 }
 0x173   : > { %v1136_v57 = vadd.f32 %v1135_v55, %v1046_v54 }
 0x174   : > { %v1312_v60 = vadd.f32 %v1311_v52, %v1223_v56 }
 0x176   : > { %v1458_v1 = vadd.f32 %v2511_v34, %v1312_v60 }
 0x179   : > { %v1224_v58 = vpop.f32.mrf.mxu2  ;;  %v1049_v62 = vpop.f32.mrf.mxu0 }
 0x17a   : > { %v1313_v59 = vpop.f32.mrf.mxu3  ;;  %v1225_v61 = vadd.f32 %v1224_v58, %v1136_v57  ;;  %v1138_v63 = vpop.f32.mrf.mxu1 }
 0x17b   : > { %v1139_v6 = vadd.f32 %v1138_v63, %v1049_v62 }
 0x17c   : > { %v1314_v0 = vadd.f32 %v1313_v59, %v1225_v61 }
 0x17e   : > { %v1459_v2 = vadd.f32 %v2511_v34, %v1314_v0 }
 0x180   : > { %v2202_v3 = vpack.c.bf16 %v1459_v2, %v1458_v1 }
 0x181   : > { %v1227_v4 = vpop.f32.mrf.mxu2  ;;  %v1051_v7 = vpop.f32.mrf.mxu0 }
 0x182   : > { %v1316_v5 = vpop.f32.mrf.mxu3  ;;  %2230 = vst [vmem:[%s2519_s17 + $0x60] sm:$0xff] %v2202_v3   ;;  %v1140_v8 = vpop.f32.mrf.mxu1  ;;  %v1228_v9 = vadd.f32 %v1227_v4, %v1139_v6 }
 0x183   : > { %v1141_v10 = vadd.f32 %v1140_v8, %v1051_v7 }
 0x184   : > { %v1317_v13 = vadd.f32 %v1316_v5, %v1228_v9 }
 0x186   : > { %v1460_v18 = vadd.f32 %v2511_v34, %v1317_v13 }
 0x189   : > { %v1229_v11 = vpop.f32.mrf.mxu2  ;;  %v1054_v15 = vpop.f32.mrf.mxu0 }
 0x18a   : > { %v1318_v12 = vpop.f32.mrf.mxu3  ;;  %v1230_v14 = vadd.f32 %v1229_v11, %v1141_v10  ;;  %v1143_v16 = vpop.f32.mrf.mxu1 }
 0x18b   : > { %v1144_v23 = vadd.f32 %v1143_v16, %v1054_v15 }
 0x18c   : > { %v1319_v17 = vadd.f32 %v1318_v12, %v1230_v14 }
 0x18e   : > { %v1461_v19 = vadd.f32 %v2511_v34, %v1319_v17 }
 0x190   : > { %v2207_v20 = vpack.c.bf16 %v1461_v19, %v1460_v18 }
 0x191   : > { %v1232_v21 = vpop.f32.mrf.mxu2  ;;  %v1056_v24 = vpop.f32.mrf.mxu0 }
 0x192   : > { %v1321_v22 = vpop.f32.mrf.mxu3  ;;  %2231 = vst [vmem:[%s2519_s17 + $0x68] sm:$0xff] %v2207_v20   ;;  %v1145_v25 = vpop.f32.mrf.mxu1  ;;  %v1233_v26 = vadd.f32 %v1232_v21, %v1144_v23 }
 0x193   : > { %v1146_v27 = vadd.f32 %v1145_v25, %v1056_v24 }
 0x194   : > { %v1322_v30 = vadd.f32 %v1321_v22, %v1233_v26 }
 0x196   : > { %v1462_v36 = vadd.f32 %v2511_v34, %v1322_v30 }
 0x199   : > { %v1234_v28 = vpop.f32.mrf.mxu2  ;;  %v1059_v32 = vpop.f32.mrf.mxu0 }
 0x19a   : > { %v1323_v29 = vpop.f32.mrf.mxu3  ;;  %v1235_v31 = vadd.f32 %v1234_v28, %v1146_v27  ;;  %v1148_v33 = vpop.f32.mrf.mxu1 }
 0x19b   : > { %v1149_v41 = vadd.f32 %v1148_v33, %v1059_v32 }
 0x19c   : > { %v1324_v35 = vadd.f32 %v1323_v29, %v1235_v31 }
 0x19e   : > { %v1463_v37 = vadd.f32 %v2511_v34, %v1324_v35 }
 0x1a0   : > { %v2212_v38 = vpack.c.bf16 %v1463_v37, %v1462_v36 }
 0x1a1   : > { %v1237_v39 = vpop.f32.mrf.mxu2  ;;  %v1061_v42 = vpop.f32.mrf.mxu0 }
 0x1a2   : > { %v1326_v40 = vpop.f32.mrf.mxu3  ;;  %2232 = vst [vmem:[%s2519_s17 + $0x70] sm:$0xff] %v2212_v38   ;;  %v1150_v43 = vpop.f32.mrf.mxu1  ;;  %v1238_v44 = vadd.f32 %v1237_v39, %v1149_v41 }
 0x1a3   : > { %v1151_v45 = vadd.f32 %v1150_v43, %v1061_v42 }
 0x1a4   : > { %v1327_v47 = vadd.f32 %v1326_v40, %v1238_v44 }
 0x1a6   : > { %v1464_v51 = vadd.f32 %v2511_v34, %v1327_v47 }
 0x1a9   : > { %v1239_v46 = vpop.f32.mrf.mxu2 }
 0x1aa   : > { %v1240_v48 = vadd.f32 %v1239_v46, %v1151_v45  ;;  %v1328_v49 = vpop.f32.mrf.mxu3 }
 0x1ac   : > { %v1329_v50 = vadd.f32 %v1328_v49, %v1240_v48 }
 0x1ae   : > { %v1465_v52 = vadd.f32 %v2511_v34, %v1329_v50 }
 0x1b0   : > { %v2217_v53 = vpack.c.bf16 %v1465_v52, %v1464_v51 }
 0x1b2   : > { %2233 = vst [vmem:[%s2519_s17 + $0x78] sm:$0xff] %v2217_v53  }
 0x1b3 PF: > { %s13_s14 = sadd.s32 1, %s2281_s14   ;;  %s2628_s12 = smov %s2277_s13 }
 0x1b4   : > { %p10_p5 = scmp.ge.s32.totalorder %s13_s14, 4   ;;  %s2629_s13 = smov %s2631_s15 }
 0x1b6   :  { %12 = sbr.rel (!%p10_p5) target bundleno = 2 (0x2), region = 76 }

// kernel: forward.14
= control target key start
LH: loop header
LB: loop body
LE: loop exit
PB: predicated region body
PF: predicated region fallthrough
CT: control target
= control target key end

     0   :  { %s1239_s12 = smov 0   ;;  %s1241_s13 = smov 0   ;;  %s1379_s0 = inlined_call_operand.vmem [shape: bf16[512,128], index: 0, kind: input, shape index: {}]   ;;  %s1380_s1 = inlined_call_operand.vmem [shape: bf16[128,128], index: 1, kind: input, shape index: {}]   ;;  %s1381_s2 = inlined_call_operand.vmem [shape: f32[1,128], index: 2, kind: input, shape index: {}]   ;;  %s1382_s3 = inlined_call_operand.vmem [shape: bf16[512,128], index: 3, kind: output, shape index: {}]  }
   0x1   :  { %s1243_s14 = smov 0  }
   0x2 LB: > { %s32_s15 = sadd.s32 1, %s1213_s13  ;;  %p924_p0 = scmp.ge.s32.totalorder %s1217_s14, 1  ;;  %s1217_s14 = sphi %s1243_s14, %s13_s14   ;;  %s1213_s13 = sphi %s1241_s13, %s1384_s13   ;;  %s1209_s12 = sphi %s1239_s12, %s1383_s12  }
   0x3   : > { %p34_p1 = scmp.ge.s32.totalorder %s32_s15, 2  ;;  %p188_p2 = scmp.lt.s32.totalorder %s1217_s14, 3 }
   0x5   : > { %s1386_s15 = smov (%p34_p1, %s32_s15), 0  ;;  %p189_p3 = pnand %p924_p0, %p188_p2 }
   0x6   : > { %s925_s24 = sshll.u32 (!%p189_p3), %s1209_s12, 5 }
   0x7   : > { %192 = sbr.rel (%p189_p3) target bundleno = 239 (0xef), region = 32  ;;  %p230_p4 = scmp.lt.s32.totalorder (!%p189_p3), %s925_s24, 63 }
   0xc   : > { %v1050_v0 = vld [vmem:[%s1380_s1 + $0x38] sm:$0xff]  ;;  %v1049_v1 = vld [vmem:[%s1380_s1 + $0x30] sm:$0xff]  ;;  %v1048_v2 = vld [vmem:[%s1380_s1 + $0x28] sm:$0xff]  ;;  %s1388_s24 = smov (!%p230_p4, %s925_s24), 63 }
   0xd   : > { %519 = vmatpush.bf16.msra.mxu0 %v1050_v0  ;;  %1146 = vmatpush.bf16.msra.mxu1 %v1050_v0  ;;  %v1047_v3 = vld [vmem:[%s1380_s1 + $0x20] sm:$0xff]  ;;  %v1046_v4 = vld [vmem:[%s1380_s1 + $0x18] sm:$0xff]  ;;  %v1045_v5 = vld [vmem:[%s1380_s1 + $0x10] sm:$0xff]  ;;  %s926_s4 = sshll.u32 %s1388_s24, 2 }
   0xe   : > { %1147 = vmatpush.bf16.msra.mxu2 %v1050_v0  ;;  %1148 = vmatpush.bf16.msra.mxu3 %v1050_v0  ;;  %v1044_v6 = vld [vmem:[%s1380_s1 + $0x8] sm:$0xff]  ;;  %v1043_v7 = vld [vmem:[%s1380_s1] sm:$0xff]  ;;  %s1292_s9 = scalar_lea.vmem %s1379_s0, %s926_s4  ;;  %s1324_s17 = scalar_lea.vmem %s1382_s3, %s926_s4 }
   0xf   : > { %v1027_v8 = vld [vmem:[%s1292_s9] sm:$0xff]  ;;  %v1028_v12 = vld [vmem:[%s1292_s9 + $0x8] sm:$0xff]  ;;  %v1029_v16 = vld [vmem:[%s1292_s9 + $0x10] sm:$0xff] }
  0x10   : > { %v1031_v9 = vld [vmem:[%s1292_s9 + $0x20] sm:$0xff]  ;;  %v1032_v13 = vld [vmem:[%s1292_s9 + $0x28] sm:$0xff]  ;;  %v1033_v17 = vld [vmem:[%s1292_s9 + $0x30] sm:$0xff] }
  0x11   : > { %520 = vmatpush.bf16.msra.mxu0 %v1049_v1  ;;  %1149 = vmatpush.bf16.msra.mxu1 %v1049_v1  ;;  %v1035_v10 = vld [vmem:[%s1292_s9 + $0x40] sm:$0xff]  ;;  %v1036_v14 = vld [vmem:[%s1292_s9 + $0x48] sm:$0xff]  ;;  %v1037_v18 = vld [vmem:[%s1292_s9 + $0x50] sm:$0xff] }
  0x12   : > { %1150 = vmatpush.bf16.msra.mxu2 %v1049_v1  ;;  %1151 = vmatpush.bf16.msra.mxu3 %v1049_v1  ;;  %v1039_v11 = vld [vmem:[%s1292_s9 + $0x60] sm:$0xff]  ;;  %v1040_v15 = vld [vmem:[%s1292_s9 + $0x68] sm:$0xff]  ;;  %v1041_v19 = vld [vmem:[%s1292_s9 + $0x70] sm:$0xff] }
  0x13   : > { %v1030_v20 = vld [vmem:[%s1292_s9 + $0x18] sm:$0xff]  ;;  %v1313_v26 = vld [vmem:[%s1381_s2] ss:$0 sm:$0xff] }
  0x14   : > { %v1034_v21 = vld [vmem:[%s1292_s9 + $0x38] sm:$0xff] }
  0x15   : > { %521 = vmatpush.bf16.msra.mxu0 %v1048_v2  ;;  %1152 = vmatpush.bf16.msra.mxu1 %v1048_v2  ;;  %v1038_v22 = vld [vmem:[%s1292_s9 + $0x58] sm:$0xff] }
  0x16   : > { %1153 = vmatpush.bf16.msra.mxu2 %v1048_v2  ;;  %1154 = vmatpush.bf16.msra.mxu3 %v1048_v2  ;;  %v1042_v23 = vld [vmem:[%s1292_s9 + $0x78] sm:$0xff] }
  0x19   : > { %522 = vmatpush.bf16.msra.mxu0 %v1047_v3  ;;  %1155 = vmatpush.bf16.msra.mxu1 %v1047_v3 }
  0x1a   : > { %1156 = vmatpush.bf16.msra.mxu2 %v1047_v3  ;;  %1157 = vmatpush.bf16.msra.mxu3 %v1047_v3 }
  0x1d   : > { %523 = vmatpush.bf16.msra.mxu0 %v1046_v4  ;;  %1158 = vmatpush.bf16.msra.mxu1 %v1046_v4 }
  0x1e   : > { %1159 = vmatpush.bf16.msra.mxu2 %v1046_v4  ;;  %1160 = vmatpush.bf16.msra.mxu3 %v1046_v4 }
  0x21   : > { %524 = vmatpush.bf16.msra.mxu0 %v1045_v5  ;;  %1161 = vmatpush.bf16.msra.mxu1 %v1045_v5 }
  0x22   : > { %1162 = vmatpush.bf16.msra.mxu2 %v1045_v5  ;;  %1163 = vmatpush.bf16.msra.mxu3 %v1045_v5 }
  0x25   : > { %525 = vmatpush.bf16.msra.mxu0 %v1044_v6  ;;  %1164 = vmatpush.bf16.msra.mxu1 %v1044_v6 }
  0x26   : > { %1165 = vmatpush.bf16.msra.mxu2 %v1044_v6  ;;  %1166 = vmatpush.bf16.msra.mxu3 %v1044_v6 }
  0x29   : > { %526 = vmatpush.bf16.msra.mxu0 %v1043_v7  ;;  %1167 = vmatpush.bf16.msra.mxu1 %v1043_v7 }
  0x2a   : > { %1168 = vmatpush.bf16.msra.mxu2 %v1043_v7  ;;  %1169 = vmatpush.bf16.msra.mxu3 %v1043_v7 }
  0x2c   : > { %527 = vmatmul.bf16.vlgmr.msra.gmra.mxu0 %v1027_v8  ;;  %547 = vmatmul.bf16.vlgmr.msra.gmra.mxu1 %v1031_v9 }
  0x2d   : > { %567 = vmatmul.bf16.vlgmr.msra.gmra.mxu2 %v1035_v10  ;;  %587 = vmatmul.bf16.vlgmr.msra.gmra.mxu3 %v1039_v11 }
  0x3c   : > { %532 = vmatmul.bf16.gmra.mxu0 %v1028_v12  ;;  %552 = vmatmul.bf16.gmra.mxu1 %v1032_v13 }
  0x3d   : > { %572 = vmatmul.bf16.gmra.mxu2 %v1036_v14  ;;  %592 = vmatmul.bf16.gmra.mxu3 %v1040_v15 }
  0x4c   : > { %537 = vmatmul.bf16.gmra.mxu0 %v1029_v16  ;;  %557 = vmatmul.bf16.gmra.mxu1 %v1033_v17 }
  0x4d   : > { %577 = vmatmul.bf16.gmra.mxu2 %v1037_v18  ;;  %597 = vmatmul.bf16.gmra.mxu3 %v1041_v19 }
  0x5c   : > { %542 = vmatmul.bf16.gmra.mxu0 %v1030_v20  ;;  %562 = vmatmul.bf16.gmra.mxu1 %v1034_v21 }
  0x5d   : > { %582 = vmatmul.bf16.gmra.mxu2 %v1038_v22  ;;  %602 = vmatmul.bf16.gmra.mxu3 %v1042_v23 }
  0xa9   : > { %v528_v24 = vpop.f32.mrf.mxu0  ;;  %v548_v25 = vpop.f32.mrf.mxu1 }
  0xaa   : > { %v711_v31 = vadd.f32 %v1313_v26, %v528_v24  ;;  %v719_v32 = vadd.f32 %v1313_v26, %v548_v25 }
  0xb0   : > { %v568_v27 = vpop.f32.mrf.mxu2  ;;  %v588_v28 = vpop.f32.mrf.mxu3 }
  0xb1   : > { %v530_v29 = vpop.f32.mrf.mxu0  ;;  %v550_v30 = vpop.f32.mrf.mxu1  ;;  %v727_v39 = vadd.f32 %v1313_v26, %v568_v27  ;;  %v735_v40 = vadd.f32 %v1313_v26, %v588_v28 }
  0xb2   : > { %v712_v33 = vadd.f32 %v1313_v26, %v530_v29  ;;  %v720_v34 = vadd.f32 %v1313_v26, %v550_v30 }
  0xb4   : > { %v1054_v35 = vpack.c.bf16 %v712_v33, %v711_v31  ;;  %v1074_v36 = vpack.c.bf16 %v720_v34, %v719_v32 }
  0xb6   : > { %1055 = vst [vmem:[%s1324_s17] sm:$0xff] %v1054_v35  }
  0xb7   : > { %1134 = vst [vmem:[%s1324_s17 + $0x20] sm:$0xff] %v1074_v36  }
  0xb8   : > { %v570_v37 = vpop.f32.mrf.mxu2  ;;  %v590_v38 = vpop.f32.mrf.mxu3 }
  0xb9   : > { %v728_v41 = vadd.f32 %v1313_v26, %v570_v37  ;;  %v736_v42 = vadd.f32 %v1313_v26, %v590_v38  ;;  %v533_v43 = vpop.f32.mrf.mxu0  ;;  %v553_v44 = vpop.f32.mrf.mxu1 }
  0xba   : > { %v713_v51 = vadd.f32 %v1313_v26, %v533_v43  ;;  %v721_v52 = vadd.f32 %v1313_v26, %v553_v44 }
  0xbb   : > { %v1094_v45 = vpack.c.bf16 %v728_v41, %v727_v39  ;;  %v1114_v46 = vpack.c.bf16 %v736_v42, %v735_v40 }
  0xbd   : > { %1138 = vst [vmem:[%s1324_s17 + $0x40] sm:$0xff] %v1094_v45  }
  0xbe   : > { %1142 = vst [vmem:[%s1324_s17 + $0x60] sm:$0xff] %v1114_v46  }
  0xc0   : > { %v573_v47 = vpop.f32.mrf.mxu2  ;;  %v593_v48 = vpop.f32.mrf.mxu3 }
  0xc1   : > { %v535_v49 = vpop.f32.mrf.mxu0  ;;  %v555_v50 = vpop.f32.mrf.mxu1  ;;  %v729_v59 = vadd.f32 %v1313_v26, %v573_v47  ;;  %v737_v60 = vadd.f32 %v1313_v26, %v593_v48 }
  0xc2   : > { %v714_v53 = vadd.f32 %v1313_v26, %v535_v49  ;;  %v722_v54 = vadd.f32 %v1313_v26, %v555_v50 }
  0xc4   : > { %v1059_v55 = vpack.c.bf16 %v714_v53, %v713_v51  ;;  %v1079_v56 = vpack.c.bf16 %v722_v54, %v721_v52 }
  0xc6   : > { %1131 = vst [vmem:[%s1324_s17 + $0x8] sm:$0xff] %v1059_v55  }
  0xc7   : > { %1135 = vst [vmem:[%s1324_s17 + $0x28] sm:$0xff] %v1079_v56  }
  0xc8   : > { %v575_v57 = vpop.f32.mrf.mxu2  ;;  %v595_v58 = vpop.f32.mrf.mxu3 }
  0xc9   : > { %v730_v61 = vadd.f32 %v1313_v26, %v575_v57  ;;  %v738_v62 = vadd.f32 %v1313_v26, %v595_v58  ;;  %v538_v63 = vpop.f32.mrf.mxu0  ;;  %v558_v0 = vpop.f32.mrf.mxu1 }
  0xca   : > { %v715_v7 = vadd.f32 %v1313_v26, %v538_v63  ;;  %v723_v8 = vadd.f32 %v1313_v26, %v558_v0 }
  0xcb   : > { %v1099_v1 = vpack.c.bf16 %v730_v61, %v729_v59  ;;  %v1119_v2 = vpack.c.bf16 %v738_v62, %v737_v60 }
  0xcd   : > { %1139 = vst [vmem:[%s1324_s17 + $0x48] sm:$0xff] %v1099_v1  }
  0xce   : > { %1143 = vst [vmem:[%s1324_s17 + $0x68] sm:$0xff] %v1119_v2  }
  0xd0   : > { %v578_v3 = vpop.f32.mrf.mxu2  ;;  %v598_v4 = vpop.f32.mrf.mxu3 }
  0xd1   : > { %v540_v5 = vpop.f32.mrf.mxu0  ;;  %v560_v6 = vpop.f32.mrf.mxu1  ;;  %v731_v15 = vadd.f32 %v1313_v26, %v578_v3  ;;  %v739_v16 = vadd.f32 %v1313_v26, %v598_v4 }
  0xd2   : > { %v716_v9 = vadd.f32 %v1313_v26, %v540_v5  ;;  %v724_v10 = vadd.f32 %v1313_v26, %v560_v6 }
  0xd4   : > { %v1064_v11 = vpack.c.bf16 %v716_v9, %v715_v7  ;;  %v1084_v12 = vpack.c.bf16 %v724_v10, %v723_v8 }
  0xd6   : > { %1132 = vst [vmem:[%s1324_s17 + $0x10] sm:$0xff] %v1064_v11  }
  0xd7   : > { %1136 = vst [vmem:[%s1324_s17 + $0x30] sm:$0xff] %v1084_v12  }
  0xd8   : > { %v580_v13 = vpop.f32.mrf.mxu2  ;;  %v600_v14 = vpop.f32.mrf.mxu3 }
  0xd9   : > { %v732_v17 = vadd.f32 %v1313_v26, %v580_v13  ;;  %v740_v18 = vadd.f32 %v1313_v26, %v600_v14  ;;  %v543_v19 = vpop.f32.mrf.mxu0  ;;  %v563_v20 = vpop.f32.mrf.mxu1 }
  0xda   : > { %v717_v28 = vadd.f32 %v1313_v26, %v543_v19  ;;  %v725_v29 = vadd.f32 %v1313_v26, %v563_v20 }
  0xdb   : > { %v1104_v21 = vpack.c.bf16 %v732_v17, %v731_v15  ;;  %v1124_v22 = vpack.c.bf16 %v740_v18, %v739_v16 }
  0xdd   : > { %1140 = vst [vmem:[%s1324_s17 + $0x50] sm:$0xff] %v1104_v21  }
  0xde   : > { %1144 = vst [vmem:[%s1324_s17 + $0x70] sm:$0xff] %v1124_v22  }
  0xe0   : > { %v583_v23 = vpop.f32.mrf.mxu2  ;;  %v603_v24 = vpop.f32.mrf.mxu3 }
  0xe1   : > { %v545_v25 = vpop.f32.mrf.mxu0  ;;  %v565_v27 = vpop.f32.mrf.mxu1  ;;  %v733_v36 = vadd.f32 %v1313_v26, %v583_v23  ;;  %v741_v37 = vadd.f32 %v1313_v26, %v603_v24 }
  0xe2   : > { %v718_v30 = vadd.f32 %v1313_v26, %v545_v25  ;;  %v726_v31 = vadd.f32 %v1313_v26, %v565_v27 }
  0xe4   : > { %v1069_v32 = vpack.c.bf16 %v718_v30, %v717_v28  ;;  %v1089_v33 = vpack.c.bf16 %v726_v31, %v725_v29 }
  0xe6   : > { %1133 = vst [vmem:[%s1324_s17 + $0x18] sm:$0xff] %v1069_v32  }
  0xe7   : > { %1137 = vst [vmem:[%s1324_s17 + $0x38] sm:$0xff] %v1089_v33  }
  0xe8   : > { %v585_v34 = vpop.f32.mrf.mxu2  ;;  %v605_v35 = vpop.f32.mrf.mxu3 }
  0xe9   : > { %v734_v38 = vadd.f32 %v1313_v26, %v585_v34  ;;  %v742_v39 = vadd.f32 %v1313_v26, %v605_v35 }
  0xeb   : > { %v1109_v40 = vpack.c.bf16 %v734_v38, %v733_v36  ;;  %v1129_v41 = vpack.c.bf16 %v742_v39, %v741_v37 }
  0xed   : > { %1141 = vst [vmem:[%s1324_s17 + $0x58] sm:$0xff] %v1109_v40  }
  0xee   : > { %1145 = vst [vmem:[%s1324_s17 + $0x78] sm:$0xff] %v1129_v41  }
  0xef PF: > { %s13_s14 = sadd.s32 1, %s1217_s14   ;;  %s1383_s12 = smov %s1213_s13 }
  0xf0   : > { %p10_p5 = scmp.ge.s32.totalorder %s13_s14, 4   ;;  %s1384_s13 = smov %s1386_s15 }
  0xf2   :  { %12 = sbr.rel (!%p10_p5) target bundleno = 2 (0x2), region = 76 }

</bundles_post_ra>
